<compile_context>
chip_gen: v5e
topology: v5e:2x2
jax: 0.10.0
libtpu: 0.0.40
codegen_flags: <defaults>
</compile_context>

<pallas_src>
import functools
import math

import jax
import jax.numpy as jnp
from jax import lax
from jax.experimental import pallas as pl
from jax.experimental.pallas import tpu as pltpu


# ---------------------------------------------------------------------------
# Fused kernel: one batch element per grid step, channels-last (L, C) layout
# so the channel dim (128 / 256) maps to the 128-wide lane axis.
# ---------------------------------------------------------------------------
def _fused_encoder_kernel(x_ref,
                          w1_ref, s1_ref, t1_ref,
                          w2_ref, s2_ref, t2_ref,
                          w3_ref, s3_ref, t3_ref,
                          w4_ref, s4_ref, t4_ref,
                          o_ref,
                          h1_ref,
                          *, pool):
    f32 = jnp.float32
    bf16 = jnp.bfloat16

    L_in, C_in = x_ref.shape
    K1, _, C1 = w1_ref.shape
    L1 = L_in - K1 + 1                 # block1 out length (k=K1, stride 1)
    L2 = (L1 - 3) // 2 + 1             # block2 out length (k=3, stride 2)
    L3 = L2 - 3 + 1                    # block3 out length (k=3, stride 1)
    P = o_ref.shape[0]                 # pooled length = L3 // pool

    # ---- block1: Conv1d(C_in -> C1, k=K1) + BN + ReLU  (VPU MAC chain) -----
    x = x_ref[...]                                          # (L_in, C_in) f32
    w1 = w1_ref[...]                                        # (K1, C_in, C1) f32
    cols = [x[:, c:c + 1] for c in range(C_in)]             # C_in x (L_in, 1)
    acc1 = jnp.zeros((L1, C1), f32)
    for t in range(K1):                                     # K1*C_in broadcast-MACs
        for c in range(C_in):
            acc1 = acc1 + cols[c][t:t + L1, :] * w1[t, c:c + 1, :]
    h1 = jnp.maximum(acc1 * s1_ref[...] + t1_ref[...], 0.0)  # (L1, C1) f32
    h1_ref[...] = h1                                         # park in VMEM scratch

    # ---- block2: Conv1d(C1 -> C2, k=3, stride=2) + BN + ReLU  (MXU) --------
    n_even = (L1 + 1) // 2
    n_odd = L1 // 2
    assert n_even >= L2 + 1 and n_odd >= L2                  # trace-time guard
    even = h1_ref[pl.ds(0, n_even, 2), :]                    # rows 0,2,4,...
    odd = h1_ref[pl.ds(1, n_odd, 2), :]                      # rows 1,3,5,...
    acc2 = jnp.dot(even[0:L2].astype(bf16), w2_ref[0], preferred_element_type=f32)
    acc2 = acc2 + jnp.dot(odd[0:L2].astype(bf16), w2_ref[1], preferred_element_type=f32)
    acc2 = acc2 + jnp.dot(even[1:L2 + 1].astype(bf16), w2_ref[2], preferred_element_type=f32)
    h2 = jnp.maximum(acc2 * s2_ref[...] + t2_ref[...], 0.0)  # (L2, C2) f32

    # ---- block3: Conv1d(C2 -> C2, k=3, stride=1) + BN + ReLU  (MXU) --------
    acc3 = jnp.dot(h2[0:L3].astype(bf16), w3_ref[0], preferred_element_type=f32)
    acc3 = acc3 + jnp.dot(h2[1:L3 + 1].astype(bf16), w3_ref[1], preferred_element_type=f32)
    acc3 = acc3 + jnp.dot(h2[2:L3 + 2].astype(bf16), w3_ref[2], preferred_element_type=f32)
    h3 = jnp.maximum(acc3 * s3_ref[...] + t3_ref[...], 0.0)  # (L3, C2) f32

    # ---- block4: 1x1 conv + BN + ReLU, then AvgPool1d(pool) ----------------
    y = jnp.dot(h3.astype(bf16), w4_ref[...], preferred_element_type=f32)
    y = jnp.maximum(y * s4_ref[...] + t4_ref[...], 0.0)      # (L3, C2) f32

    # Vectorized average pool as a single pooling matmul (drops the last
    # L3 - P*pool rows, matching PyTorch AvgPool1d ceil_mode=False).
    rows = lax.broadcasted_iota(jnp.int32, (P, L3), 0)
    colsi = lax.broadcasted_iota(jnp.int32, (P, L3), 1)
    pool_mat = jnp.where((colsi >= rows * pool) & (colsi < (rows + 1) * pool),
                         1.0 / pool, 0.0).astype(f32)        # (P, L3)
    o_ref[...] = jnp.dot(pool_mat, y, preferred_element_type=f32)  # one dense store


# ---------------------------------------------------------------------------
# Wrapper: pallas_call plumbing + PyTorch-compatible layout handling
# ---------------------------------------------------------------------------
def cnn1d_encoder_forward(x_ncl, params):
    """x_ncl: (N, C_in, L) like the PyTorch module. Returns torch.squeeze(avgpool(...))."""
    (w1, s1, t1), (w2, s2, t2), (w3, s3, t3), (w4, s4, t4) = params
    N, C_in, L_in = x_ncl.shape
    x = jnp.transpose(x_ncl, (0, 2, 1))            # NCL -> NLC (channels on lanes)

    K1, _, C1 = w1.shape
    L1 = L_in - K1 + 1
    L2 = (L1 - 3) // 2 + 1
    L3 = L2 - 3 + 1
    C2 = w4.shape[-1]
    pool = 6
    P = L3 // pool
    assert P >= 1, "input too short for AvgPool1d(6)"

    kernel = functools.partial(_fused_encoder_kernel, pool=pool)

    def full(shape):
        return pl.BlockSpec(shape, lambda n, _s=shape: (0,) * len(_s))

    out = pl.pallas_call(
        kernel,
        grid=(N,),
        in_specs=[
            pl.BlockSpec((None, L_in, C_in), lambda n: (n, 0, 0)),   # x
            full(w1.shape), full(s1.shape), full(t1.shape),          # block1
            full(w2.shape), full(s2.shape), full(t2.shape),          # block2
            full(w3.shape), full(s3.shape), full(t3.shape),          # block3
            full(w4.shape), full(s4.shape), full(t4.shape),          # block4
        ],
        out_specs=pl.BlockSpec((None, P, C2), lambda n: (n, 0, 0)),  # lane-dense
        out_shape=jax.ShapeDtypeStruct((N, P, C2), jnp.float32),
        scratch_shapes=[pltpu.VMEM((L1, C1), jnp.float32)],          # h1 stays on-chip
        compiler_params=pltpu.CompilerParams(
            dimension_semantics=("parallel",)),                      # feed both v7x TCs
    )(x, w1, s1, t1, w2, s2, t2, w3, s3, t3, w4, s4, t4)

    out = jnp.transpose(out, (0, 2, 1))            # (N, P, C) -> (N, C, P)
    return jnp.squeeze(out)                        # mimics torch.squeeze
    # TODO(synk): Dropout (p=0.4) is identity in inference; training-mode
    # dropout / BN running-stat updates are intentionally not modeled.


# ---------------------------------------------------------------------------
# Deterministic parameter construction (PyTorch conv W is (C_out, C_in, K))
# ---------------------------------------------------------------------------
def make_block_params(key, c_in, c_out, k, *, weight_dtype=jnp.bfloat16):
    kw, kb, kg, kbt, km, kv = jax.random.split(key, 6)
    bound = 1.0 / math.sqrt(c_in * k)
    w = jax.random.uniform(kw, (c_out, c_in, k), jnp.float32, -bound, bound)
    b = jax.random.uniform(kb, (c_out,), jnp.float32, -bound, bound)
    gamma = jax.random.uniform(kg, (c_out,), jnp.float32, 0.5, 1.5)
    beta = 0.1 * jax.random.normal(kbt, (c_out,), jnp.float32)
    run_mean = 0.1 * jax.random.normal(km, (c_out,), jnp.float32)
    run_var = jax.random.uniform(kv, (c_out,), jnp.float32, 0.5, 1.5)
    eps = 1e-5
    scale = gamma / jnp.sqrt(run_var + eps)
    # BN(conv(x) + b) = scale * conv(x) + (scale*b + beta - scale*mean)
    shift = scale * b + beta - scale * run_mean
    w_kio = jnp.transpose(w, (2, 1, 0)).astype(weight_dtype)   # (K, C_in, C_out)
    return w_kio, scale.reshape(1, -1), shift.reshape(1, -1)


if __name__ == "__main__":
    key = jax.random.PRNGKey(0)
    kx, k1, k2, k3, k4 = jax.random.split(key, 5)

    N, C_in, L = 2, 4, 64
    n_filters = 128

    x = jax.random.normal(kx, (N, C_in, L), dtype=jnp.float32)   # PyTorch NCL input

    # block1 weights stay f32 (VPU path); blocks 2-4 are bf16 MXU operands.
    p1 = make_block_params(k1, C_in, n_filters, 5, weight_dtype=jnp.float32)
    p2 = make_block_params(k2, n_filters, 2 * n_filters, 3)
    p3 = make_block_params(k3, 2 * n_filters, 2 * n_filters, 3)
    w4, s4, t4 = make_block_params(k4, 2 * n_filters, 2 * n_filters, 1)
    p4 = (w4[0], s4, t4)                 # 1x1 conv -> plain (C_in, C_out) matmul

    fwd = jax.jit(cnn1d_encoder_forward)
    out = fwd(x, (p1, p2, p3, p4))
    jax.block_until_ready(out)
    assert out.shape == (N, 2 * n_filters, 4), out.shape
    print("KERNEL_OK")
</pallas_src>

<mosaic_0001>
module attributes {stable_mosaic.version = 11 : i64} {
  func.func @_fused_encoder_kernel(%arg0: i32, %arg1: memref<1x64x4xf32, #tpu.memory_space<vmem>>, %arg2: memref<5x4x128xf32, #tpu.memory_space<vmem>>, %arg3: memref<1x128xf32, #tpu.memory_space<vmem>>, %arg4: memref<1x128xf32, #tpu.memory_space<vmem>>, %arg5: memref<3x128x256xbf16, #tpu.memory_space<vmem>>, %arg6: memref<1x256xf32, #tpu.memory_space<vmem>>, %arg7: memref<1x256xf32, #tpu.memory_space<vmem>>, %arg8: memref<3x256x256xbf16, #tpu.memory_space<vmem>>, %arg9: memref<1x256xf32, #tpu.memory_space<vmem>>, %arg10: memref<1x256xf32, #tpu.memory_space<vmem>>, %arg11: memref<256x256xbf16, #tpu.memory_space<vmem>>, %arg12: memref<1x256xf32, #tpu.memory_space<vmem>>, %arg13: memref<1x256xf32, #tpu.memory_space<vmem>>, %arg14: memref<1x4x256xf32, #tpu.memory_space<vmem>>, %arg15: memref<60x128xf32, #tpu.memory_space<vmem>>) attributes {dimension_semantics = [#tpu.dimension_semantics<parallel>], iteration_bounds = array<i64: 2>, scalar_prefetch = 0 : i64, scratch_operands = 1 : i64, tpu.core_type = #tpu.core_type<tc>, window_params = [{transform_indices = @transform_0, window_bounds = array<i64: 1, 64, 4>}, {pipeline_mode = #tpu.pipeline_mode<synchronous>, transform_indices = @transform_1, window_bounds = array<i64: 5, 4, 128>}, {pipeline_mode = #tpu.pipeline_mode<synchronous>, transform_indices = @transform_2, window_bounds = array<i64: 1, 128>}, {pipeline_mode = #tpu.pipeline_mode<synchronous>, transform_indices = @transform_3, window_bounds = array<i64: 1, 128>}, {pipeline_mode = #tpu.pipeline_mode<synchronous>, transform_indices = @transform_4, window_bounds = array<i64: 3, 128, 256>}, {pipeline_mode = #tpu.pipeline_mode<synchronous>, transform_indices = @transform_5, window_bounds = array<i64: 1, 256>}, {pipeline_mode = #tpu.pipeline_mode<synchronous>, transform_indices = @transform_6, window_bounds = array<i64: 1, 256>}, {pipeline_mode = #tpu.pipeline_mode<synchronous>, transform_indices = @transform_7, window_bounds = array<i64: 3, 256, 256>}, {pipeline_mode = #tpu.pipeline_mode<synchronous>, transform_indices = @transform_8, window_bounds = array<i64: 1, 256>}, {pipeline_mode = #tpu.pipeline_mode<synchronous>, transform_indices = @transform_9, window_bounds = array<i64: 1, 256>}, {pipeline_mode = #tpu.pipeline_mode<synchronous>, transform_indices = @transform_10, window_bounds = array<i64: 256, 256>}, {pipeline_mode = #tpu.pipeline_mode<synchronous>, transform_indices = @transform_11, window_bounds = array<i64: 1, 256>}, {pipeline_mode = #tpu.pipeline_mode<synchronous>, transform_indices = @transform_12, window_bounds = array<i64: 1, 256>}, {transform_indices = @transform_13, window_bounds = array<i64: 1, 4, 256>}]} {
    %c0 = arith.constant 0 : index
    %c0_0 = arith.constant 0 : index
    %c0_1 = arith.constant 0 : index
    %0 = vector.load %arg1[%c0, %c0_0, %c0_1] : memref<1x64x4xf32, #tpu.memory_space<vmem>>, vector<1x64x4xf32>
    %1 = vector.shape_cast %0 : vector<1x64x4xf32> to vector<64x4xf32>
    %c0_2 = arith.constant 0 : index
    %c0_3 = arith.constant 0 : index
    %c0_4 = arith.constant 0 : index
    %2 = vector.load %arg2[%c0_2, %c0_3, %c0_4] : memref<5x4x128xf32, #tpu.memory_space<vmem>>, vector<5x4x128xf32>
    %3 = vector.extract_strided_slice %1 {offsets = [0, 0], sizes = [64, 1], strides = [1, 1]} : vector<64x4xf32> to vector<64x1xf32>
    %4 = vector.extract_strided_slice %1 {offsets = [0, 1], sizes = [64, 1], strides = [1, 1]} : vector<64x4xf32> to vector<64x1xf32>
    %5 = vector.extract_strided_slice %1 {offsets = [0, 2], sizes = [64, 1], strides = [1, 1]} : vector<64x4xf32> to vector<64x1xf32>
    %6 = vector.extract_strided_slice %1 {offsets = [0, 3], sizes = [64, 1], strides = [1, 1]} : vector<64x4xf32> to vector<64x1xf32>
    %cst = arith.constant 0.000000e+00 : f32
    %7 = vector.broadcast %cst : f32 to vector<60x128xf32>
    %8 = vector.extract_strided_slice %3 {offsets = [0, 0], sizes = [60, 1], strides = [1, 1]} : vector<64x1xf32> to vector<60x1xf32>
    %9 = vector.extract_strided_slice %2 {offsets = [0, 0, 0], sizes = [1, 1, 128], strides = [1, 1, 1]} : vector<5x4x128xf32> to vector<1x1x128xf32>
    %10 = vector.shape_cast %9 : vector<1x1x128xf32> to vector<1x128xf32>
    %11 = vector.broadcast %8 : vector<60x1xf32> to vector<60x128xf32>
    %12 = vector.broadcast %10 : vector<1x128xf32> to vector<60x128xf32>
    %13 = arith.mulf %11, %12 : vector<60x128xf32>
    %14 = arith.addf %7, %13 : vector<60x128xf32>
    %15 = vector.extract_strided_slice %4 {offsets = [0, 0], sizes = [60, 1], strides = [1, 1]} : vector<64x1xf32> to vector<60x1xf32>
    %16 = vector.extract_strided_slice %2 {offsets = [0, 1, 0], sizes = [1, 1, 128], strides = [1, 1, 1]} : vector<5x4x128xf32> to vector<1x1x128xf32>
    %17 = vector.shape_cast %16 : vector<1x1x128xf32> to vector<1x128xf32>
    %18 = vector.broadcast %15 : vector<60x1xf32> to vector<60x128xf32>
    %19 = vector.broadcast %17 : vector<1x128xf32> to vector<60x128xf32>
    %20 = arith.mulf %18, %19 : vector<60x128xf32>
    %21 = arith.addf %14, %20 : vector<60x128xf32>
    %22 = vector.extract_strided_slice %5 {offsets = [0, 0], sizes = [60, 1], strides = [1, 1]} : vector<64x1xf32> to vector<60x1xf32>
    %23 = vector.extract_strided_slice %2 {offsets = [0, 2, 0], sizes = [1, 1, 128], strides = [1, 1, 1]} : vector<5x4x128xf32> to vector<1x1x128xf32>
    %24 = vector.shape_cast %23 : vector<1x1x128xf32> to vector<1x128xf32>
    %25 = vector.broadcast %22 : vector<60x1xf32> to vector<60x128xf32>
    %26 = vector.broadcast %24 : vector<1x128xf32> to vector<60x128xf32>
    %27 = arith.mulf %25, %26 : vector<60x128xf32>
    %28 = arith.addf %21, %27 : vector<60x128xf32>
    %29 = vector.extract_strided_slice %6 {offsets = [0, 0], sizes = [60, 1], strides = [1, 1]} : vector<64x1xf32> to vector<60x1xf32>
    %30 = vector.extract_strided_slice %2 {offsets = [0, 3, 0], sizes = [1, 1, 128], strides = [1, 1, 1]} : vector<5x4x128xf32> to vector<1x1x128xf32>
    %31 = vector.shape_cast %30 : vector<1x1x128xf32> to vector<1x128xf32>
    %32 = vector.broadcast %29 : vector<60x1xf32> to vector<60x128xf32>
    %33 = vector.broadcast %31 : vector<1x128xf32> to vector<60x128xf32>
    %34 = arith.mulf %32, %33 : vector<60x128xf32>
    %35 = arith.addf %28, %34 : vector<60x128xf32>
    %36 = vector.extract_strided_slice %3 {offsets = [1, 0], sizes = [60, 1], strides = [1, 1]} : vector<64x1xf32> to vector<60x1xf32>
    %37 = vector.extract_strided_slice %2 {offsets = [1, 0, 0], sizes = [1, 1, 128], strides = [1, 1, 1]} : vector<5x4x128xf32> to vector<1x1x128xf32>
    %38 = vector.shape_cast %37 : vector<1x1x128xf32> to vector<1x128xf32>
    %39 = vector.broadcast %36 : vector<60x1xf32> to vector<60x128xf32>
    %40 = vector.broadcast %38 : vector<1x128xf32> to vector<60x128xf32>
    %41 = arith.mulf %39, %40 : vector<60x128xf32>
    %42 = arith.addf %35, %41 : vector<60x128xf32>
    %43 = vector.extract_strided_slice %4 {offsets = [1, 0], sizes = [60, 1], strides = [1, 1]} : vector<64x1xf32> to vector<60x1xf32>
    %44 = vector.extract_strided_slice %2 {offsets = [1, 1, 0], sizes = [1, 1, 128], strides = [1, 1, 1]} : vector<5x4x128xf32> to vector<1x1x128xf32>
    %45 = vector.shape_cast %44 : vector<1x1x128xf32> to vector<1x128xf32>
    %46 = vector.broadcast %43 : vector<60x1xf32> to vector<60x128xf32>
    %47 = vector.broadcast %45 : vector<1x128xf32> to vector<60x128xf32>
    %48 = arith.mulf %46, %47 : vector<60x128xf32>
    %49 = arith.addf %42, %48 : vector<60x128xf32>
    %50 = vector.extract_strided_slice %5 {offsets = [1, 0], sizes = [60, 1], strides = [1, 1]} : vector<64x1xf32> to vector<60x1xf32>
    %51 = vector.extract_strided_slice %2 {offsets = [1, 2, 0], sizes = [1, 1, 128], strides = [1, 1, 1]} : vector<5x4x128xf32> to vector<1x1x128xf32>
    %52 = vector.shape_cast %51 : vector<1x1x128xf32> to vector<1x128xf32>
    %53 = vector.broadcast %50 : vector<60x1xf32> to vector<60x128xf32>
    %54 = vector.broadcast %52 : vector<1x128xf32> to vector<60x128xf32>
    %55 = arith.mulf %53, %54 : vector<60x128xf32>
    %56 = arith.addf %49, %55 : vector<60x128xf32>
    %57 = vector.extract_strided_slice %6 {offsets = [1, 0], sizes = [60, 1], strides = [1, 1]} : vector<64x1xf32> to vector<60x1xf32>
    %58 = vector.extract_strided_slice %2 {offsets = [1, 3, 0], sizes = [1, 1, 128], strides = [1, 1, 1]} : vector<5x4x128xf32> to vector<1x1x128xf32>
    %59 = vector.shape_cast %58 : vector<1x1x128xf32> to vector<1x128xf32>
    %60 = vector.broadcast %57 : vector<60x1xf32> to vector<60x128xf32>
    %61 = vector.broadcast %59 : vector<1x128xf32> to vector<60x128xf32>
    %62 = arith.mulf %60, %61 : vector<60x128xf32>
    %63 = arith.addf %56, %62 : vector<60x128xf32>
    %64 = vector.extract_strided_slice %3 {offsets = [2, 0], sizes = [60, 1], strides = [1, 1]} : vector<64x1xf32> to vector<60x1xf32>
    %65 = vector.extract_strided_slice %2 {offsets = [2, 0, 0], sizes = [1, 1, 128], strides = [1, 1, 1]} : vector<5x4x128xf32> to vector<1x1x128xf32>
    %66 = vector.shape_cast %65 : vector<1x1x128xf32> to vector<1x128xf32>
    %67 = vector.broadcast %64 : vector<60x1xf32> to vector<60x128xf32>
    %68 = vector.broadcast %66 : vector<1x128xf32> to vector<60x128xf32>
    %69 = arith.mulf %67, %68 : vector<60x128xf32>
    %70 = arith.addf %63, %69 : vector<60x128xf32>
    %71 = vector.extract_strided_slice %4 {offsets = [2, 0], sizes = [60, 1], strides = [1, 1]} : vector<64x1xf32> to vector<60x1xf32>
    %72 = vector.extract_strided_slice %2 {offsets = [2, 1, 0], sizes = [1, 1, 128], strides = [1, 1, 1]} : vector<5x4x128xf32> to vector<1x1x128xf32>
    %73 = vector.shape_cast %72 : vector<1x1x128xf32> to vector<1x128xf32>
    %74 = vector.broadcast %71 : vector<60x1xf32> to vector<60x128xf32>
    %75 = vector.broadcast %73 : vector<1x128xf32> to vector<60x128xf32>
    %76 = arith.mulf %74, %75 : vector<60x128xf32>
    %77 = arith.addf %70, %76 : vector<60x128xf32>
    %78 = vector.extract_strided_slice %5 {offsets = [2, 0], sizes = [60, 1], strides = [1, 1]} : vector<64x1xf32> to vector<60x1xf32>
    %79 = vector.extract_strided_slice %2 {offsets = [2, 2, 0], sizes = [1, 1, 128], strides = [1, 1, 1]} : vector<5x4x128xf32> to vector<1x1x128xf32>
    %80 = vector.shape_cast %79 : vector<1x1x128xf32> to vector<1x128xf32>
    %81 = vector.broadcast %78 : vector<60x1xf32> to vector<60x128xf32>
    %82 = vector.broadcast %80 : vector<1x128xf32> to vector<60x128xf32>
    %83 = arith.mulf %81, %82 : vector<60x128xf32>
    %84 = arith.addf %77, %83 : vector<60x128xf32>
    %85 = vector.extract_strided_slice %6 {offsets = [2, 0], sizes = [60, 1], strides = [1, 1]} : vector<64x1xf32> to vector<60x1xf32>
    %86 = vector.extract_strided_slice %2 {offsets = [2, 3, 0], sizes = [1, 1, 128], strides = [1, 1, 1]} : vector<5x4x128xf32> to vector<1x1x128xf32>
    %87 = vector.shape_cast %86 : vector<1x1x128xf32> to vector<1x128xf32>
    %88 = vector.broadcast %85 : vector<60x1xf32> to vector<60x128xf32>
    %89 = vector.broadcast %87 : vector<1x128xf32> to vector<60x128xf32>
    %90 = arith.mulf %88, %89 : vector<60x128xf32>
    %91 = arith.addf %84, %90 : vector<60x128xf32>
    %92 = vector.extract_strided_slice %3 {offsets = [3, 0], sizes = [60, 1], strides = [1, 1]} : vector<64x1xf32> to vector<60x1xf32>
    %93 = vector.extract_strided_slice %2 {offsets = [3, 0, 0], sizes = [1, 1, 128], strides = [1, 1, 1]} : vector<5x4x128xf32> to vector<1x1x128xf32>
    %94 = vector.shape_cast %93 : vector<1x1x128xf32> to vector<1x128xf32>
    %95 = vector.broadcast %92 : vector<60x1xf32> to vector<60x128xf32>
    %96 = vector.broadcast %94 : vector<1x128xf32> to vector<60x128xf32>
    %97 = arith.mulf %95, %96 : vector<60x128xf32>
    %98 = arith.addf %91, %97 : vector<60x128xf32>
    %99 = vector.extract_strided_slice %4 {offsets = [3, 0], sizes = [60, 1], strides = [1, 1]} : vector<64x1xf32> to vector<60x1xf32>
    %100 = vector.extract_strided_slice %2 {offsets = [3, 1, 0], sizes = [1, 1, 128], strides = [1, 1, 1]} : vector<5x4x128xf32> to vector<1x1x128xf32>
    %101 = vector.shape_cast %100 : vector<1x1x128xf32> to vector<1x128xf32>
    %102 = vector.broadcast %99 : vector<60x1xf32> to vector<60x128xf32>
    %103 = vector.broadcast %101 : vector<1x128xf32> to vector<60x128xf32>
    %104 = arith.mulf %102, %103 : vector<60x128xf32>
    %105 = arith.addf %98, %104 : vector<60x128xf32>
    %106 = vector.extract_strided_slice %5 {offsets = [3, 0], sizes = [60, 1], strides = [1, 1]} : vector<64x1xf32> to vector<60x1xf32>
    %107 = vector.extract_strided_slice %2 {offsets = [3, 2, 0], sizes = [1, 1, 128], strides = [1, 1, 1]} : vector<5x4x128xf32> to vector<1x1x128xf32>
    %108 = vector.shape_cast %107 : vector<1x1x128xf32> to vector<1x128xf32>
    %109 = vector.broadcast %106 : vector<60x1xf32> to vector<60x128xf32>
    %110 = vector.broadcast %108 : vector<1x128xf32> to vector<60x128xf32>
    %111 = arith.mulf %109, %110 : vector<60x128xf32>
    %112 = arith.addf %105, %111 : vector<60x128xf32>
    %113 = vector.extract_strided_slice %6 {offsets = [3, 0], sizes = [60, 1], strides = [1, 1]} : vector<64x1xf32> to vector<60x1xf32>
    %114 = vector.extract_strided_slice %2 {offsets = [3, 3, 0], sizes = [1, 1, 128], strides = [1, 1, 1]} : vector<5x4x128xf32> to vector<1x1x128xf32>
    %115 = vector.shape_cast %114 : vector<1x1x128xf32> to vector<1x128xf32>
    %116 = vector.broadcast %113 : vector<60x1xf32> to vector<60x128xf32>
    %117 = vector.broadcast %115 : vector<1x128xf32> to vector<60x128xf32>
    %118 = arith.mulf %116, %117 : vector<60x128xf32>
    %119 = arith.addf %112, %118 : vector<60x128xf32>
    %120 = vector.extract_strided_slice %3 {offsets = [4, 0], sizes = [60, 1], strides = [1, 1]} : vector<64x1xf32> to vector<60x1xf32>
    %121 = vector.extract_strided_slice %2 {offsets = [4, 0, 0], sizes = [1, 1, 128], strides = [1, 1, 1]} : vector<5x4x128xf32> to vector<1x1x128xf32>
    %122 = vector.shape_cast %121 : vector<1x1x128xf32> to vector<1x128xf32>
    %123 = vector.broadcast %120 : vector<60x1xf32> to vector<60x128xf32>
    %124 = vector.broadcast %122 : vector<1x128xf32> to vector<60x128xf32>
    %125 = arith.mulf %123, %124 : vector<60x128xf32>
    %126 = arith.addf %119, %125 : vector<60x128xf32>
    %127 = vector.extract_strided_slice %4 {offsets = [4, 0], sizes = [60, 1], strides = [1, 1]} : vector<64x1xf32> to vector<60x1xf32>
    %128 = vector.extract_strided_slice %2 {offsets = [4, 1, 0], sizes = [1, 1, 128], strides = [1, 1, 1]} : vector<5x4x128xf32> to vector<1x1x128xf32>
    %129 = vector.shape_cast %128 : vector<1x1x128xf32> to vector<1x128xf32>
    %130 = vector.broadcast %127 : vector<60x1xf32> to vector<60x128xf32>
    %131 = vector.broadcast %129 : vector<1x128xf32> to vector<60x128xf32>
    %132 = arith.mulf %130, %131 : vector<60x128xf32>
    %133 = arith.addf %126, %132 : vector<60x128xf32>
    %134 = vector.extract_strided_slice %5 {offsets = [4, 0], sizes = [60, 1], strides = [1, 1]} : vector<64x1xf32> to vector<60x1xf32>
    %135 = vector.extract_strided_slice %2 {offsets = [4, 2, 0], sizes = [1, 1, 128], strides = [1, 1, 1]} : vector<5x4x128xf32> to vector<1x1x128xf32>
    %136 = vector.shape_cast %135 : vector<1x1x128xf32> to vector<1x128xf32>
    %137 = vector.broadcast %134 : vector<60x1xf32> to vector<60x128xf32>
    %138 = vector.broadcast %136 : vector<1x128xf32> to vector<60x128xf32>
    %139 = arith.mulf %137, %138 : vector<60x128xf32>
    %140 = arith.addf %133, %139 : vector<60x128xf32>
    %141 = vector.extract_strided_slice %6 {offsets = [4, 0], sizes = [60, 1], strides = [1, 1]} : vector<64x1xf32> to vector<60x1xf32>
    %142 = vector.extract_strided_slice %2 {offsets = [4, 3, 0], sizes = [1, 1, 128], strides = [1, 1, 1]} : vector<5x4x128xf32> to vector<1x1x128xf32>
    %143 = vector.shape_cast %142 : vector<1x1x128xf32> to vector<1x128xf32>
    %144 = vector.broadcast %141 : vector<60x1xf32> to vector<60x128xf32>
    %145 = vector.broadcast %143 : vector<1x128xf32> to vector<60x128xf32>
    %146 = arith.mulf %144, %145 : vector<60x128xf32>
    %147 = arith.addf %140, %146 : vector<60x128xf32>
    %c0_5 = arith.constant 0 : index
    %c0_6 = arith.constant 0 : index
    %148 = vector.load %arg3[%c0_5, %c0_6] : memref<1x128xf32, #tpu.memory_space<vmem>>, vector<1x128xf32>
    %149 = vector.broadcast %148 : vector<1x128xf32> to vector<60x128xf32>
    %150 = arith.mulf %147, %149 : vector<60x128xf32>
    %c0_7 = arith.constant 0 : index
    %c0_8 = arith.constant 0 : index
    %151 = vector.load %arg4[%c0_7, %c0_8] : memref<1x128xf32, #tpu.memory_space<vmem>>, vector<1x128xf32>
    %152 = vector.broadcast %151 : vector<1x128xf32> to vector<60x128xf32>
    %153 = arith.addf %150, %152 : vector<60x128xf32>
    %cst_9 = arith.constant 0.000000e+00 : f32
    %154 = vector.broadcast %cst_9 : f32 to vector<60x128xf32>
    %155 = arith.maximumf %153, %154 : vector<60x128xf32>
    %c0_10 = arith.constant 0 : index
    %c0_11 = arith.constant 0 : index
    %156 = vector.load %arg15[%c0_10, %c0_11] : memref<60x128xf32, #tpu.memory_space<vmem>>, vector<60x128xf32>
    tpu.vector_store %arg15[%c0_10, %c0_11], %155 {strides = array<i32>} : memref<60x128xf32, #tpu.memory_space<vmem>>, vector<60x128xf32>,
    %c0_12 = arith.constant 0 : index
    %c0_13 = arith.constant 0 : index
    %157 = tpu.strided_load %arg15[%c0_12, %c0_13] {strides = array<i32: 2, 1>} : memref<60x128xf32, #tpu.memory_space<vmem>>, vector<30x128xf32>
    %c1 = arith.constant 1 : index
    %c0_14 = arith.constant 0 : index
    %158 = tpu.strided_load %arg15[%c1, %c0_14] {strides = array<i32: 2, 1>} : memref<60x128xf32, #tpu.memory_space<vmem>>, vector<30x128xf32>
    %159 = vector.extract_strided_slice %157 {offsets = [0, 0], sizes = [29, 128], strides = [1, 1]} : vector<30x128xf32> to vector<29x128xf32>
    %160 = arith.truncf %159 : vector<29x128xf32> to vector<29x128xbf16>
    %c0_15 = arith.constant 0 : index
    %c0_16 = arith.constant 0 : index
    %c0_17 = arith.constant 0 : index
    %161 = vector.load %arg5[%c0_15, %c0_16, %c0_17] : memref<3x128x256xbf16, #tpu.memory_space<vmem>>, vector<1x128x256xbf16>
    %162 = vector.shape_cast %161 : vector<1x128x256xbf16> to vector<128x256xbf16>
    %cst_18 = arith.constant dense<0.000000e+00> : vector<29x256xf32>
    %163 = tpu.matmul %160, %162, %cst_18 {dimension_numbers = #tpu.dot_dimension_numbers<[1], [0], [0], [1], [0, 0, 1, 1], [], []>} : vector<29x128xbf16>, vector<128x256xbf16>, vector<29x256xf32> -> vector<29x256xf32>
    %164 = vector.extract_strided_slice %158 {offsets = [0, 0], sizes = [29, 128], strides = [1, 1]} : vector<30x128xf32> to vector<29x128xf32>
    %165 = arith.truncf %164 : vector<29x128xf32> to vector<29x128xbf16>
    %c1_19 = arith.constant 1 : index
    %c0_20 = arith.constant 0 : index
    %c0_21 = arith.constant 0 : index
    %166 = vector.load %arg5[%c1_19, %c0_20, %c0_21] : memref<3x128x256xbf16, #tpu.memory_space<vmem>>, vector<1x128x256xbf16>
    %167 = vector.shape_cast %166 : vector<1x128x256xbf16> to vector<128x256xbf16>
    %cst_22 = arith.constant dense<0.000000e+00> : vector<29x256xf32>
    %168 = tpu.matmul %165, %167, %cst_22 {dimension_numbers = #tpu.dot_dimension_numbers<[1], [0], [0], [1], [0, 0, 1, 1], [], []>} : vector<29x128xbf16>, vector<128x256xbf16>, vector<29x256xf32> -> vector<29x256xf32>
    %169 = arith.addf %163, %168 : vector<29x256xf32>
    %170 = vector.extract_strided_slice %157 {offsets = [1, 0], sizes = [29, 128], strides = [1, 1]} : vector<30x128xf32> to vector<29x128xf32>
    %171 = arith.truncf %170 : vector<29x128xf32> to vector<29x128xbf16>
    %c2 = arith.constant 2 : index
    %c0_23 = arith.constant 0 : index
    %c0_24 = arith.constant 0 : index
    %172 = vector.load %arg5[%c2, %c0_23, %c0_24] : memref<3x128x256xbf16, #tpu.memory_space<vmem>>, vector<1x128x256xbf16>
    %173 = vector.shape_cast %172 : vector<1x128x256xbf16> to vector<128x256xbf16>
    %cst_25 = arith.constant dense<0.000000e+00> : vector<29x256xf32>
    %174 = tpu.matmul %171, %173, %cst_25 {dimension_numbers = #tpu.dot_dimension_numbers<[1], [0], [0], [1], [0, 0, 1, 1], [], []>} : vector<29x128xbf16>, vector<128x256xbf16>, vector<29x256xf32> -> vector<29x256xf32>
    %175 = arith.addf %169, %174 : vector<29x256xf32>
    %c0_26 = arith.constant 0 : index
    %c0_27 = arith.constant 0 : index
    %176 = vector.load %arg6[%c0_26, %c0_27] : memref<1x256xf32, #tpu.memory_space<vmem>>, vector<1x256xf32>
    %177 = vector.broadcast %176 : vector<1x256xf32> to vector<29x256xf32>
    %178 = arith.mulf %175, %177 : vector<29x256xf32>
    %c0_28 = arith.constant 0 : index
    %c0_29 = arith.constant 0 : index
    %179 = vector.load %arg7[%c0_28, %c0_29] : memref<1x256xf32, #tpu.memory_space<vmem>>, vector<1x256xf32>
    %180 = vector.broadcast %179 : vector<1x256xf32> to vector<29x256xf32>
    %181 = arith.addf %178, %180 : vector<29x256xf32>
    %cst_30 = arith.constant 0.000000e+00 : f32
    %182 = vector.broadcast %cst_30 : f32 to vector<29x256xf32>
    %183 = arith.maximumf %181, %182 : vector<29x256xf32>
    %184 = vector.extract_strided_slice %183 {offsets = [0, 0], sizes = [27, 256], strides = [1, 1]} : vector<29x256xf32> to vector<27x256xf32>
    %185 = arith.truncf %184 : vector<27x256xf32> to vector<27x256xbf16>
    %c0_31 = arith.constant 0 : index
    %c0_32 = arith.constant 0 : index
    %c0_33 = arith.constant 0 : index
    %186 = vector.load %arg8[%c0_31, %c0_32, %c0_33] : memref<3x256x256xbf16, #tpu.memory_space<vmem>>, vector<1x256x256xbf16>
    %187 = vector.shape_cast %186 : vector<1x256x256xbf16> to vector<256x256xbf16>
    %cst_34 = arith.constant dense<0.000000e+00> : vector<27x256xf32>
    %188 = tpu.matmul %185, %187, %cst_34 {dimension_numbers = #tpu.dot_dimension_numbers<[1], [0], [0], [1], [0, 0, 1, 1], [], []>} : vector<27x256xbf16>, vector<256x256xbf16>, vector<27x256xf32> -> vector<27x256xf32>
    %189 = vector.extract_strided_slice %183 {offsets = [1, 0], sizes = [27, 256], strides = [1, 1]} : vector<29x256xf32> to vector<27x256xf32>
    %190 = arith.truncf %189 : vector<27x256xf32> to vector<27x256xbf16>
    %c1_35 = arith.constant 1 : index
    %c0_36 = arith.constant 0 : index
    %c0_37 = arith.constant 0 : index
    %191 = vector.load %arg8[%c1_35, %c0_36, %c0_37] : memref<3x256x256xbf16, #tpu.memory_space<vmem>>, vector<1x256x256xbf16>
    %192 = vector.shape_cast %191 : vector<1x256x256xbf16> to vector<256x256xbf16>
    %cst_38 = arith.constant dense<0.000000e+00> : vector<27x256xf32>
    %193 = tpu.matmul %190, %192, %cst_38 {dimension_numbers = #tpu.dot_dimension_numbers<[1], [0], [0], [1], [0, 0, 1, 1], [], []>} : vector<27x256xbf16>, vector<256x256xbf16>, vector<27x256xf32> -> vector<27x256xf32>
    %194 = arith.addf %188, %193 : vector<27x256xf32>
    %195 = vector.extract_strided_slice %183 {offsets = [2, 0], sizes = [27, 256], strides = [1, 1]} : vector<29x256xf32> to vector<27x256xf32>
    %196 = arith.truncf %195 : vector<27x256xf32> to vector<27x256xbf16>
    %c2_39 = arith.constant 2 : index
    %c0_40 = arith.constant 0 : index
    %c0_41 = arith.constant 0 : index
    %197 = vector.load %arg8[%c2_39, %c0_40, %c0_41] : memref<3x256x256xbf16, #tpu.memory_space<vmem>>, vector<1x256x256xbf16>
    %198 = vector.shape_cast %197 : vector<1x256x256xbf16> to vector<256x256xbf16>
    %cst_42 = arith.constant dense<0.000000e+00> : vector<27x256xf32>
    %199 = tpu.matmul %196, %198, %cst_42 {dimension_numbers = #tpu.dot_dimension_numbers<[1], [0], [0], [1], [0, 0, 1, 1], [], []>} : vector<27x256xbf16>, vector<256x256xbf16>, vector<27x256xf32> -> vector<27x256xf32>
    %200 = arith.addf %194, %199 : vector<27x256xf32>
    %c0_43 = arith.constant 0 : index
    %c0_44 = arith.constant 0 : index
    %201 = vector.load %arg9[%c0_43, %c0_44] : memref<1x256xf32, #tpu.memory_space<vmem>>, vector<1x256xf32>
    %202 = vector.broadcast %201 : vector<1x256xf32> to vector<27x256xf32>
    %203 = arith.mulf %200, %202 : vector<27x256xf32>
    %c0_45 = arith.constant 0 : index
    %c0_46 = arith.constant 0 : index
    %204 = vector.load %arg10[%c0_45, %c0_46] : memref<1x256xf32, #tpu.memory_space<vmem>>, vector<1x256xf32>
    %205 = vector.broadcast %204 : vector<1x256xf32> to vector<27x256xf32>
    %206 = arith.addf %203, %205 : vector<27x256xf32>
    %cst_47 = arith.constant 0.000000e+00 : f32
    %207 = vector.broadcast %cst_47 : f32 to vector<27x256xf32>
    %208 = arith.maximumf %206, %207 : vector<27x256xf32>
    %209 = arith.truncf %208 : vector<27x256xf32> to vector<27x256xbf16>
    %c0_48 = arith.constant 0 : index
    %c0_49 = arith.constant 0 : index
    %210 = vector.load %arg11[%c0_48, %c0_49] : memref<256x256xbf16, #tpu.memory_space<vmem>>, vector<256x256xbf16>
    %cst_50 = arith.constant dense<0.000000e+00> : vector<27x256xf32>
    %211 = tpu.matmul %209, %210, %cst_50 {dimension_numbers = #tpu.dot_dimension_numbers<[1], [0], [0], [1], [0, 0, 1, 1], [], []>} : vector<27x256xbf16>, vector<256x256xbf16>, vector<27x256xf32> -> vector<27x256xf32>
    %c0_51 = arith.constant 0 : index
    %c0_52 = arith.constant 0 : index
    %212 = vector.load %arg12[%c0_51, %c0_52] : memref<1x256xf32, #tpu.memory_space<vmem>>, vector<1x256xf32>
    %213 = vector.broadcast %212 : vector<1x256xf32> to vector<27x256xf32>
    %214 = arith.mulf %211, %213 : vector<27x256xf32>
    %c0_53 = arith.constant 0 : index
    %c0_54 = arith.constant 0 : index
    %215 = vector.load %arg13[%c0_53, %c0_54] : memref<1x256xf32, #tpu.memory_space<vmem>>, vector<1x256xf32>
    %216 = vector.broadcast %215 : vector<1x256xf32> to vector<27x256xf32>
    %217 = arith.addf %214, %216 : vector<27x256xf32>
    %cst_55 = arith.constant 0.000000e+00 : f32
    %218 = vector.broadcast %cst_55 : f32 to vector<27x256xf32>
    %219 = arith.maximumf %217, %218 : vector<27x256xf32>
    %220 = tpu.iota {dimensions = array<i32: 0>} : vector<4x27xi32>
    %221 = tpu.iota {dimensions = array<i32: 1>} : vector<4x27xi32>
    %c6_i32 = arith.constant 6 : i32
    %222 = vector.broadcast %c6_i32 : i32 to vector<4x27xi32>
    %223 = arith.muli %220, %222 : vector<4x27xi32>
    %224 = arith.cmpi sge, %221, %223 : vector<4x27xi32>
    %c1_i32 = arith.constant 1 : i32
    %225 = vector.broadcast %c1_i32 : i32 to vector<4x27xi32>
    %226 = arith.addi %220, %225 : vector<4x27xi32>
    %c6_i32_56 = arith.constant 6 : i32
    %227 = vector.broadcast %c6_i32_56 : i32 to vector<4x27xi32>
    %228 = arith.muli %226, %227 : vector<4x27xi32>
    %229 = arith.cmpi slt, %221, %228 : vector<4x27xi32>
    %230 = arith.andi %224, %229 : vector<4x27xi1>
    %cst_57 = arith.constant 0.166666672 : f32
    %cst_58 = arith.constant 0.000000e+00 : f32
    %231 = vector.broadcast %cst_57 : f32 to vector<4x27xf32>
    %232 = vector.broadcast %cst_58 : f32 to vector<4x27xf32>
    %233 = arith.select %230, %231, %232 : vector<4x27xi1>, vector<4x27xf32>
    %cst_59 = arith.constant dense<0.000000e+00> : vector<4x256xf32>
    %234 = tpu.matmul %233, %219, %cst_59 {dimension_numbers = #tpu.dot_dimension_numbers<[1], [0], [0], [1], [0, 0, 1, 1], [], []>} : vector<4x27xf32>, vector<27x256xf32>, vector<4x256xf32> -> vector<4x256xf32>
    %c0_60 = arith.constant 0 : index
    %c0_61 = arith.constant 0 : index
    %c0_62 = arith.constant 0 : index
    %235 = vector.load %arg14[%c0_60, %c0_61, %c0_62] : memref<1x4x256xf32, #tpu.memory_space<vmem>>, vector<1x4x256xf32>
    %236 = vector.shape_cast %235 : vector<1x4x256xf32> to vector<4x256xf32>
    %237 = vector.shape_cast %234 : vector<4x256xf32> to vector<1x4x256xf32>
    tpu.vector_store %arg14[%c0_60, %c0_61, %c0_62], %237 {strides = array<i32>} : memref<1x4x256xf32, #tpu.memory_space<vmem>>, vector<1x4x256xf32>,
    return
  }
  func.func @transform_0(%arg0: i32) -> (i32, i32, i32) {
    %c0_i32 = arith.constant 0 : i32
    %c0_i32_0 = arith.constant 0 : i32
    %c0_i32_1 = arith.constant 0 : i32
    return %arg0, %c0_i32, %c0_i32_0 : i32, i32, i32
  }
  func.func @transform_1(%arg0: i32) -> (i32, i32, i32) {
    %c0_i32 = arith.constant 0 : i32
    %c0_i32_0 = arith.constant 0 : i32
    %c0_i32_1 = arith.constant 0 : i32
    %c0_i32_2 = arith.constant 0 : i32
    return %c0_i32, %c0_i32_0, %c0_i32_1 : i32, i32, i32
  }
  func.func @transform_2(%arg0: i32) -> (i32, i32) {
    %c0_i32 = arith.constant 0 : i32
    %c0_i32_0 = arith.constant 0 : i32
    %c0_i32_1 = arith.constant 0 : i32
    return %c0_i32, %c0_i32_0 : i32, i32
  }
  func.func @transform_3(%arg0: i32) -> (i32, i32) {
    %c0_i32 = arith.constant 0 : i32
    %c0_i32_0 = arith.constant 0 : i32
    %c0_i32_1 = arith.constant 0 : i32
    return %c0_i32, %c0_i32_0 : i32, i32
  }
  func.func @transform_4(%arg0: i32) -> (i32, i32, i32) {
    %c0_i32 = arith.constant 0 : i32
    %c0_i32_0 = arith.constant 0 : i32
    %c0_i32_1 = arith.constant 0 : i32
    %c0_i32_2 = arith.constant 0 : i32
    return %c0_i32, %c0_i32_0, %c0_i32_1 : i32, i32, i32
  }
  func.func @transform_5(%arg0: i32) -> (i32, i32) {
    %c0_i32 = arith.constant 0 : i32
    %c0_i32_0 = arith.constant 0 : i32
    %c0_i32_1 = arith.constant 0 : i32
    return %c0_i32, %c0_i32_0 : i32, i32
  }
  func.func @transform_6(%arg0: i32) -> (i32, i32) {
    %c0_i32 = arith.constant 0 : i32
    %c0_i32_0 = arith.constant 0 : i32
    %c0_i32_1 = arith.constant 0 : i32
    return %c0_i32, %c0_i32_0 : i32, i32
  }
  func.func @transform_7(%arg0: i32) -> (i32, i32, i32) {
    %c0_i32 = arith.constant 0 : i32
    %c0_i32_0 = arith.constant 0 : i32
    %c0_i32_1 = arith.constant 0 : i32
    %c0_i32_2 = arith.constant 0 : i32
    return %c0_i32, %c0_i32_0, %c0_i32_1 : i32, i32, i32
  }
  func.func @transform_8(%arg0: i32) -> (i32, i32) {
    %c0_i32 = arith.constant 0 : i32
    %c0_i32_0 = arith.constant 0 : i32
    %c0_i32_1 = arith.constant 0 : i32
    return %c0_i32, %c0_i32_0 : i32, i32
  }
  func.func @transform_9(%arg0: i32) -> (i32, i32) {
    %c0_i32 = arith.constant 0 : i32
    %c0_i32_0 = arith.constant 0 : i32
    %c0_i32_1 = arith.constant 0 : i32
    return %c0_i32, %c0_i32_0 : i32, i32
  }
  func.func @transform_10(%arg0: i32) -> (i32, i32) {
    %c0_i32 = arith.constant 0 : i32
    %c0_i32_0 = arith.constant 0 : i32
    %c0_i32_1 = arith.constant 0 : i32
    return %c0_i32, %c0_i32_0 : i32, i32
  }
  func.func @transform_11(%arg0: i32) -> (i32, i32) {
    %c0_i32 = arith.constant 0 : i32
    %c0_i32_0 = arith.constant 0 : i32
    %c0_i32_1 = arith.constant 0 : i32
    return %c0_i32, %c0_i32_0 : i32, i32
  }
  func.func @transform_12(%arg0: i32) -> (i32, i32) {
    %c0_i32 = arith.constant 0 : i32
    %c0_i32_0 = arith.constant 0 : i32
    %c0_i32_1 = arith.constant 0 : i32
    return %c0_i32, %c0_i32_0 : i32, i32
  }
  func.func @transform_13(%arg0: i32) -> (i32, i32, i32) {
    %c0_i32 = arith.constant 0 : i32
    %c0_i32_0 = arith.constant 0 : i32
    %c0_i32_1 = arith.constant 0 : i32
    return %arg0, %c0_i32, %c0_i32_0 : i32, i32, i32
  }
}

</mosaic_0001>

<bundles_post_ra>
// kernel: cnn1d_encoder_forward.1
= control target key start
LH: loop header
LB: loop body
LE: loop exit
PB: predicated region body
PF: predicated region fallthrough
CT: control target
= control target key end

     0   :  { %s6404_s0 = inlined_call_operand.vmem [shape: f32[2,64,4], index: 0, kind: input, shape index: {}]   ;;  %s6405_s1 = inlined_call_operand.vmem [shape: f32[5,4,128], index: 1, kind: input, shape index: {}]   ;;  %s6406_s2 = inlined_call_operand.vmem [shape: f32[1,128], index: 2, kind: input, shape index: {}]   ;;  %s6407_s3 = inlined_call_operand.vmem [shape: f32[1,128], index: 3, kind: input, shape index: {}]   ;;  %s6408_s4 = inlined_call_operand.hbm [shape: bf16[3,128,256], index: 4, kind: input, shape index: {}]   ;;  %s6409_s5 = inlined_call_operand.vmem [shape: f32[1,256], index: 5, kind: input, shape index: {}]   ;;  %s6410_s6 = inlined_call_operand.vmem [shape: f32[1,256], index: 6, kind: input, shape index: {}]   ;;  %s6411_s7 = inlined_call_operand.hbm [shape: bf16[3,256,256], index: 7, kind: input, shape index: {}]   ;;  %s6412_s8 = inlined_call_operand.vmem [shape: f32[1,256], index: 8, kind: input, shape index: {}]   ;;  %s6413_s9 = inlined_call_operand.vmem [shape: f32[1,256], index: 9, kind: input, shape index: {}]   ;;  %s6414_s10 = inlined_call_operand.hbm [shape: bf16[256,256], index: 10, kind: input, shape index: {}]   ;;  %s6415_s11 = inlined_call_operand.vmem [shape: f32[1,256], index: 11, kind: input, shape index: {}]   ;;  %s6416_s12 = inlined_call_operand.vmem [shape: f32[1,256], index: 12, kind: input, shape index: {}]   ;;  %s6417_s13 = inlined_call_operand.hbm [shape: f32[2,4,256], index: 13, kind: output, shape index: {}]  }
   0x1   :  { %6496 = sst [smem:[#allocation76_spill]] %s6408_s4 }
   0x2   :  { %6497 = sst [smem:[#allocation77_spill]] %s6411_s7 }
   0x3   :  { %18 = vsyncpa [#allocation4], 0 }
   0x4   :  { %19 = vsyncpa [#allocation7], 0 }
   0x5   :  { %20 = vsyncpa [#allocation5], 0 }
   0x6   :  { %22 = vsyncpa [#allocation5 + $0x1], 0  ;;  %s4654_s25 = smov 0   ;;  %s4656_s26 = smov 0  }
   0x7   :  { %s4658_s27 = smov 0   ;;  %s4660_s28 = smov 0  }
   0x8 LB: > { %6498 = sst [smem:[#allocation13_spill]] %s4560_s25  ;;  %s4675_s29 = sadd.s32 4294967295, %s4572_s28   ;;  %s4572_s28 = sphi %s4660_s28, %s6812_s28   ;;  %s4568_s27 = sphi %s4658_s27, %s6814_s27   ;;  %s4564_s26 = sphi %s4656_s26, %s6816_s26   ;;  %s4560_s25 = sphi %s4654_s25, %s6815_s25  }
   0x9   : > { %6499 = sst [smem:[#allocation14_spill]] %s4568_s27  ;;  %s3389_s30 = sadd.s32 4294967294, %s4572_s28  }
   0xa   : > { %s4679_s14 = sadd.s32 1, %s4572_s28   ;;  %s313_s15 = sadd.s32 1, %s4568_s27 }
   0xb   : > { %6500 = sst [smem:[#allocation15_spill]] %s4679_s14  ;;  %s310_s16 = ssub.s32 %s4572_s28, %s4679_s14 }
   0xc   : > { %p323_p0 = scmp.ne.s32.totalorder %s4568_s27, %s4564_s26  ;;  %p311_p1 = scmp.eq.s32.totalorder %s310_s16, 0 }
   0xd   : > { %p324_p2 = scmp.eq.s32.totalorder %s4675_s29, 1  ;;  %p329_p3 = scmp.ne.s32.totalorder %s4564_s26, %s4560_s25 }
   0xe   : > { %p330_p4 = scmp.eq.s32.totalorder %s3389_s30, 1  ;;  %p3390_p7 = scmp.ge.s32.totalorder %s4572_s28, 1 }
   0xf   : > { %s4690_s17 = scalar_select %p311_p1, %s4568_s27, %s313_s15  }
  0x10   : > { %p4692_p5 = por %p324_p2, %p323_p0  ;;  %p4696_p6 = por %p330_p4, %p329_p3 }
  0x11   : > { %6501 = sst [smem:[#allocation16_spill]] %s4690_s17  ;;  %p337_p8 = scmp.lt.s32.totalorder %s4572_s28, 3 }
  0x12   : > { %s6503_s19 = scalar_select %p4696_p6, 1, 0 }
  0x13   : > { %p4337_p9 = scmp.eq.s32.totalorder %s4675_s29, 0  ;;  %p4703_p10 = pnand %p3390_p7, %p337_p8 }
  0x14   : > { %6504 = sst [smem:[#allocation17_spill]] %s6503_s19  ;;  %s4574_s17 = smov [#allocation6]  }
  0x15   : > { %s6506_s7 = sld [smem:[#allocation77_spill]]  ;;  %p4323_p11 = pneg %p4703_p10 }
  0x16   : > { %s6507_s4 = sld [smem:[#allocation76_spill]]  ;;  %s379_s27 = sshll.u32 %s4574_s17, 4  ;;  %s380_s27 = int_to_ptr.vmem [resolvable:$true] %s379_s27 }
  0x17   : > { %p4717_p12 = pnand %p4337_p9, %p4323_p11  ;;  %s4575_s21 = smov 128  }
  0x18   : > { %s4576_s22 = smov 8   ;;  %s4578_s19 = smov [#allocation8]  }
  0x19   : > { %s399_s25 = sshll.u32 %s4578_s19, 4  ;;  %s400_s25 = int_to_ptr.vmem [resolvable:$true] %s399_s25 }
  0x1b   : > { %s377_s23 = sshll.u32 %s6506_s7, 4  ;;  %s4577_s7 = smov [#allocation3]   ;;  %s378_s23 = int_to_ptr.hbm [resolvable:$true] %s377_s23 }
  0x1c   : > { %s357_s15 = sshll.u32 %s6507_s4, 4  ;;  %s359_s14 = sshll.u32 %s4577_s7, 4  ;;  %s358_s15 = int_to_ptr.hbm [resolvable:$true] %s357_s15  ;;  %s360_s14 = int_to_ptr.vmem [resolvable:$true] %s359_s14 }
  0x1d   : > { %4329 = dma.hbm_to_vmem [thread:$0]  (!%p4717_p12), %s378_s23, 12288, %s380_s27, [#allocation7], %s4575_s21, %s4575_s21, %s4576_s22  }
  0x1e   : > { %s397_s4 = sshll.u32 %s6414_s10, 4  ;;  %429 = sbr.rel (%p4703_p10) target bundleno = 1076 (0x434), region = 72  ;;  %s398_s4 = int_to_ptr.hbm [resolvable:$true] %s397_s4 }
  0x1f   : > { %4326 = dma.hbm_to_vmem [thread:$0]  (!%p4717_p12), %s358_s15, 6144, %s360_s14, [#allocation4], %s4575_s21, %s4575_s21, %s4576_s22  }
  0x20   : > { %4332 = dma.hbm_to_vmem [thread:$0]  (!%p4717_p12), %s398_s4, 4096, %s400_s25, [#allocation7], %s4575_s21, %s4575_s21, %s4576_s22  }
  0x23   : > { %4547 = dma.done.wait (%p4337_p9), [#allocation4], 6144  }
  0x24   : > { %4549 = vsyncadd (%p4337_p9), [#allocation4], 4294961152 }
  0x25   : > { %4551 = dma.done.wait (%p4337_p9), [#allocation7], 16384  }
  0x26   : > { %4553 = vsyncadd (%p4337_p9), [#allocation7], 4294950912  ;;  %p484_p13 = scmp.lt.s32.totalorder %s4675_s29, 1  ;;  %v4579_v0 = vmov 1   ;;  %v4580_v1 = vmov 0   ;;  %v4581_v6 = vmov 3  }
  0x27   : > { %4388 = vset.pattern.permute.xlu0 %v4579_v0  ;;  %4387 = vset.pattern.permute.xlu2 %v4579_v0  ;;  %v4582_v7 = vmov 2   ;;  %v497_v14 = vld [vmem:[%s6405_s1] sm:$0xf]  ;;  %v498_v15 = vld [vmem:[%s6405_s1 + $0x4] sm:$0xf]  ;;  %vm723_vm0 = vcmask 1046528  }
  0x28   : > { %4386 = vset.pattern.permute.xlu1 %v4580_v1  ;;  %s485_s4 = scalar_select %p484_p13, %s4675_s29, 1  ;;  %v499_v16 = vld [vmem:[%s6405_s1 + $0x8] sm:$0xf]  ;;  %v500_v18 = vld [vmem:[%s6405_s1 + $0xc] sm:$0xf]  ;;  %v4772_v20 = vperm.slane %v498_v15, 1 }
  0x29   : > { %v501_v19 = vld [vmem:[%s6405_s1 + $0x10] sm:$0xf]  ;;  %v4774_v21 = vperm.slane %v499_v16, 1  ;;  %v4776_v22 = vperm.slane %v500_v18, 1  ;;  %v4780_v24 = vperm.slane %v497_v14, 1  ;;  %v4782_v25 = vperm.slane %v497_v14, 2 }
  0x2a   : > { %s4115_s7 = sshll.u32 %s485_s4, 6  ;;  %6509 = vst [vmem:[#allocation18_spill] sm:$0xff] %v4772_v20  ;;  %v4778_v23 = vperm.slane %v501_v19, 1  ;;  %v4784_v26 = vperm.slane %v498_v15, 2  ;;  %vm916_vm1 = vcmask 1045504   ;;  %vm1109_vm2 = vcmask 1044480  }
  0x2b   : > { %s4745_s14 = scalar_lea.vmem %s6404_s0, %s4115_s7  ;;  %6510 = vst [vmem:[#allocation19_spill] sm:$0xff] %v4774_v21  ;;  %v4791_v30 = vperm.slane %v499_v16, 2  ;;  %vm1302_vm3 = vcmask 1043456   ;;  %v4797_v34 = vperm.slane %v500_v18, 2  ;;  %v4799_v35 = vperm.slane %v501_v19, 2  ;;  %s481_s7 = sand.u32 1, %s4564_s26  }
  0x2c   : > { %v491_v2 = vld [vmem:[%s4745_s14 + $0x10] sm:$0xff]  ;;  %v489_v3 = vld [vmem:[%s4745_s14] sm:$0xff]  ;;  %v492_v4 = vld [vmem:[%s4745_s14 + $0x18] sm:$0xff]  ;;  %6511 = vst [vmem:[#allocation20_spill] sm:$0xff] %v4776_v22  ;;  %v4801_v37 = vperm.slane %v497_v14, 0  ;;  %v4803_v38 = vperm.slane %v498_v15, 0 }
  0x2d   : > { %568 = vperm.xlu0 %4388, %v491_v2   ;;  %514 = vperm.xlu1 %4386, %v491_v2   ;;  %v490_v5 = vld [vmem:[%s4745_s14 + $0x8] sm:$0xff]  ;;  %v495_v8 = vld [vmem:[%s4745_s14 + $0x30] sm:$0xff]  ;;  %v493_v9 = vld [vmem:[%s4745_s14 + $0x20] sm:$0xff]  ;;  %6512 = vst [vmem:[#allocation21_spill] sm:$0xff] %v4778_v23  ;;  %v4805_v39 = vperm.slane %v499_v16, 0  ;;  %v4807_v40 = vperm.slane %v500_v18, 0 }
  0x2e   : > { %560 = vperm.xlu2 %4387, %v489_v3   ;;  %v494_v10 = vld [vmem:[%s4745_s14 + $0x28] sm:$0xff]  ;;  %v496_v11 = vld [vmem:[%s4745_s14 + $0x38] sm:$0xff]  ;;  %6513 = vst [vmem:[#allocation22_spill] sm:$0xff] %v4780_v24  ;;  %v4814_v44 = vperm.slane %v501_v19, 0  ;;  %v4820_v52 = vperm.slane %v497_v14, 3  ;;  %v4822_v53 = vperm.slane %v498_v15, 3 }
  0x2f   : > { %6514 = vst [vmem:[#allocation23_spill] sm:$0xff] %v4784_v26  ;;  %v4827_v55 = vperm.slane %v499_v16, 3  ;;  %v4829_v56 = vperm.slane %v500_v18, 3  ;;  %v4831_v57 = vperm.slane %v501_v19, 3  ;;  %vm1823_vm4 = vsmask.f32 7424 }
  0x30   : > { %6515 = vst [vmem:[#allocation24_spill] sm:$0xff] %v4791_v30  ;;  %vm3229_vm5 = vcmask 1042432   ;;  %vm3225_vm9 = vcmask 220160   ;;  %s3399_s25 = sshll.u32 %s481_s7, 3  ;;  %s4292_s27 = sshll.u32 %s4675_s29, 3 }
  0x31   : > { %6516 = vst [vmem:[#allocation25_spill] sm:$0xff] %v4803_v38  ;;  %s3294_s19 = scalar_lea.hbm %s6417_s13, %s4292_s27  ;;  %s483_s20 = scalar_lea.vmem [#allocation9], %s3399_s25 }
  0x32   : > { %6517 = vst [vmem:[#allocation26_spill] sm:$0xff] %v4805_v39  ;;  %s3296_s23 = sshll.u32 %s483_s20, 4  ;;  %s3298_s15 = sshll.u32 %s3294_s19, 4  ;;  %s3297_s23 = int_to_ptr.vmem [resolvable:$true] %s3296_s23  ;;  %s3299_s15 = int_to_ptr.hbm [resolvable:$true] %s3298_s15 }
  0x33   : > { %6518 = vst [vmem:[#allocation27_spill] sm:$0xff] %v4807_v40  ;;  %s3283_s16 = scalar_lea.sflag [#allocation5], %s481_s7  ;;  %s4516_s21 = sshra.s32 %s3299_s15, 4  ;;  %s4517_s21 = int_to_ptr.hbm [resolvable:$true] %s4516_s21 }
  0x34   : > { %6519 = vst [vmem:[#allocation28_spill] sm:$0xff] %v4814_v44  ;;  %s4518_s29 = scalar_lea.hbm %s4517_s21, 8  ;;  %s4522_s30 = scalar_lea.hbm %s6417_s13, 16 }
  0x35   : > { %4395 = vset.pattern.permute.xlu0 %v4581_v6  ;;  %519 = vperm.xlu1 %4386, %v492_v4   ;;  %6520 = vst [vmem:[#allocation29_spill] sm:$0xff] %v4831_v57  ;;  %p4519_p0 = scmp.ne.s32.totalorder %s4517_s21, %s4518_s29  ;;  %p4523_p3 = scmp.lt.s32.totalorder %s4517_s21, %s6417_s13 }
  0x36   : > { %564 = vperm.xlu2 %4387, %v490_v5   ;;  %670 = vperm.xlu0 %4395, %v492_v4   ;;  %p4524_p4 = scmp.lt.s32.totalorder %s4522_s30, %s4518_s29 }
  0x37   : > { %p4520_p1 = pnand %p4519_p0, %p4692_p5 }
  0x38   : > { %p4525_p7 = por %p4524_p4, %p4523_p3 }
  0x39   : > { %p4521_p2 = pneg %p4520_p1 }
  0x3b   : > { %p4526_p8 = pnand %p4525_p7, %p4521_p2 }
  0x3d   : > { %4389 = vset.pattern.permute.xlu1 %v4579_v0 }
  0x3e   : > { %4390 = vset.pattern.permute.xlu2 %v4582_v7  ;;  %4396 = vset.pattern.permute.xlu0 %v4580_v1 }
  0x3f   : > { %572 = vperm.xlu1 %4389, %v492_v4   ;;  %609 = vperm.xlu2 %4390, %v489_v3  }
  0x40   : > { %504 = vperm.xlu0 %4396, %v489_v3  }
  0x47   : > { %4391 = vset.pattern.permute.xlu1 %v4582_v7  ;;  %617 = vperm.xlu2 %4390, %v491_v2  }
  0x48   : > { %613 = vperm.xlu1 %4391, %v490_v5   ;;  %509 = vperm.xlu0 %4396, %v490_v5  }
  0x4f   : > { %4393 = vset.pattern.permute.xlu2 %v4581_v6 }
  0x50   : > { %4392 = vset.pattern.permute.xlu1 %v4580_v1  ;;  %534 = vperm.xlu0 %4396, %v495_v8  }
  0x51   : > { %658 = vperm.xlu2 %4393, %v489_v3   ;;  %524 = vperm.xlu1 %4392, %v493_v9  }
  0x58   : > { %4401 = vset.pattern.permute.xlu0 %v4582_v7 }
  0x59   : > { %666 = vperm.xlu2 %4393, %v491_v2   ;;  %4394 = vset.pattern.permute.xlu1 %v4581_v6 }
  0x5a   : > { %621 = vperm.xlu0 %4401, %v492_v4   ;;  %662 = vperm.xlu1 %4394, %v490_v5  }
  0x61   : > { %4398 = vset.pattern.permute.xlu2 %v4582_v7 }
  0x62   : > { %625 = vperm.xlu2 %4398, %v493_v9   ;;  %4397 = vset.pattern.permute.xlu1 %v4579_v0 }
  0x63   : > { %576 = vperm.xlu1 %4397, %v493_v9   ;;  %629 = vperm.xlu0 %4401, %v494_v10  }
  0x6a   : > { %4400 = vset.pattern.permute.xlu2 %v4580_v1 }
  0x6b   : > { %529 = vperm.xlu2 %4400, %v494_v10   ;;  %4399 = vset.pattern.permute.xlu1 %v4581_v6 }
  0x6c   : > { %674 = vperm.xlu1 %4399, %v493_v9   ;;  %4409 = vset.pattern.permute.xlu0 %v4581_v6 }
  0x6d   : > { %686 = vperm.xlu0 %4409, %v496_v11  }
  0x73   : > { %4403 = vset.pattern.permute.xlu2 %v4579_v0 }
  0x74   : > { %4402 = vset.pattern.permute.xlu1 %v4580_v1  ;;  %580 = vperm.xlu2 %4403, %v494_v10  }
  0x75   : > { %539 = vperm.xlu1 %4402, %v496_v11  }
  0x7c   : > { %588 = vperm.xlu2 %4403, %v496_v11  }
  0x7d   : > { %4404 = vset.pattern.permute.xlu1 %v4579_v0 }
  0x7e   : > { %584 = vperm.xlu1 %4404, %v495_v8  }
  0x84   : > { %4406 = vset.pattern.permute.xlu2 %v4582_v7 }
  0x85   : > { %637 = vperm.xlu2 %4406, %v496_v11  }
  0x86   : > { %4405 = vset.pattern.permute.xlu1 %v4582_v7 }
  0x87   : > { %633 = vperm.xlu1 %4405, %v495_v8  }
  0x88   : > { %v561_v12 = vpop.permute.xlu2 %560 }
  0x89   : > { %v756_v27 = vmul.f32 %v4772_v20, %v561_v12  ;;  %v949_v28 = vmul.f32 %v4774_v21, %v561_v12  ;;  %v1142_v32 = vmul.f32 %v4776_v22, %v561_v12  ;;  %v1335_v33 = vmul.f32 %v4778_v23, %v561_v12 }
  0x8a   : > { %v4810_v41 = vmul.f32 %v4780_v24, %v561_v12 }
  0x8b   : > { %v772_v45 = vrot.slane %v756_v27, 1  ;;  %v965_v46 = vrot.slane %v949_v28, 2  ;;  %v1158_v49 = vrot.slane %v1142_v32, 3  ;;  %v1351_v50 = vrot.slane %v1335_v33, 4 }
  0x8d   : > { %4408 = vset.pattern.permute.xlu2 %v4581_v6 }
  0x8e   : > { %682 = vperm.xlu2 %4408, %v495_v8  }
  0x8f   : > { %4407 = vset.pattern.permute.xlu1 %v4581_v6 }
  0x90   : > { %678 = vperm.xlu1 %4407, %v494_v10   ;;  %v565_v13 = vpop.permute.xlu2 %564 }
  0x91   : > { %v4789_v29 = vmul.f32 %v4772_v20, %v565_v13  ;;  %v950_v42 = vmul.f32 %v4774_v21, %v565_v13  ;;  %v1143_v43 = vmul.f32 %v4776_v22, %v565_v13  ;;  %v4818_v48 = vmul.f32 %v4778_v23, %v565_v13 }
  0x92   : > { %v4825_v54 = vmul.f32 %v4780_v24, %v565_v13 }
  0x93   : > { %v773_v47 = vrot.slane %v4789_v29, 1  ;;  %v966_v58 = vrot.slane %v950_v42, 2  ;;  %v1159_v59 = vrot.slane %v1143_v43, 3  ;;  %v1352_v63 = vrot.slane %v4818_v48, 4 }
  0x95   : > { %v4840_v62 = vsel %vm723_vm0, %v772_v45, %v773_v47  ;;  %v4877_v12 = vsel %vm916_vm1, %v965_v46, %v966_v58  ;;  %v4880_v13 = vsel %vm1109_vm2, %v1158_v49, %v1159_v59  ;;  %v4885_v16 = vsel %vm1302_vm3, %v1351_v50, %v1352_v63 }
  0x96   : > { %6521 = vst [vmem:[#allocation30_spill] sm:$0xff] %v4840_v62 }
  0x97   : > { %6523 = vst [vmem:[#allocation32_spill] sm:$0xff] %v4877_v12 }
  0x98   : > { %6524 = vst [vmem:[#allocation33_spill] sm:$0xff] %v4880_v13 }
  0x99   : > { %v4764_v17 = vpop.permute.xlu2 %609  ;;  %6525 = vst [vmem:[#allocation34_spill] sm:$0xff] %v4885_v16 }
  0x9a   : > { %v4845_v0 = vmul.f32 %v4784_v26, %v4764_v17  ;;  %v4849_v1 = vmul.f32 %v4791_v30, %v4764_v17  ;;  %v4853_v2 = vmul.f32 %v4797_v34, %v4764_v17  ;;  %v4857_v3 = vmul.f32 %v4799_v35, %v4764_v17 }
  0x9b   : > { %v4889_v18 = vmul.f32 %v4782_v25, %v4764_v17 }
  0x9f   : > { %v4793_v31 = vpop.permute.xlu1 %514  ;;  %v569_v36 = vpop.permute.xlu0 %568 }
  0xa0   : > { %v4834_v60 = vmul.f32 %v4772_v20, %v569_v36  ;;  %v4837_v61 = vmul.f32 %v4774_v21, %v569_v36  ;;  %v594_v4 = vmul.f32 %v4780_v24, %v569_v36  ;;  %v4861_v5 = vmul.f32 %v4776_v22, %v569_v36 }
  0xa1   : > { %v618_v51 = vpop.permute.xlu2 %617  ;;  %v4864_v8 = vmul.f32 %v4778_v23, %v569_v36  ;;  %v545_v9 = vmul.f32 %v4801_v37, %v4793_v31  ;;  %v4870_v10 = vmul.f32 %v4803_v38, %v4793_v31  ;;  %v4874_v11 = vmul.f32 %v4805_v39, %v4793_v31 }
  0xa2   : > { %v6424_v14 = vrot.slane %v4834_v60, 1  ;;  %v6423_v15 = vrot.slane %v4837_v61, 2  ;;  %v6425_v32 = vrot.slane %v4861_v5, 3  ;;  %v4898_v33 = vmul.f32 %v4807_v40, %v4793_v31 }
  0xa3   : > { %6522 = vst [vmem:[#allocation31_spill] sm:$0xff] %v4874_v11  ;;  %v6426_v36 = vrot.slane %v4864_v8, 4  ;;  %v602_v42 = vadd.f32 %v594_v4, %v545_v9  ;;  %v4915_v48 = vmul.f32 %v4814_v44, %v4793_v31  ;;  %v643_v4 = vmul.f32 %v4782_v25, %v618_v51 }
  0xa4   : > { %6526 = vst [vmem:[#allocation35_spill] sm:$0xff] %v4898_v33  ;;  %v4906_v45 = vsel %vm723_vm0, %v773_v47, %v6424_v14  ;;  %v4911_v46 = vsel %vm916_vm1, %v966_v58, %v6423_v15  ;;  %v4922_v9 = vmul.f32 %v4784_v26, %v618_v51  ;;  %v4933_v31 = vsel %vm1109_vm2, %v1159_v59, %v6425_v32 }
  0xa5   : > { %6527 = vst [vmem:[#allocation36_spill] sm:$0xff] %v4906_v45  ;;  %v4936_v58 = vmul.f32 %v4791_v30, %v618_v51  ;;  %v4939_v28 = vmul.f32 %v4797_v34, %v618_v51  ;;  %v4942_v27 = vmul.f32 %v4799_v35, %v618_v51  ;;  %v4957_v32 = vsel %vm1302_vm3, %v1352_v63, %v6426_v36 }
  0xa6   : > { %6528 = vst [vmem:[#allocation37_spill] sm:$0xff] %v4911_v46  ;;  %v6541_v12 = vrot.slane %v4874_v11, 2 }
  0xa7   : > { %v520_v6 = vpop.permute.xlu1 %519  ;;  %6529 = vst [vmem:[#allocation38_spill] sm:$0xff] %v4915_v48 }
  0xa8   : > { %v671_v7 = vpop.permute.xlu0 %670  ;;  %v4918_v49 = vmul.f32 %v4805_v39, %v520_v6  ;;  %v4925_v47 = vmul.f32 %v4807_v40, %v520_v6  ;;  %v4928_v29 = vmul.f32 %v4814_v44, %v520_v6  ;;  %6533 = vst [vmem:[#allocation42_spill] sm:$0xff] %v4933_v31  ;;  %v4946_v15 = vmul.f32 %v4803_v38, %v520_v6 }
  0xa9   : > { %6534 = vst [vmem:[#allocation43_spill] sm:$0xff] %v4942_v27  ;;  %v4949_v14 = vmul.f32 %v4822_v53, %v671_v7  ;;  %v4952_v59 = vmul.f32 %v4827_v55, %v671_v7  ;;  %v4962_v19 = vmul.f32 %v4829_v56, %v671_v7  ;;  %v651_v31 = vadd.f32 %v643_v4, %v602_v42 }
  0xaa   : > { %6530 = vst [vmem:[#allocation39_spill] sm:$0xff] %v4918_v49  ;;  %v6429_v46 = vrot.slane %v4925_v47, 3  ;;  %v546_v51 = vmul.f32 %v4801_v37, %v520_v6  ;;  %v4975_v45 = vmul.f32 %v4820_v52, %v671_v7  ;;  %v6540_v13 = vrot.slane %v4918_v49, 2 }
  0xab   : > { %v659_v50 = vpop.permute.xlu2 %658  ;;  %6531 = vst [vmem:[#allocation40_spill] sm:$0xff] %v4925_v47  ;;  %v4988_v6 = vmul.f32 %v4831_v57, %v671_v7  ;;  %v6545_v42 = vrot.slane %v4898_v33, 3 }
  0xac   : > { %6532 = vst [vmem:[#allocation41_spill] sm:$0xff] %v4928_v29  ;;  %v4984_v63 = vsel %vm916_vm1, %v6541_v12, %v6540_v13  ;;  %v6548_v12 = vrot.slane %v4915_v48, 4  ;;  %v5008_v7 = vmul.f32 %v4822_v53, %v659_v50  ;;  %v5011_v17 = vmul.f32 %v4827_v55, %v659_v50 }
  0xad   : > { %6535 = vst [vmem:[#allocation44_spill] sm:$0xff] %v4949_v14  ;;  %v4998_v4 = vsel %vm1109_vm2, %v6545_v42, %v6429_v46  ;;  %v6558_v48 = vrot.slane %v4870_v10, 1 }
  0xae   : > { %6536 = vst [vmem:[#allocation45_spill] sm:$0xff] %v4952_v59 }
  0xaf   : > { %6537 = vst [vmem:[#allocation46_spill] sm:$0xff] %v4957_v32  ;;  %v6547_v32 = vrot.slane %v4928_v29, 4 }
  0xb0   : > { %6538 = vst [vmem:[#allocation47_spill] sm:$0xff] %v4962_v19 }
  0xb1   : > { %v573_v43 = vpop.permute.xlu1 %572  ;;  %6539 = vst [vmem:[#allocation48_spill] sm:$0xff] %v4975_v45  ;;  %v5005_v13 = vsel %vm1302_vm3, %v6548_v12, %v6547_v32  ;;  %v5017_v45 = vmul.f32 %v4831_v57, %v659_v50 }
  0xb2   : > { %v4964_v16 = vpop.permute.xlu0 %504  ;;  %6542 = vst [vmem:[#allocation49_spill] sm:$0xff] %v4984_v63  ;;  %v4991_v36 = vmul.f32 %v4772_v20, %v573_v43  ;;  %v5014_v20 = vmul.f32 %v4829_v56, %v659_v50  ;;  %v5020_v42 = vmul.f32 %v4774_v21, %v573_v43  ;;  %v595_v12 = vmul.f32 %v4780_v24, %v573_v43 }
  0xb3   : > { %6543 = vst [vmem:[#allocation50_spill] sm:$0xff] %v4988_v6  ;;  %v543_v46 = vmul.f32 %v4801_v37, %v4964_v16  ;;  %v667_v32 = vpop.permute.xlu2 %666  ;;  %v5033_v29 = vmul.f32 %v4803_v38, %v4964_v16  ;;  %v690_v21 = vmul.f32 %v4820_v52, %v659_v50  ;;  %v5040_v63 = vmul.f32 %v4805_v39, %v4964_v16 }
  0xb4   : > { %6544 = vst [vmem:[#allocation51_spill] sm:$0xff] %v4991_v36  ;;  %v692_v47 = vmul.f32 %v4820_v52, %v667_v32  ;;  %v5066_v62 = vmul.f32 %v4822_v53, %v667_v32 }
  0xb5   : > { %6546 = vst [vmem:[#allocation52_spill] sm:$0xff] %v4998_v4  ;;  %v5029_v4 = vmul.f32 %v4778_v23, %v573_v43  ;;  %v6557_v23 = vrot.slane %v4946_v15, 1  ;;  %v600_v11 = vadd.f32 %v4810_v41, %v543_v46  ;;  %v917_v49 = vrot.slane %v5040_v63, 2 }
  0xb6   : > { %6549 = vst [vmem:[#allocation53_spill] sm:$0xff] %v5005_v13  ;;  %v5026_v13 = vmul.f32 %v4776_v22, %v573_v43  ;;  %v5054_v22 = vadd.f32 %v595_v12, %v546_v51  ;;  %v5069_v41 = vmul.f32 %v4827_v55, %v667_v32  ;;  %v700_v46 = vadd.f32 %v692_v47, %v651_v31 }
  0xb7   : > { %6550 = vst [vmem:[#allocation54_spill] sm:$0xff] %v5008_v7  ;;  %v730_v33 = vsel %vm723_vm0, %v6558_v48, %v6557_v23  ;;  %v724_v7 = vrot.slane %v5033_v29, 1  ;;  %v6559_v23 = vrot.slane %v4991_v36, 1  ;;  %v6560_v48 = vrot.slane %v4834_v60, 1 }
  0xb8   : > { %6551 = vst [vmem:[#allocation55_spill] sm:$0xff] %v5011_v17  ;;  %v6450_v43 = vrot.slane %v5026_v13, 3  ;;  %v5072_v51 = vmul.f32 %v4829_v56, %v667_v32  ;;  %v5075_v29 = vmul.f32 %v4831_v57, %v667_v32  ;;  %v6563_v60 = vrot.slane %v5020_v42, 2 }
  0xb9   : > { %6552 = vst [vmem:[#allocation56_spill] sm:$0xff] %v5014_v20  ;;  %v778_v50 = vsel %vm723_vm0, %v6560_v48, %v6559_v23  ;;  %v6564_v23 = vrot.slane %v4837_v61, 2  ;;  %v649_v48 = vadd.f32 %v4889_v18, %v600_v11  ;;  %v5088_v47 = vmul.f32 %v4807_v40, %v4964_v16 }
  0xba   : > { %6553 = vst [vmem:[#allocation57_spill] sm:$0xff] %v5017_v45  ;;  %v510_v24 = vpop.permute.xlu0 %509  ;;  %v614_v27 = vpop.permute.xlu1 %613  ;;  %v6565_v32 = vrot.slane %v4861_v5, 3  ;;  %v6566_v61 = vrot.slane %v5029_v4, 4  ;;  %v5109_v18 = vmul.f32 %v4814_v44, %v4964_v16 }
  0xbb   : > { %6554 = vst [vmem:[#allocation58_spill] sm:$0xff] %v5020_v42  ;;  %v805_v12 = vmul.f32 %v4784_v26, %v614_v27  ;;  %v5083_v63 = vsel %vm916_vm1, %v6564_v23, %v6563_v60  ;;  %v5091_v31 = vmul.f32 %v4803_v38, %v510_v24  ;;  %v6567_v60 = vrot.slane %v4864_v8, 4 }
  0xbc   : > { %6555 = vst [vmem:[#allocation59_spill] sm:$0xff] %v5026_v13  ;;  %v5098_v17 = vsel %vm1109_vm2, %v6565_v32, %v6450_v43  ;;  %v998_v23 = vmul.f32 %v4791_v30, %v614_v27  ;;  %v626_v42 = vpop.permute.xlu2 %625  ;;  %v1191_v32 = vmul.f32 %v4797_v34, %v614_v27  ;;  %v1384_v43 = vmul.f32 %v4799_v35, %v614_v27 }
  0xbd   : > { %6556 = vst [vmem:[#allocation60_spill] sm:$0xff] %v5029_v4  ;;  %v5105_v11 = vsel %vm1302_vm3, %v6567_v60, %v6566_v61  ;;  %v749_v8 = vadd.f32 %v730_v33, %v700_v46  ;;  %v6459_v61 = vrot.slane %v5072_v51, 3  ;;  %v821_v16 = vrot.slane %v805_v12, 1 }
  0xbe   : > { %6561 = vst [vmem:[#allocation61_spill] sm:$0xff] %v5072_v51  ;;  %v698_v45 = vadd.f32 %v690_v21, %v649_v48  ;;  %v1110_v36 = vrot.slane %v5088_v47, 3  ;;  %v901_v13 = vmul.f32 %v4805_v39, %v510_v24  ;;  %v1303_v5 = vrot.slane %v5109_v18, 4 }
  0xbf   : > { %6562 = vst [vmem:[#allocation62_spill] sm:$0xff] %v5075_v29  ;;  %v1014_v57 = vrot.slane %v998_v23, 2  ;;  %v544_v33 = vmul.f32 %v4801_v37, %v510_v24  ;;  %v6569_v46 = vrot.slane %v4949_v14, 1  ;;  %v6570_v60 = vrot.slane %v5066_v62, 1 }
  0xc0   : > { %6568 = vst [vmem:[#allocation63_spill] sm:$0xff] %v5105_v11  ;;  %v5125_v11 = vmul.f32 %v4782_v25, %v614_v27  ;;  %v6571_v12 = vrot.slane %v4952_v59, 2  ;;  %v6572_v48 = vrot.slane %v5069_v41, 2  ;;  %v1207_v18 = vrot.slane %v1191_v32, 3 }
  0xc1   : > { %v5133_v21 = vsel %vm723_vm0, %v6570_v60, %v6569_v46  ;;  %v1400_v27 = vrot.slane %v1384_v43, 4  ;;  %v797_v20 = vadd.f32 %v778_v50, %v749_v8  ;;  %v6573_v23 = vrot.slane %v4962_v19, 3 }
  0xc2   : > { %v5116_v4 = vpop.permute.xlu0 %534  ;;  %v5140_v47 = vsel %vm916_vm1, %v6572_v48, %v6571_v12  ;;  %v6574_v60 = vrot.slane %v4988_v6, 4  ;;  %v6575_v46 = vrot.slane %v5075_v29, 4  ;;  %v6577_v12 = vrot.slane %v4845_v0, 1 }
  0xc3   : > { %v5147_v14 = vsel %vm1109_vm2, %v6459_v61, %v6573_v23  ;;  %v6578_v43 = vrot.slane %v5091_v31, 1  ;;  %v918_v8 = vrot.slane %v901_v13, 2  ;;  %v1094_v48 = vmul.f32 %v4807_v40, %v510_v24 }
  0xc4   : > { %v5154_v59 = vsel %vm1302_vm3, %v6575_v46, %v6574_v60  ;;  %v5159_v32 = vsel %vm723_vm0, %v6577_v12, %v821_v16  ;;  %v1287_v23 = vmul.f32 %v4814_v44, %v510_v24  ;;  %v6579_v61 = vrot.slane %v4922_v9, 1 }
  0xc5   : > { %6576 = vst [vmem:[#allocation64_spill] sm:$0xff] %v5154_v59  ;;  %v726_v50 = vsel %vm723_vm0, %v724_v7, %v6578_v43  ;;  %v6580_v60 = vrot.slane %v4849_v1, 2  ;;  %v6581_v46 = vrot.slane %v4936_v58, 2  ;;  %v601_v13 = vadd.f32 %v4825_v54, %v544_v33  ;;  %v525_v7 = vpop.permute.xlu1 %524  ;;  %v6589_v54 = vld [vmem:[#allocation43_spill] sm:$0xff] }
  0xc6   : > { %v5169_v6 = vsel %vm723_vm0, %v821_v16, %v6579_v61  ;;  %v6582_v24 = vrot.slane %v4853_v2, 3  ;;  %v6584_v61 = vrot.slane %v4939_v28, 3  ;;  %v6586_v16 = vrot.slane %v4857_v3, 4  ;;  %v5213_v3 = vpop.permute.xlu2 %529 }
  0xc7   : > { %v5174_v0 = vsel %vm916_vm1, %v6580_v60, %v1014_v57  ;;  %v5179_v12 = vsel %vm916_vm1, %v1014_v57, %v6581_v46  ;;  %v5199_v57 = vmul.f32 %v4807_v40, %v5116_v4  ;;  %v6590_v33 = vrot.slane %v6589_v54, 4 }
  0xc8   : > { %v5185_v43 = vsel %vm1109_vm2, %v6582_v24, %v1207_v18  ;;  %v5190_v1 = vsel %vm1109_vm2, %v1207_v18, %v6584_v61  ;;  %v5195_v60 = vsel %vm1302_vm3, %v6586_v16, %v1400_v27  ;;  %v747_v46 = vadd.f32 %v726_v50, %v698_v45  ;;  %v6593_v61 = vld [vmem:[#allocation31_spill] sm:$0xff] }
  0xc9   : > { %6583 = vst [vmem:[#allocation65_spill] sm:$0xff] %v5185_v43  ;;  %v5204_v2 = vsel %vm1302_vm3, %v1400_v27, %v6590_v33  ;;  %v5207_v24 = vsel %vm916_vm1, %v917_v49, %v918_v8  ;;  %v5211_v18 = vmul.f32 %v4814_v44, %v5116_v4  ;;  %v6594_v16 = vrot.slane %v6593_v61, 2 }
  0xca   : > { %6585 = vst [vmem:[#allocation66_spill] sm:$0xff] %v5190_v1  ;;  %v1304_v29 = vrot.slane %v1287_v23, 4  ;;  %v5221_v27 = vmul.f32 %v4782_v25, %v626_v42  ;;  %v5226_v49 = vmul.f32 %v4784_v26, %v626_v42  ;;  %v5229_v50 = vmul.f32 %v4791_v30, %v626_v42 }
  0xcb   : > { %6587 = vst [vmem:[#allocation67_spill] sm:$0xff] %v5195_v60  ;;  %v5218_v19 = vsel %vm916_vm1, %v918_v8, %v6594_v16  ;;  %v1111_v60 = vrot.slane %v1094_v48, 3  ;;  %v5232_v33 = vmul.f32 %v4797_v34, %v626_v42  ;;  %v5235_v61 = vmul.f32 %v4799_v35, %v626_v42  ;;  %v6599_v48 = vld [vmem:[#allocation35_spill] sm:$0xff] }
  0xcc   : > { %6588 = vst [vmem:[#allocation68_spill] sm:$0xff] %v5199_v57  ;;  %v5223_v45 = vpop.permute.xlu0 %621  ;;  %v5238_v8 = vmul.f32 %v4801_v37, %v525_v7  ;;  %v5243_v23 = vmul.f32 %v4807_v40, %v5213_v3  ;;  %v5247_v16 = vmul.f32 %v4814_v44, %v5213_v3  ;;  %v5264_v43 = vsel %vm1302_vm3, %v1303_v5, %v1304_v29 }
  0xcd   : > { %6591 = vst [vmem:[#allocation69_spill] sm:$0xff] %v5204_v2  ;;  %v5251_v1 = vsel %vm1109_vm2, %v1110_v36, %v1111_v60  ;;  %v5256_v59 = vmul.f32 %v4784_v26, %v5223_v45  ;;  %v5267_v54 = vmul.f32 %v4803_v38, %v525_v7  ;;  %v5276_v26 = vmul.f32 %v4805_v39, %v525_v7 }
  0xce   : > { %6592 = vst [vmem:[#allocation70_spill] sm:$0xff] %v5211_v18  ;;  %v6468_v36 = vrot.slane %v5243_v23, 3 }
  0xcf   : > { %6595 = vst [vmem:[#allocation31_spill] sm:$0xff] %v5221_v27  ;;  %v6598_v27 = vld [vmem:[#allocation30_spill] sm:$0xff] }
  0xd0   : > { %6596 = vst [vmem:[#allocation71_spill] sm:$0xff] %v5235_v61  ;;  %v795_v2 = vadd.f32 %v6598_v27, %v747_v46  ;;  %v6603_v46 = vld [vmem:[#allocation38_spill] sm:$0xff] }
  0xd1   : > { %6597 = vst [vmem:[#allocation72_spill] sm:$0xff] %v5238_v8  ;;  %v6600_v8 = vrot.slane %v6599_v48, 3  ;;  %v6604_v27 = vrot.slane %v6603_v46, 4  ;;  %v6470_v48 = vrot.slane %v5247_v16, 4  ;;  %v6605_v46 = vrot.slane %v5199_v57, 3 }
  0xd2   : > { %6601 = vst [vmem:[#allocation30_spill] sm:$0xff] %v5264_v43  ;;  %v5285_v43 = vmul.f32 %v4814_v44, %v525_v7  ;;  %v6611_v57 = vrot.slane %v4922_v9, 1 }
  0xd3   : > { %v5261_v51 = vsel %vm1109_vm2, %v1111_v60, %v6600_v8  ;;  %6602 = vst [vmem:[#allocation35_spill] sm:$0xff] %v5267_v54  ;;  %v5273_v42 = vsel %vm1302_vm3, %v1304_v29, %v6604_v27  ;;  %v5282_v8 = vmul.f32 %v4807_v40, %v525_v7  ;;  %v5292_v29 = vsel %vm1109_vm2, %v6468_v36, %v6605_v46  ;;  %v5314_v36 = vpop.permute.xlu1 %662 }
  0xd4   : > { %6606 = vst [vmem:[#allocation38_spill] sm:$0xff] %v5292_v29  ;;  %v5296_v27 = vmul.f32 %v4803_v38, %v5116_v4  ;;  %v6608_v60 = vrot.slane %v5211_v18, 4  ;;  %v6610_v7 = vrot.slane %v5256_v59, 1  ;;  %v5312_v46 = vmul.f32 %v4791_v30, %v5223_v45 }
  0xd5   : > { %v1117_v40 = vrot.slane %v5282_v8, 3  ;;  %v650_v18 = vadd.f32 %v5125_v11, %v601_v13  ;;  %v691_v30 = vmul.f32 %v4820_v52, %v5314_v36  ;;  %v6614_v8 = vrot.slane %v4946_v15, 1  ;;  %v6615_v13 = vld [vmem:[#allocation49_spill] sm:$0xff] }
  0xd6   : > { %6607 = vst [vmem:[#allocation73_spill] sm:$0xff] %v5296_v27  ;;  %v5303_v5 = vsel %vm1302_vm3, %v6470_v48, %v6608_v60  ;;  %v826_v44 = vsel %vm723_vm0, %v6611_v57, %v6610_v7  ;;  %v5320_v60 = vmul.f32 %v4805_v39, %v5116_v4  ;;  %v924_v57 = vrot.slane %v5276_v26, 2 }
  0xd7   : > { %6609 = vst [vmem:[#allocation74_spill] sm:$0xff] %v5303_v5  ;;  %v845_v48 = vadd.f32 %v826_v44, %v797_v20  ;;  %v5327_v7 = vmul.f32 %v4801_v37, %v5116_v4  ;;  %v1310_v20 = vrot.slane %v5285_v43, 4  ;;  %v1018_v9 = vrot.slane %v5312_v46, 2 }
  0xd8   : > { %v853_v26 = vmul.f32 %v4822_v53, %v5314_v36  ;;  %v6613_v4 = vrot.slane %v5267_v54, 1  ;;  %v699_v5 = vadd.f32 %v691_v30, %v650_v18  ;;  %v905_v43 = vmul.f32 %v4805_v39, %v5213_v3 }
  0xd9   : > { %6612 = vst [vmem:[#allocation75_spill] sm:$0xff] %v5327_v7  ;;  %v893_v29 = vadd.f32 %v5133_v21, %v845_v48  ;;  %v644_v46 = vmul.f32 %v4782_v25, %v5223_v45  ;;  %v6616_v44 = vrot.slane %v4870_v10, 1  ;;  %v6617_v27 = vrot.slane %v5091_v31, 1  ;;  %v6620_v31 = vld [vmem:[#allocation54_spill] sm:$0xff] }
  0xda   : > { %v732_v21 = vsel %vm723_vm0, %v6614_v8, %v6613_v4  ;;  %v869_v15 = vrot.slane %v853_v26, 1  ;;  %v5357_v4 = vmul.f32 %v4803_v38, %v5213_v3  ;;  %v843_v18 = vadd.f32 %v5159_v32, %v795_v2  ;;  %v6622_v26 = vld [vmem:[#allocation39_spill] sm:$0xff]  ;;  %v6624_v2 = vld [vmem:[#allocation36_spill] sm:$0xff] }
  0xdb   : > { %v942_v48 = vadd.f32 %v6615_v13, %v893_v29  ;;  %v728_v7 = vsel %vm723_vm0, %v6617_v27, %v6616_v44  ;;  %v6619_v8 = vrot.slane %v4936_v58, 2  ;;  %v1193_v10 = vmul.f32 %v4797_v34, %v5223_v45 }
  0xdc   : > { %6618 = vst [vmem:[#allocation49_spill] sm:$0xff] %v5357_v4  ;;  %v748_v30 = vadd.f32 %v728_v7, %v699_v5  ;;  %v6621_v11 = vrot.slane %v6620_v31, 1  ;;  %v1046_v44 = vmul.f32 %v4827_v55, %v5314_v36  ;;  %v6623_v39 = vrot.slane %v6622_v26, 2  ;;  %v6625_v7 = vld [vmem:[#allocation40_spill] sm:$0xff]  ;;  %v6627_v31 = vld [vmem:[#allocation41_spill] sm:$0xff] }
  0xdd   : > { %v990_v29 = vadd.f32 %v5083_v63, %v942_v48  ;;  %v1019_v13 = vsel %vm916_vm1, %v6619_v8, %v1018_v9  ;;  %v6626_v48 = vrot.slane %v6625_v7, 3  ;;  %v6628_v38 = vrot.slane %v6627_v31, 4  ;;  %v6630_v7 = vld [vmem:[#allocation52_spill] sm:$0xff] }
  0xde   : > { %v870_v27 = vsel %vm723_vm0, %v6621_v11, %v869_v15  ;;  %v5374_v63 = vsel %vm916_vm1, %v6623_v39, %v924_v57  ;;  %v796_v58 = vadd.f32 %v6624_v2, %v748_v30  ;;  %v926_v54 = vrot.slane %v905_v43, 2 }
  0xdf   : > { %v1038_v32 = vadd.f32 %v1019_v13, %v990_v29  ;;  %v891_v5 = vadd.f32 %v870_v27, %v843_v18  ;;  %v5380_v8 = vsel %vm1109_vm2, %v6626_v48, %v1117_v40  ;;  %v5385_v11 = vsel %vm1302_vm3, %v6628_v38, %v1310_v20  ;;  %v6631_v48 = vld [vmem:[#allocation32_spill] sm:$0xff]  ;;  %v6670_v13 = vld [vmem:[#allocation57_spill] sm:$0xff] }
  0xe0   : > { %v652_v26 = vadd.f32 %v644_v46, %v5054_v22  ;;  %v5390_v39 = vmul.f32 %v4801_v37, %v5213_v3  ;;  %v844_v30 = vadd.f32 %v5169_v6, %v796_v58  ;;  %v1211_v27 = vrot.slane %v1193_v10, 3  ;;  %v577_v58 = vpop.permute.xlu1 %576 }
  0xe1   : > { %v1086_v29 = vadd.f32 %v5140_v47, %v1038_v32  ;;  %v940_v18 = vadd.f32 %v5207_v24, %v891_v5  ;;  %v6629_v2 = vrot.slane %v5066_v62, 1  ;;  %v1062_v43 = vrot.slane %v1046_v44, 2  ;;  %v6637_v44 = vld [vmem:[#allocation48_spill] sm:$0xff] }
  0xe2   : > { %v1386_v3 = vmul.f32 %v4799_v35, %v5223_v45  ;;  %v5404_v6 = vsel %vm916_vm1, %v924_v57, %v926_v54  ;;  %v6633_v24 = vrot.slane %v5320_v60, 2  ;;  %v6635_v62 = vrot.slane %v5243_v23, 3 }
  0xe3   : > { %v872_v38 = vsel %vm723_vm0, %v869_v15, %v6629_v2  ;;  %v1135_v22 = vadd.f32 %v6630_v7, %v1086_v29  ;;  %v988_v47 = vadd.f32 %v6631_v48, %v940_v18  ;;  %6632 = vst [vmem:[#allocation54_spill] sm:$0xff] %v5404_v6  ;;  %v701_v32 = vadd.f32 %v6637_v44, %v652_v26  ;;  %v6646_v7 = vld [vmem:[#allocation18_spill] sm:$0xff]  ;;  %v6697_v6 = vld [vmem:[#allocation69_spill] sm:$0xff] }
  0xe4   : > { %v892_v46 = vadd.f32 %v872_v38, %v844_v30  ;;  %v5409_v10 = vsel %vm916_vm1, %v926_v54, %v6633_v24  ;;  %v5414_v15 = vsel %vm1109_vm2, %v1117_v40, %v6635_v62  ;;  %v1239_v31 = vmul.f32 %v4829_v56, %v5314_v36 }
  0xe5   : > { %6634 = vst [vmem:[#allocation39_spill] sm:$0xff] %v5409_v10  ;;  %v1183_v45 = vadd.f32 %v5098_v17, %v1135_v22  ;;  %v1036_v57 = vadd.f32 %v5174_v0, %v988_v47  ;;  %v6638_v54 = vrot.slane %v5247_v16, 4  ;;  %v6640_v40 = vrot.slane %v5226_v49, 1  ;;  %v6643_v0 = vld [vmem:[#allocation55_spill] sm:$0xff]  ;;  %v6645_v16 = vld [vmem:[#allocation37_spill] sm:$0xff] }
  0xe6   : > { %6636 = vst [vmem:[#allocation36_spill] sm:$0xff] %v5414_v15  ;;  %v941_v5 = vadd.f32 %v5218_v19, %v892_v46  ;;  %v6641_v23 = vrot.slane %v5256_v59, 1  ;;  %v6642_v17 = vrot.slane %v4939_v28, 3  ;;  %v6644_v30 = vrot.slane %v6643_v0, 2  ;;  %v6648_v47 = vld [vmem:[#allocation29_spill] sm:$0xff]  ;;  %v6657_v0 = vld [vmem:[#allocation43_spill] sm:$0xff] }
  0xe7   : > { %v5425_v29 = vsel %vm1302_vm3, %v1310_v20, %v6638_v54  ;;  %v5442_v22 = vmul.f32 %v6646_v7, %v577_v58  ;;  %v750_v46 = vadd.f32 %v732_v21, %v701_v32  ;;  %v6647_v59 = vrot.slane %v5229_v50, 2  ;;  %v6650_v32 = vld [vmem:[#allocation19_spill] sm:$0xff] }
  0xe8   : > { %6639 = vst [vmem:[#allocation40_spill] sm:$0xff] %v5425_v29  ;;  %v5432_v26 = vsel %vm723_vm0, %v6641_v23, %v6640_v40  ;;  %v1212_v19 = vsel %vm1109_vm2, %v6642_v17, %v1211_v27  ;;  %v1063_v18 = vsel %vm916_vm1, %v6644_v30, %v1062_v43  ;;  %v989_v38 = vadd.f32 %v6645_v16, %v941_v5  ;;  %v6659_v16 = vld [vmem:[#allocation22_spill] sm:$0xff]  ;;  %v6682_v15 = vld [vmem:[#allocation59_spill] sm:$0xff] }
  0xe9   : > { %v1231_v2 = vadd.f32 %v1212_v19, %v1183_v45  ;;  %v1084_v20 = vadd.f32 %v1063_v18, %v1036_v57  ;;  %v5447_v48 = vsel %vm916_vm1, %v1018_v9, %v6647_v59  ;;  %v1404_v28 = vrot.slane %v1386_v3, 4  ;;  %v6651_v9 = vld [vmem:[#allocation20_spill] sm:$0xff]  ;;  %v6652_v3 = vld [vmem:[#allocation21_spill] sm:$0xff] }
  0xea   : > { %v1432_v24 = vmul.f32 %v6648_v47, %v5314_v36  ;;  %v1037_v44 = vadd.f32 %v5179_v12, %v989_v38  ;;  %v1255_v5 = vrot.slane %v1239_v31, 3  ;;  %v6649_v57 = vrot.slane %v5069_v41, 2  ;;  %v581_v36 = vpop.permute.xlu2 %580  ;;  %v6655_v19 = vld [vmem:[#allocation33_spill] sm:$0xff] }
  0xeb   : > { %v1279_v62 = vadd.f32 %v5147_v14, %v1231_v2  ;;  %v1133_v45 = vadd.f32 %v5251_v1, %v1084_v20  ;;  %v5458_v54 = vmul.f32 %v6650_v32, %v577_v58  ;;  %v5461_v40 = vmul.f32 %v6651_v9, %v577_v58  ;;  %v6654_v14 = vld [vmem:[#allocation53_spill] sm:$0xff]  ;;  %v6660_v20 = vld [vmem:[#allocation63_spill] sm:$0xff] }
  0xec   : > { %v1065_v21 = vsel %vm916_vm1, %v1062_v43, %v6649_v57  ;;  %v5464_v23 = vmul.f32 %v6652_v3, %v577_v58  ;;  %v6480_v31 = vrot.slane %v5442_v22, 1  ;;  %v6656_v41 = vrot.slane %v5232_v33, 3  ;;  %v6662_v57 = vld [vmem:[#allocation65_spill] sm:$0xff] }
  0xed   : > { %v1328_v17 = vadd.f32 %v6654_v14, %v1279_v62  ;;  %v1085_v12 = vadd.f32 %v1065_v21, %v1037_v44  ;;  %v1181_v1 = vadd.f32 %v6655_v19, %v1133_v45  ;;  %v6658_v30 = vrot.slane %v6657_v0, 4 }
  0xee   : > { %6653 = vst [vmem:[#allocation41_spill] sm:$0xff] %v5464_v23  ;;  %v5472_v43 = vsel %vm1109_vm2, %v1211_v27, %v6656_v41  ;;  %v1448_v2 = vrot.slane %v1432_v24, 4  ;;  %v596_v38 = vmul.f32 %v6659_v16, %v577_v58  ;;  %v6661_v62 = vrot.slane %v5235_v61, 4  ;;  %v6663_v27 = vld [vmem:[#allocation56_spill] sm:$0xff] }
  0xef   : > { %v1405_v18 = vsel %vm1302_vm3, %v6658_v30, %v1404_v28  ;;  %v1376_v59 = vadd.f32 %v6660_v20, %v1328_v17  ;;  %v1134_v45 = vadd.f32 %v5261_v51, %v1085_v12  ;;  %v1229_v21 = vadd.f32 %v6662_v57, %v1181_v1  ;;  %v5492_v17 = vpop.permute.xlu1 %674  ;;  %v6665_v12 = vld [vmem:[#allocation42_spill] sm:$0xff]  ;;  %v6666_v30 = vld [vmem:[#allocation51_spill] sm:$0xff]  ;;  %v6668_v57 = vld [vmem:[#allocation61_spill] sm:$0xff] }
  0xf0   : > { %v5482_v44 = vsel %vm1302_vm3, %v1404_v28, %v6661_v62  ;;  %v6664_v14 = vrot.slane %v6663_v27, 3  ;;  %v5497_v28 = vld [vmem:[%s6406_s2] ss:$0 sm:$0xff]  ;;  %v6667_v20 = vrot.slane %v6666_v30, 1  ;;  %v6669_v27 = vrot.slane %v6668_v57, 3  ;;  %v6675_v30 = vld [vmem:[#allocation30_spill] sm:$0xff] }
  0xf1   : > { %v1424_v51 = vadd.f32 %v1405_v18, %v1376_v59  ;;  %v1182_v1 = vadd.f32 %v6665_v12, %v1134_v45  ;;  %v6671_v58 = vrot.slane %v6670_v13, 4  ;;  %v6672_v41 = vld [vmem:[#allocation72_spill] sm:$0xff]  ;;  %v597_v18 = vmul.f32 %v6659_v16, %v581_v36 }
  0xf2   : > { %v1256_v19 = vsel %vm1109_vm2, %v6664_v14, %v1255_v5  ;;  %v780_v62 = vsel %vm723_vm0, %v6667_v20, %v6480_v31  ;;  %v1258_v14 = vsel %vm1109_vm2, %v1255_v5, %v6669_v27  ;;  %v604_v61 = vadd.f32 %v596_v38, %v6672_v41  ;;  %v5516_v59 = vld [vmem:[%s6407_s3] ss:$0 sm:$0xff]  ;;  %v6676_v5 = vld [vmem:[#allocation62_spill] sm:$0xff] }
  0xf3   : > { %v1277_v0 = vadd.f32 %v1256_v19, %v1229_v21  ;;  %v1449_v24 = vsel %vm1302_vm3, %v6671_v58, %v1448_v2  ;;  %v6673_v45 = vld [vmem:[#allocation64_spill] sm:$0xff]  ;;  %v6674_v19 = vld [vmem:[#allocation66_spill] sm:$0xff]  ;;  %v6677_v57 = vrot.slane %v6676_v5, 4  ;;  %v798_v58 = vadd.f32 %v780_v62, %v750_v46  ;;  %v5543_v46 = vpop.permute.xlu2 %588 }
  0xf4   : > { %v1472_v21 = vadd.f32 %v6673_v45, %v1424_v51  ;;  %v1230_v12 = vadd.f32 %v6674_v19, %v1182_v1  ;;  %v6678_v38 = vrot.slane %v5458_v54, 2  ;;  %v6679_v41 = vld [vmem:[#allocation58_spill] sm:$0xff]  ;;  %v6681_v29 = vrot.slane %v5461_v40, 3 }
  0xf5   : > { %v1326_v20 = vadd.f32 %v6675_v30, %v1277_v0  ;;  %v1451_v13 = vsel %vm1302_vm3, %v1448_v2, %v6677_v57  ;;  %v6680_v27 = vrot.slane %v6679_v41, 2  ;;  %v6683_v10 = vrot.slane %v6682_v15, 3  ;;  %v6685_v0 = vld [vmem:[#allocation60_spill] sm:$0xff]  ;;  %v6687_v30 = vld [vmem:[#allocation34_spill] sm:$0xff]  ;;  %v630_v41 = vpop.permute.xlu0 %629 }
  0xf6   : > { %v6684_v1 = vrot.slane %v5464_v23, 4  ;;  %v6686_v45 = vrot.slane %v6685_v0, 4  ;;  %v1484_v62 = vmul.f32 %v5497_v28, %v1472_v21  ;;  %v1278_v19 = vadd.f32 %v1258_v14, %v1230_v12  ;;  %v6690_v12 = vld [vmem:[#allocation67_spill] sm:$0xff] }
  0xf7   : > { %v973_v31 = vsel %vm916_vm1, %v6680_v27, %v6678_v38  ;;  %v5534_v51 = vsel %vm1109_vm2, %v6683_v10, %v6681_v29  ;;  %v1374_v5 = vadd.f32 %v6687_v30, %v1326_v20  ;;  %v5549_v15 = vmul.f32 %v4822_v53, %v5492_v17  ;;  %v6695_v30 = vld [vmem:[#allocation44_spill] sm:$0xff] }
  0xf8   : > { %v5541_v2 = vsel %vm1302_vm3, %v6686_v45, %v6684_v1  ;;  %v5552_v10 = vadd.f32 %v597_v18, %v5390_v39  ;;  %v5555_v29 = vmul.f32 %v6646_v7, %v581_v36  ;;  %v5558_v57 = vmul.f32 %v6650_v32, %v581_v36 }
  0xf9   : > { %6688 = vst [vmem:[#allocation52_spill] sm:$0xff] %v5549_v15  ;;  %v5561_v38 = vmul.f32 %v6651_v9, %v581_v36  ;;  %v1496_v14 = vadd.f32 %v5516_v59, %v1484_v62  ;;  %v1327_v21 = vadd.f32 %v5273_v42, %v1278_v19  ;;  %v1422_v20 = vadd.f32 %v6690_v12, %v1374_v5  ;;  %v6694_v62 = vld [vmem:[#allocation46_spill] sm:$0xff] }
  0xfa   : > { %6689 = vst [vmem:[#allocation32_spill] sm:$0xff] %v5555_v29  ;;  %v6482_v27 = vrot.slane %v5549_v15, 1  ;;  %v5568_v39 = vmul.f32 %v6652_v3, %v581_v36  ;;  %v5571_v18 = vmul.f32 %v4782_v25, %v630_v41  ;;  %v846_v1 = vadd.f32 %v5432_v26, %v798_v58  ;;  %v6703_v15 = vld [vmem:[#allocation31_spill] sm:$0xff] }
  0xfb   : > { %v5576_v0 = vmul.f32 %v4827_v55, %v5492_v17  ;;  %v1504_v45 = vmax.f32 %v1496_v14, 0.0  ;;  %v1375_v42 = vadd.f32 %v6694_v62, %v1327_v21  ;;  %v1470_v19 = vadd.f32 %v1449_v24, %v1422_v20  ;;  %v6698_v24 = vld [vmem:[#allocation23_spill] sm:$0xff]  ;;  %v6699_v62 = vld [vmem:[#allocation24_spill] sm:$0xff] }
  0xfc   : > { %6691 = vst [vmem:[#allocation48_spill] sm:$0xff] %v5568_v39  ;;  %v6696_v5 = vrot.slane %v6695_v30, 1  ;;  %v6484_v12 = vrot.slane %v5555_v29, 1  ;;  %v540_v39 = vpop.permute.xlu1 %539  ;;  %v5590_v20 = vmul.f32 %v6698_v24, %v630_v41  ;;  %v5593_v30 = vmul.f32 %v6699_v62, %v630_v41 }
  0xfd   : > { %6692 = vst [vmem:[#allocation55_spill] sm:$0xff] %v5571_v18  ;;  %v1423_v14 = vadd.f32 %v6697_v6, %v1375_v42  ;;  %v1482_v21 = vmul.f32 %v5497_v28, %v1470_v19  ;;  %v599_v42 = vmul.f32 %v6659_v16, %v5543_v46  ;;  %v550_v19 = vmul.f32 %v4801_v37, %v540_v39 }
  0xfe   : > { %6693 = vst [vmem:[#allocation37_spill] sm:$0xff] %v5576_v0  ;;  %v876_v36 = vsel %vm723_vm0, %v6696_v5, %v6482_v27  ;;  %v5596_v5 = vmul.f32 %v4797_v34, %v630_v41  ;;  %v694_v27 = vmul.f32 %v4820_v52, %v5492_v17  ;;  %v6702_v26 = vrot.slane %v5442_v22, 1 }
  0xff   : > { %v894_v58 = vadd.f32 %v876_v36, %v846_v1  ;;  %1512 = vst [vmem:[#allocation2 + $0x10] sm:$0xff] %v1504_v45  ;;  %v1471_v36 = vadd.f32 %v1451_v13, %v1423_v14  ;;  %v1494_v6 = vadd.f32 %v5516_v59, %v1482_v21  ;;  %v653_v18 = vadd.f32 %v6703_v15, %v604_v61 }
 0x100   : > { %6700 = vst [vmem:[#allocation18_spill] sm:$0xff] %v5593_v30  ;;  %v5611_v23 = vsel %vm723_vm0, %v6702_v26, %v6484_v12  ;;  %v5616_v13 = vmul.f32 %v4829_v56, %v5492_v17  ;;  %v6485_v45 = vrot.slane %v5593_v30, 2  ;;  %v5627_v61 = vmul.f32 %v6648_v47, %v5492_v17 }
 0x101   : > { %6701 = vst [vmem:[#allocation29_spill] sm:$0xff] %v5596_v5  ;;  %v943_v1 = vadd.f32 %v5374_v63, %v894_v58  ;;  %v5618_v58 = vpop.permute.xlu2 %637  ;;  %v1483_v14 = vmul.f32 %v5497_v28, %v1471_v36  ;;  %v1502_v21 = vmax.f32 %v1494_v6, 0.0  ;;  %v702_v26 = vadd.f32 %v694_v27, %v653_v18 }
 0x102   : > { %6704 = vst [vmem:[#allocation19_spill] sm:$0xff] %v5616_v13  ;;  %v6706_v15 = vrot.slane %v5576_v0, 2  ;;  %v607_v37 = vadd.f32 %v599_v42, %v550_v19  ;;  %v648_v22 = vmul.f32 %v4782_v25, %v5618_v58  ;;  %v6709_v27 = vrot.slane %v5558_v57, 2 }
 0x103   : > { %v991_v63 = vadd.f32 %v973_v31, %v943_v1  ;;  %6705 = vst [vmem:[#allocation20_spill] sm:$0xff] %v5627_v61  ;;  %v1495_v31 = vadd.f32 %v5516_v59, %v1483_v14  ;;  %v6707_v1 = vld [vmem:[#allocation45_spill] sm:$0xff]  ;;  %v6712_v18 = vrot.slane %v5561_v38, 3 }
 0x104   : > { %1510 = vst [vmem:[#allocation2] sm:$0xff] %v1502_v21  ;;  %v6708_v36 = vrot.slane %v6707_v1, 2  ;;  %v6716_v1 = vrot.slane %v5226_v49, 1 }
 0x105   : > { %v1039_v12 = vadd.f32 %v5447_v48, %v991_v63  ;;  %v6710_v48 = vrot.slane %v5458_v54, 2  ;;  %v6713_v63 = vrot.slane %v5461_v40, 3  ;;  %v1503_v19 = vmax.f32 %v1495_v31, 0.0  ;;  %v6720_v40 = vld [vmem:[#allocation35_spill] sm:$0xff] }
 0x106   : > { %v1069_v6 = vsel %vm916_vm1, %v6708_v36, %v6706_v15  ;;  %v6715_v15 = vrot.slane %v5590_v20, 1  ;;  %v5660_v36 = vmul.f32 %v4799_v35, %v630_v41  ;;  %v6722_v31 = vrot.slane %v5229_v50, 2  ;;  %v3524_v50 = vld [vmem:[#allocation3 + $0x70] sm:$0xf] }
 0x107   : > { %v5642_v17 = vsel %vm916_vm1, %v6710_v48, %v6709_v27  ;;  %v5649_v14 = vsel %vm1109_vm2, %v6713_v63, %v6712_v18  ;;  %v1087_v21 = vadd.f32 %v1069_v6, %v1039_v12  ;;  %v6719_v27 = vrot.slane %v5357_v4, 1  ;;  %v5667_v12 = vpop.permute.xlu0 %686  ;;  %1511 = vst [vmem:[#allocation2 + $0x8] sm:$0xff] %v1503_v19 }
 0x108   : > { %6711 = vst [vmem:[#allocation21_spill] sm:$0xff] %v5642_v17  ;;  %v5657_v54 = vsel %vm723_vm0, %v6716_v1, %v6715_v15  ;;  %v6721_v48 = vrot.slane %v6720_v40, 1  ;;  %v5674_v49 = vsel %vm916_vm1, %v6722_v31, %v6485_v45  ;;  %v6724_v6 = vrot.slane %v5596_v5, 3  ;;  %v6727_v1 = vld [vmem:[#allocation25_spill] sm:$0xff]  ;;  %v3460_v40 = vld [vmem:[#allocation3 + $0xf0] sm:$0xf] }
 0x109   : > { %6714 = vst [vmem:[#allocation53_spill] sm:$0xff] %v5649_v14  ;;  %v6725_v41 = vrot.slane %v5232_v33, 3  ;;  %v1136_v15 = vadd.f32 %v5380_v8, %v1087_v21  ;;  %v5690_v31 = vmul.f32 %v6646_v7, %v5543_v46  ;;  %v656_v45 = vadd.f32 %v648_v22, %v607_v37  ;;  %v4146_v33 = vld [vmem:[#allocation3 + $0xf4] sm:$0xf]  ;;  %v6729_v8 = vld [vmem:[#allocation47_spill] sm:$0xff] }
 0x10a   : > { %6717 = vst [vmem:[#allocation33_spill] sm:$0xff] %v5657_v54  ;;  %v734_v18 = vsel %vm723_vm0, %v6721_v48, %v6719_v27  ;;  %v5685_v27 = vmul.f32 %v6727_v1, %v540_v39  ;;  %v4147_v48 = vld [vmem:[#allocation3 + $0xf4] sm:$0xf0]  ;;  %v6730_v21 = vrot.slane %v6729_v8, 3  ;;  %v5700_v19 = vmul.f32 %v6698_v24, %v5618_v58  ;;  %v6731_v37 = vld [vmem:[#allocation26_spill] sm:$0xff] }
 0x10b   : > { %6718 = vst [vmem:[#allocation43_spill] sm:$0xff] %v5660_v36  ;;  %v5681_v63 = vsel %vm1109_vm2, %v6725_v41, %v6724_v6  ;;  %v751_v42 = vadd.f32 %v734_v18, %v702_v26  ;;  %v1184_v6 = vadd.f32 %v5534_v51, %v1136_v15  ;;  %v6728_v41 = vrot.slane %v5616_v13, 3  ;;  %v3462_v18 = vld [vmem:[#allocation3 + $0xf8] sm:$0xf0]  ;;  %v4131_v36 = vld [vmem:[#allocation3 + $0x74] sm:$0xf0] }
 0x10c   : > { %6723 = vst [vmem:[#allocation22_spill] sm:$0xff] %v5674_v49  ;;  %v697_v26 = vmul.f32 %v4820_v52, %v5667_v12  ;;  %v5705_v22 = vmul.f32 %v6731_v37, %v540_v39  ;;  %v6732_v51 = vld [vmem:[#allocation27_spill] sm:$0xff]  ;;  %v6733_v13 = vld [vmem:[#allocation28_spill] sm:$0xff]  ;;  %v6489_v14 = vrot.slane %v5685_v27, 1  ;;  %v5717_v49 = vmul.f32 %v4822_v53, %v5667_v12  ;;  %v4145_v17 = vld [vmem:[#allocation3 + $0xe4] sm:$0xf0] }
 0x10d   : > { %6726 = vst [vmem:[#allocation63_spill] sm:$0xff] %v5681_v63  ;;  %v1262_v1 = vsel %vm1109_vm2, %v6730_v21, %v6728_v41  ;;  %v5708_v15 = vmul.f32 %v6732_v51, %v540_v39  ;;  %v5711_v8 = vmul.f32 %v6733_v13, %v540_v39  ;;  %v3461_v41 = vor.u32 %v4147_v48, %v3460_v40  ;;  %v4130_v21 = vld [vmem:[#allocation3 + $0x74] sm:$0xf]  ;;  %v3526_v63 = vld [vmem:[#allocation3 + $0x78] sm:$0xf0]  ;;  %v5724_v40 = vpop.permute.xlu1 %584 }
 0x10e   : > { %v1232_v5 = vadd.f32 %v5472_v43, %v1184_v6  ;;  %v705_v0 = vadd.f32 %v697_v26, %v656_v45  ;;  %v5722_v51 = vmul.f32 %v6650_v32, %v5543_v46  ;;  %v3465_v39 = vor.u32 %v4146_v33, %v3462_v18  ;;  %v3452_v26 = vld [vmem:[#allocation3 + $0xe0] sm:$0xf]  ;;  %v3454_v33 = vld [vmem:[#allocation3 + $0xe8] sm:$0xf0] }
 0x10f   : > { %1650 = vmatpush.bf16.msra.mxu0 %v3461_v41  ;;  %v3525_v13 = vor.u32 %v4131_v36, %v3524_v50  ;;  %v6491_v43 = vrot.slane %v5700_v19, 1  ;;  %v3529_v6 = vor.u32 %v4130_v21, %v3526_v63  ;;  %v5730_v37 = vadd.f32 %v5611_v23, %v751_v42  ;;  %v3516_v18 = vld [vmem:[#allocation3 + $0x60] sm:$0xf]  ;;  %v4129_v41 = vld [vmem:[#allocation3 + $0x64] sm:$0xf0] }
 0x110   : > { %v1280_v48 = vadd.f32 %v1262_v1, %v1232_v5  ;;  %v754_v45 = vadd.f32 %v6489_v14, %v705_v0  ;;  %v5734_v54 = vmul.f32 %v6651_v9, %v5543_v46  ;;  %v930_v36 = vrot.slane %v5705_v22, 2  ;;  %1669 = vmatpush.bf16.msra.mxu1 %v3465_v39  ;;  %v4144_v5 = vld [vmem:[#allocation3 + $0xe4] sm:$0xf]  ;;  %v6737_v14 = vld [vmem:[#allocation50_spill] sm:$0xff]  ;;  %v3446_v50 = vld [vmem:[#allocation3 + $0xd8] sm:$0xf0] }
 0x111   : > { %6734 = vst [vmem:[#allocation65_spill] sm:$0xff] %v5730_v37  ;;  %1768 = vmatpush.bf16.msra.mxu2 %v3525_v13  ;;  %v6735_v1 = vrot.slane %v5690_v31, 1  ;;  %1787 = vmatpush.bf16.msra.mxu3 %v3529_v6  ;;  %v4128_v21 = vld [vmem:[#allocation3 + $0x64] sm:$0xf]  ;;  %v6736_v22 = vrot.slane %v5627_v61, 4  ;;  %v6738_v39 = vrot.slane %v6737_v14, 4  ;;  %v5756_v42 = vmul.f32 %v6699_v62, %v5618_v58 }
 0x112   : > { %v1329_v0 = vadd.f32 %v5385_v11, %v1280_v48  ;;  %v5751_v11 = vmul.f32 %v6652_v3, %v5543_v46  ;;  %v3453_v48 = vor.u32 %v4145_v17, %v3452_v26  ;;  %v3457_v63 = vor.u32 %v4144_v5, %v3454_v33  ;;  %v6742_v26 = vld [vmem:[#allocation68_spill] sm:$0xff]  ;;  %v3508_v33 = vld [vmem:[#allocation3 + $0x50] sm:$0xf] }
 0x113   : > { %v802_v23 = vadd.f32 %v6735_v1, %v754_v45  ;;  %v1455_v13 = vsel %vm1302_vm3, %v6738_v39, %v6736_v22  ;;  %v3518_v45 = vld [vmem:[#allocation3 + $0x68] sm:$0xf0]  ;;  %v3444_v1 = vld [vmem:[#allocation3 + $0xd0] sm:$0xf]  ;;  %v4143_v22 = vld [vmem:[#allocation3 + $0xd4] sm:$0xf0]  ;;  %v5775_v5 = vmul.f32 %v4797_v34, %v5618_v58  ;;  %v3517_v29 = vor.u32 %v4129_v41, %v3516_v18 }
 0x114   : > { %v1377_v6 = vadd.f32 %v5541_v2, %v1329_v0  ;;  %v4142_v39 = vld [vmem:[#allocation3 + $0xd4] sm:$0xf]  ;;  %v6739_v46 = vrot.slane %v5320_v60, 2  ;;  %v6741_v2 = vrot.slane %v5708_v15, 3  ;;  %v6743_v0 = vrot.slane %v6742_v26, 3  ;;  %1651 = vmatpush.bf16.msra.mxu0 %v3453_v48  ;;  %1670 = vmatpush.bf16.msra.mxu1 %v3457_v63 }
 0x115   : > { %v850_v14 = vadd.f32 %v6491_v43, %v802_v23  ;;  %v6745_v60 = vrot.slane %v5711_v8, 4  ;;  %v6746_v43 = vld [vmem:[#allocation70_spill] sm:$0xff]  ;;  %v6749_v26 = vrot.slane %v5717_v49, 1  ;;  %v3449_v4 = vor.u32 %v4142_v39, %v3446_v50  ;;  %1769 = vmatpush.bf16.msra.mxu2 %v3517_v29  ;;  %v5799_v50 = vpop.permute.xlu1 %633 }
 0x116   : > { %v5764_v17 = vsel %vm916_vm1, %v6739_v46, %v930_v36  ;;  %v5771_v37 = vsel %vm1109_vm2, %v6743_v0, %v6741_v2  ;;  %v1425_v23 = vadd.f32 %v5482_v44, %v1377_v6  ;;  %v6747_v46 = vrot.slane %v6746_v43, 4  ;;  %v4127_v0 = vld [vmem:[#allocation3 + $0x54] sm:$0xf0]  ;;  %v4126_v48 = vld [vmem:[#allocation3 + $0x54] sm:$0xf] }
 0x117   : > { %6740 = vst [vmem:[#allocation56_spill] sm:$0xff] %v5764_v17  ;;  %v898_v17 = vadd.f32 %v6749_v26, %v850_v14  ;;  %v5789_v2 = vmul.f32 %v4827_v55, %v5667_v12  ;;  %v3521_v44 = vor.u32 %v4128_v21, %v3518_v45  ;;  %v3445_v6 = vor.u32 %v4143_v22, %v3444_v1  ;;  %v4141_v26 = vld [vmem:[#allocation3 + $0xc4] sm:$0xf0]  ;;  %v4140_v21 = vld [vmem:[#allocation3 + $0xc4] sm:$0xf] }
 0x118   : > { %6744 = vst [vmem:[#allocation42_spill] sm:$0xff] %v5771_v37  ;;  %v5783_v61 = vsel %vm1302_vm3, %v6747_v46, %v6745_v60  ;;  %v3510_v37 = vld [vmem:[#allocation3 + $0x58] sm:$0xf0]  ;;  %v1473_v30 = vadd.f32 %v1455_v13, %v1425_v23  ;;  %v1026_v43 = vrot.slane %v5756_v42, 2  ;;  %v5794_v60 = vmul.f32 %v4799_v35, %v5618_v58  ;;  %v3436_v46 = vld [vmem:[#allocation3 + $0xc0] sm:$0xf]  ;;  %1671 = vmatpush.bf16.msra.mxu1 %v3449_v4 }
 0x119   : > { %6748 = vst [vmem:[#allocation51_spill] sm:$0xff] %v5783_v61  ;;  %v947_v14 = vadd.f32 %v930_v36, %v898_v17  ;;  %v1364_v61 = vrot.slane %v5751_v11, 4  ;;  %v598_v63 = vmul.f32 %v6659_v16, %v5724_v40  ;;  %1788 = vmatpush.bf16.msra.mxu3 %v3521_v44  ;;  %v3509_v18 = vor.u32 %v4127_v0, %v3508_v33  ;;  %v3438_v13 = vld [vmem:[#allocation3 + $0xc8] sm:$0xf0]  ;;  %v3500_v33 = vld [vmem:[#allocation3 + $0x40] sm:$0xf] }
 0x11a   : > { %v3513_v41 = vor.u32 %v4126_v48, %v3510_v37  ;;  %v1485_v45 = vmul.f32 %v5497_v28, %v1473_v30  ;;  %v6750_v58 = vrot.slane %v5722_v51, 2  ;;  %v6495_v1 = vrot.slane %v5789_v2, 2  ;;  %1652 = vmatpush.bf16.msra.mxu0 %v3445_v6  ;;  %v4125_v23 = vld [vmem:[#allocation3 + $0x44] sm:$0xf0]  ;;  %v4124_v44 = vld [vmem:[#allocation3 + $0x44] sm:$0xf] }
 0x11b   : > { %v5807_v22 = vmul.f32 %v6650_v32, %v5724_v40  ;;  %v5811_v16 = vmul.f32 %v4829_v56, %v5667_v12  ;;  %v5815_v29 = vmul.f32 %v6648_v47, %v5667_v12  ;;  %v5819_v30 = vmul.f32 %v6646_v7, %v5724_v40  ;;  %1770 = vmatpush.bf16.msra.mxu2 %v3509_v18  ;;  %v3502_v6 = vld [vmem:[#allocation3 + $0x48] sm:$0xf0] }
 0x11c   : > { %v995_v36 = vadd.f32 %v6750_v58, %v947_v14  ;;  %v3437_v37 = vor.u32 %v4141_v26, %v3436_v46  ;;  %v1497_v39 = vadd.f32 %v5516_v59, %v1485_v45  ;;  %v647_v4 = vmul.f32 %v4782_v25, %v5799_v50  ;;  %v6751_v46 = vld [vmem:[#allocation75_spill] sm:$0xff] }
 0x11d   : > { %v3441_v17 = vor.u32 %v4140_v21, %v3438_v13  ;;  %v1219_v0 = vrot.slane %v5775_v5, 3  ;;  %v1412_v12 = vrot.slane %v5794_v60, 4  ;;  %v1148_v7 = vmul.f32 %v6651_v9, %v5724_v40  ;;  %1789 = vmatpush.bf16.msra.mxu3 %v3513_v41  ;;  %v5838_v13 = vpop.permute.xlu2 %682  ;;  %v3428_v41 = vld [vmem:[#allocation3 + $0xb0] sm:$0xf]  ;;  %v4139_v45 = vld [vmem:[#allocation3 + $0xb4] sm:$0xf0] }
 0x11e   : > { %v1043_v32 = vadd.f32 %v1026_v43, %v995_v36  ;;  %v5832_v48 = vmul.f32 %v6652_v3, %v5724_v40  ;;  %v1505_v14 = vmax.f32 %v1497_v39, 0.0  ;;  %v606_v26 = vadd.f32 %v598_v63, %v6751_v46  ;;  %1653 = vmatpush.bf16.msra.mxu0 %v3437_v37  ;;  %v4138_v39 = vld [vmem:[#allocation3 + $0xb4] sm:$0xf]  ;;  %v6800_v60 = vld [vmem:[#allocation41_spill] sm:$0xff] }
 0x11f   : > { %v976_v21 = vrot.slane %v5807_v22, 2  ;;  %1672 = vmatpush.bf16.msra.mxu1 %v3441_v17  ;;  %v1267_v9 = vrot.slane %v5811_v16, 3  ;;  %v810_v40 = vmul.f32 %v6698_v24, %v5799_v50  ;;  %v3501_v18 = vor.u32 %v4125_v23, %v3500_v33  ;;  %v3492_v23 = vld [vmem:[#allocation3 + $0x30] sm:$0xf]  ;;  %v4133_v16 = vld [vmem:[#allocation3 + $0x84] sm:$0xf0] }
 0x120   : > { %v1091_v25 = vadd.f32 %v6495_v1, %v1043_v32  ;;  %1513 = vst [vmem:[#allocation2 + $0x18] sm:$0xff] %v1505_v14  ;;  %v6752_v58 = vrot.slane %v5708_v15, 3  ;;  %v783_v36 = vrot.slane %v5819_v30, 1  ;;  %v3505_v22 = vor.u32 %v4124_v44, %v3502_v6  ;;  %v3430_v32 = vld [vmem:[#allocation3 + $0xb8] sm:$0xf0] }
 0x121   : > { %v655_v37 = vadd.f32 %v647_v4, %v606_v26  ;;  %v1169_v17 = vrot.slane %v1148_v7, 3  ;;  %1771 = vmatpush.bf16.msra.mxu2 %v3501_v18  ;;  %v696_v24 = vmul.f32 %v4820_v52, %v5838_v13  ;;  %v5852_v33 = vmul.f32 %v4822_v53, %v5838_v13  ;;  %v4123_v15 = vld [vmem:[#allocation3 + $0x34] sm:$0xf0]  ;;  %v4122_v26 = vld [vmem:[#allocation3 + $0x34] sm:$0xf] }
 0x122   : > { %v1140_v63 = vadd.f32 %v6752_v58, %v1091_v25  ;;  %v6753_v14 = vrot.slane %v5734_v54, 3  ;;  %v6754_v4 = vrot.slane %v5558_v57, 2  ;;  %v1003_v7 = vmul.f32 %v6699_v62, %v5799_v50  ;;  %1790 = vmatpush.bf16.msra.mxu3 %v3505_v22  ;;  %v3494_v18 = vld [vmem:[#allocation3 + $0x38] sm:$0xf0] }
 0x123   : > { %v3429_v6 = vor.u32 %v4139_v45, %v3428_v41  ;;  %v831_v58 = vrot.slane %v810_v40, 1  ;;  %v5865_v46 = vmul.f32 %v4797_v34, %v5799_v50  ;;  %v704_v1 = vadd.f32 %v696_v24, %v655_v37  ;;  %v5875_v40 = vpop.permute.xlu1 %678 }
 0x124   : > { %v1188_v25 = vadd.f32 %v6753_v14, %v1140_v63  ;;  %v5859_v44 = vsel %vm916_vm1, %v6754_v4, %v976_v21  ;;  %v3433_v3 = vor.u32 %v4138_v39, %v3430_v32  ;;  %v6755_v63 = vrot.slane %v5685_v27, 1  ;;  %v6756_v14 = vld [vmem:[#allocation73_spill] sm:$0xff] }
 0x125   : > { %v6757_v4 = vrot.slane %v6756_v14, 1  ;;  %v879_v41 = vrot.slane %v5852_v33, 1  ;;  %1654 = vmatpush.bf16.msra.mxu0 %v3429_v6  ;;  %v3493_v45 = vor.u32 %v4123_v15, %v3492_v23  ;;  %v6758_v34 = vrot.slane %v5722_v51, 2 }
 0x126   : > { %v1236_v57 = vadd.f32 %v1219_v0, %v1188_v25  ;;  %v6759_v37 = vrot.slane %v5561_v38, 3  ;;  %1673 = vmatpush.bf16.msra.mxu1 %v3433_v3  ;;  %v3497_v32 = vor.u32 %v4122_v26, %v3494_v18  ;;  %v6760_v33 = vrot.slane %v5734_v54, 3  ;;  %v6762_v3 = vld [vmem:[#allocation55_spill] sm:$0xff] }
 0x127   : > { %v738_v62 = vsel %vm723_vm0, %v6757_v4, %v6755_v63  ;;  %v979_v22 = vsel %vm916_vm1, %v976_v21, %v6758_v34  ;;  %v1024_v15 = vrot.slane %v1003_v7, 2  ;;  %v6761_v51 = vrot.slane %v5690_v31, 1  ;;  %1772 = vmatpush.bf16.msra.mxu2 %v3493_v45  ;;  %v6767_v63 = vld [vmem:[#allocation18_spill] sm:$0xff] }
 0x128   : > { %v5883_v39 = vsel %vm1109_vm2, %v6759_v37, %v1169_v17  ;;  %v753_v27 = vadd.f32 %v738_v62, %v704_v1  ;;  %v1284_v24 = vadd.f32 %v1267_v9, %v1236_v57  ;;  %v5890_v23 = vsel %vm1109_vm2, %v1169_v17, %v6760_v33  ;;  %1791 = vmatpush.bf16.msra.mxu3 %v3497_v32  ;;  %v3420_v33 = vld [vmem:[#allocation3 + $0xa0] sm:$0xf] }
 0x129   : > { %v786_v38 = vsel %vm723_vm0, %v783_v36, %v6761_v51  ;;  %v5899_v1 = vmul.f32 %v4799_v35, %v5799_v50  ;;  %v654_v54 = vadd.f32 %v6762_v3, %v5552_v10  ;;  %v695_v17 = vmul.f32 %v4820_v52, %v5875_v40  ;;  %v4137_v51 = vld [vmem:[#allocation3 + $0xa4] sm:$0xf0]  ;;  %v6772_v3 = vld [vmem:[#allocation32_spill] sm:$0xff] }
 0x12a   : > { %v801_v21 = vadd.f32 %v786_v38, %v753_v27  ;;  %v6763_v25 = vrot.slane %v5711_v8, 4  ;;  %v6764_v7 = vrot.slane %v5700_v19, 1  ;;  %v1217_v26 = vrot.slane %v5865_v46, 3  ;;  %v4136_v38 = vld [vmem:[#allocation3 + $0xa4] sm:$0xf] }
 0x12b   : > { %v6765_v35 = vrot.slane %v5717_v49, 1  ;;  %v6766_v18 = vrot.slane %v5590_v20, 1  ;;  %v5919_v52 = vmul.f32 %v4827_v55, %v5838_v13  ;;  %v703_v8 = vadd.f32 %v695_v17, %v654_v54 }
 0x12c   : > { %v1333_v31 = vadd.f32 %v6763_v25, %v1284_v24  ;;  %v834_v6 = vsel %vm723_vm0, %v831_v58, %v6764_v7  ;;  %v6768_v4 = vrot.slane %v6767_v63, 2  ;;  %v5930_v49 = vmul.f32 %v4829_v56, %v5838_v13  ;;  %v3422_v25 = vld [vmem:[#allocation3 + $0xa8] sm:$0xf0]  ;;  %v6778_v63 = vld [vmem:[#allocation52_spill] sm:$0xff] }
 0x12d   : > { %v882_v50 = vsel %vm723_vm0, %v879_v41, %v6765_v35  ;;  %v832_v10 = vsel %vm723_vm0, %v6766_v18, %v831_v58  ;;  %v849_v57 = vadd.f32 %v834_v6, %v801_v21  ;;  %v6769_v20 = vrot.slane %v6756_v14, 1  ;;  %v6770_v58 = vld [vmem:[#allocation49_spill] sm:$0xff] }
 0x12e   : > { %v1381_v19 = vadd.f32 %v1364_v61, %v1333_v31  ;;  %v5926_v62 = vsel %vm916_vm1, %v6768_v4, %v1024_v15  ;;  %v6771_v45 = vrot.slane %v6770_v58, 1  ;;  %v857_v32 = vmul.f32 %v4822_v53, %v5875_v40 }
 0x12f   : > { %v897_v37 = vadd.f32 %v882_v50, %v849_v57  ;;  %v5941_v24 = vmul.f32 %v4827_v55, %v5875_v40  ;;  %v1027_v14 = vsel %vm916_vm1, %v1024_v15, %v1026_v43  ;;  %v6773_v54 = vrot.slane %v6772_v3, 1  ;;  %v6774_v55 = vld [vmem:[#allocation56_spill] sm:$0xff]  ;;  %v6776_v43 = vld [vmem:[#allocation65_spill] sm:$0xff]  ;;  %v4134_v3 = vld [vmem:[#allocation3 + $0x94] sm:$0xf] }
 0x130   : > { %v736_v34 = vsel %vm723_vm0, %v6771_v45, %v6769_v20  ;;  %v1429_v21 = vadd.f32 %v1412_v12, %v1381_v19  ;;  %v3421_v17 = vor.u32 %v4137_v51, %v3420_v33  ;;  %v1072_v7 = vrot.slane %v5919_v52, 2  ;;  %v6777_v15 = vld [vmem:[#allocation33_spill] sm:$0xff]  ;;  %v3412_v33 = vld [vmem:[#allocation3 + $0x90] sm:$0xf]  ;;  %v4135_v51 = vld [vmem:[#allocation3 + $0x94] sm:$0xf0] }
 0x131   : > { %v752_v27 = vadd.f32 %v736_v34, %v703_v8  ;;  %v784_v53 = vsel %vm723_vm0, %v6773_v54, %v783_v36  ;;  %v946_v31 = vadd.f32 %v6774_v55, %v897_v37  ;;  %v877_v35 = vrot.slane %v857_v32, 1  ;;  %v3484_v8 = vld [vmem:[#allocation3 + $0x20] sm:$0xf]  ;;  %v4121_v45 = vld [vmem:[#allocation3 + $0x24] sm:$0xf0] }
 0x132   : > { %v6775_v50 = vrot.slane %v5815_v29, 4  ;;  %v1265_v42 = vrot.slane %v5930_v49, 3  ;;  %v847_v30 = vadd.f32 %v6777_v15, %v6776_v43  ;;  %1655 = vmatpush.bf16.msra.mxu0 %v3421_v17  ;;  %v3425_v57 = vor.u32 %v4136_v38, %v3422_v25  ;;  %v4120_v34 = vld [vmem:[#allocation3 + $0x24] sm:$0xf]  ;;  %v3486_v32 = vld [vmem:[#allocation3 + $0x28] sm:$0xf0] }
 0x133   : > { %v800_v6 = vadd.f32 %v784_v53, %v752_v27  ;;  %v994_v36 = vadd.f32 %v979_v22, %v946_v31  ;;  %v6779_v4 = vrot.slane %v6778_v63, 1  ;;  %v1070_v58 = vrot.slane %v5941_v24, 2  ;;  %v3414_v54 = vld [vmem:[#allocation3 + $0x98] sm:$0xf0]  ;;  %v4118_v55 = vld [vmem:[#allocation3 + $0x14] sm:$0xf] }
 0x134   : > { %v1477_v18 = vadd.f32 %v6775_v50, %v1429_v21  ;;  %v5970_v27 = vsel %vm1109_vm2, %v1217_v26, %v1219_v0  ;;  %v880_v22 = vsel %vm723_vm0, %v877_v35, %v879_v41  ;;  %1674 = vmatpush.bf16.msra.mxu1 %v3425_v57  ;;  %v6780_v24 = vrot.slane %v5789_v2, 2  ;;  %v3476_v41 = vld [vmem:[#allocation3 + $0x10] sm:$0xf]  ;;  %v3478_v31 = vld [vmem:[#allocation3 + $0x18] sm:$0xf0] }
 0x135   : > { %v848_v19 = vadd.f32 %v832_v10, %v800_v6  ;;  %v878_v20 = vsel %vm723_vm0, %v6779_v4, %v877_v35  ;;  %v1042_v38 = vadd.f32 %v1027_v14, %v994_v36  ;;  %v5980_v5 = vmul.f32 %v6648_v47, %v5838_v13  ;;  %v6781_v14 = vld [vmem:[#allocation54_spill] sm:$0xff]  ;;  %v4119_v13 = vld [vmem:[#allocation3 + $0x14] sm:$0xf0]  ;;  %v3404_v15 = vld [vmem:[#allocation3 + $0x80] sm:$0xf] }
 0x136   : > { %v1489_v37 = vmul.f32 %v5497_v28, %v1477_v18  ;;  %v895_v10 = vadd.f32 %v878_v20, %v847_v30  ;;  %v1075_v21 = vsel %vm916_vm1, %v1072_v7, %v6780_v24  ;;  %v1268_v2 = vsel %vm1109_vm2, %v1265_v42, %v1267_v9  ;;  %v6782_v35 = vld [vmem:[#allocation39_spill] sm:$0xff]  ;;  %v4132_v30 = vld [vmem:[#allocation3 + $0x84] sm:$0xf]  ;;  %v6783_v36 = vld [vmem:[#allocation21_spill] sm:$0xff] }
 0x137   : > { %v896_v0 = vadd.f32 %v880_v22, %v848_v19  ;;  %v5991_v25 = vmul.f32 %v4829_v56, %v5875_v40  ;;  %v1090_v6 = vadd.f32 %v1075_v21, %v1042_v38  ;;  %v3485_v18 = vor.u32 %v4121_v45, %v3484_v8  ;;  %v3406_v4 = vld [vmem:[#allocation3 + $0x88] sm:$0xf0]  ;;  %v3468_v20 = vld [vmem:[#allocation3] sm:$0xf]  ;;  %v6784_v56 = vld [vmem:[#allocation42_spill] sm:$0xff] }
 0x138   : > { %v1501_v53 = vadd.f32 %v5516_v59, %v1489_v37  ;;  %v944_v17 = vadd.f32 %v6781_v14, %v895_v10  ;;  %v3489_v43 = vor.u32 %v4120_v34, %v3486_v32  ;;  %v3413_v19 = vor.u32 %v4135_v51, %v3412_v33  ;;  %v4117_v38 = vld [vmem:[#allocation3 + $0x4] sm:$0xf0]  ;;  %v4116_v8 = vld [vmem:[#allocation3 + $0x4] sm:$0xf]  ;;  %v3470_v45 = vld [vmem:[#allocation3 + $0x8] sm:$0xf0] }
 0x139   : > { %v945_v50 = vadd.f32 %v6782_v35, %v896_v0  ;;  %v3417_v63 = vor.u32 %v4134_v3, %v3414_v54  ;;  %v1139_v37 = vadd.f32 %v6784_v56, %v1090_v6  ;;  %1773 = vmatpush.bf16.msra.mxu2 %v3485_v18  ;;  %v3477_v10 = vor.u32 %v4119_v13, %v3476_v41  ;;  %v6785_v34 = vld [vmem:[#allocation22_spill] sm:$0xff]  ;;  %v4163_v21 = vld [vmem:[#allocation3 + $0x174] sm:$0xf0]  ;;  %v3590_v13 = vld [vmem:[#allocation3 + $0x178] sm:$0xf0] }
 0x13a   : > { %v1509_v57 = vmax.f32 %v1501_v53, 0.0  ;;  %v992_v9 = vadd.f32 %v6783_v36, %v944_v17  ;;  %1792 = vmatpush.bf16.msra.mxu3 %v3489_v43  ;;  %1656 = vmatpush.bf16.msra.mxu0 %v3413_v19  ;;  %v3481_v24 = vor.u32 %v4118_v55, %v3478_v31  ;;  %v3405_v33 = vor.u32 %v4133_v16, %v3404_v15  ;;  %v3588_v51 = vld [vmem:[#allocation3 + $0x170] sm:$0xf]  ;;  %v4162_v17 = vld [vmem:[#allocation3 + $0x174] sm:$0xf] }
 0x13b   : > { %v993_v22 = vadd.f32 %v5859_v44, %v945_v50  ;;  %1675 = vmatpush.bf16.msra.mxu1 %v3417_v63  ;;  %v1187_v0 = vadd.f32 %v5890_v23, %v1139_v37  ;;  %v6786_v44 = vld [vmem:[#allocation37_spill] sm:$0xff]  ;;  %v3409_v53 = vor.u32 %v4132_v30, %v3406_v4  ;;  %v1528_v14 = vld [vmem:[#allocation2 + $0x11] ss:$2 sm:$0xff]  ;;  %v1073_v6 = vsel %vm916_vm1, %v1070_v58, %v1072_v7  ;;  %v3580_v50 = vld [vmem:[#allocation3 + $0x160] sm:$0xf] }
 0x13c   : > { %1517 = vst [vmem:[#allocation2 + $0x38] sm:$0xf] %v1509_v57  ;;  %v1040_v32 = vadd.f32 %v6785_v34, %v992_v9  ;;  %v6787_v54 = vrot.slane %v6786_v44, 2  ;;  %v3469_v31 = vor.u32 %v4117_v38, %v3468_v20  ;;  %v3473_v35 = vor.u32 %v4116_v8, %v3470_v45  ;;  %v4161_v18 = vld [vmem:[#allocation3 + $0x164] sm:$0xf0]  ;;  %v6788_v30 = vld [vmem:[#allocation36_spill] sm:$0xff] }
 0x13d   : > { %v1041_v3 = vadd.f32 %v5926_v62, %v993_v22  ;;  %v1235_v23 = vadd.f32 %v5970_v27, %v1187_v0  ;;  %1774 = vmatpush.bf16.msra.mxu2 %v3477_v10  ;;  %v1526_v43 = vld [vmem:[#allocation2 + $0x1] ss:$2 sm:$0xff]  ;;  %v1520_v15 = vld [vmem:[#allocation2 + $0x10] ss:$2 sm:$0xff]  ;;  %v3589_v16 = vor.u32 %v4163_v21, %v3588_v51  ;;  %v3593_v36 = vor.u32 %v4162_v17, %v3590_v13  ;;  %v1518_v27 = vld [vmem:[#allocation2] ss:$2 sm:$0xff] }
 0x13e   : > { %v1071_v41 = vsel %vm916_vm1, %v6787_v54, %v1070_v58  ;;  %1793 = vmatpush.bf16.msra.mxu3 %v3481_v24  ;;  %1657 = vmatpush.bf16.msra.mxu0 %v3405_v33  ;;  %v1551_v52 = vpack.c.bf16 %v1528_v14, %v1526_v43  ;;  %v4160_v7 = vld [vmem:[#allocation3 + $0x164] sm:$0xf]  ;;  %v3582_v58 = vld [vmem:[#allocation3 + $0x168] sm:$0xf0]  ;;  %v6789_v19 = vld [vmem:[#allocation38_spill] sm:$0xff]  ;;  %v1263_v4 = vrot.slane %v5991_v25, 3  ;;  %v3581_v20 = vor.u32 %v4161_v18, %v3580_v50 }
 0x13f   : > { %v1088_v55 = vadd.f32 %v1071_v41, %v1040_v32  ;;  %v1089_v62 = vadd.f32 %v1073_v6, %v1041_v3  ;;  %1676 = vmatpush.bf16.msra.mxu1 %v3409_v53  ;;  %v1283_v9 = vadd.f32 %v1268_v2, %v1235_v23  ;;  %v6790_v56 = vrot.slane %v5832_v48, 4  ;;  %v6791_v10 = vld [vmem:[#allocation53_spill] sm:$0xff]  ;;  %v3572_v2 = vld [vmem:[#allocation3 + $0x150] sm:$0xf]  ;;  %v4159_v45 = vld [vmem:[#allocation3 + $0x154] sm:$0xf0] }
 0x140   : > { %v1410_v22 = vrot.slane %v5899_v1, 4  ;;  %v6017_v8 = vpack.c.bf16 %v1520_v15, %v1518_v27  ;;  %v6792_v34 = vld [vmem:[#allocation48_spill] sm:$0xff]  ;;  %v6793_v32 = vld [vmem:[#allocation51_spill] sm:$0xff]  ;;  %v3585_v11 = vor.u32 %v4160_v7, %v3582_v58  ;;  %v1458_v21 = vrot.slane %v5980_v5, 4  ;;  %v4158_v54 = vld [vmem:[#allocation3 + $0x154] sm:$0xf] }
 0x141   : > { %v1137_v57 = vadd.f32 %v6788_v30, %v1088_v55  ;;  %v1138_v63 = vadd.f32 %v6789_v19, %v1089_v62  ;;  %v1365_v37 = vsel %vm1302_vm3, %v6790_v56, %v1364_v61  ;;  %v1360_v25 = vrot.slane %v6792_v34, 4  ;;  %1775 = vmatpush.bf16.msra.mxu2 %v3469_v31  ;;  %v6794_v61 = vld [vmem:[#allocation29_spill] sm:$0xff]  ;;  %v6796_v0 = vld [vmem:[#allocation63_spill] sm:$0xff]  ;;  %1658 = vmatmul.bf16.vlgmr.msra.gmra.mxu0 %v1551_v52  ;;  %v3564_v5 = vld [vmem:[#allocation3 + $0x140] sm:$0xf] }
 0x142   : > { %1921 = vmatpush.bf16.msrb.mxu0 %v3589_v16  ;;  %v1332_v24 = vadd.f32 %v6793_v32, %v1283_v9  ;;  %1794 = vmatpush.bf16.msra.mxu3 %v3473_v35  ;;  %v6795_v1 = vrot.slane %v6794_v61, 3  ;;  %v1436_v44 = vmul.f32 %v6648_v47, %v5875_v40  ;;  %v6797_v14 = vld [vmem:[#allocation19_spill] sm:$0xff]  ;;  %v3573_v13 = vor.u32 %v4159_v45, %v3572_v2  ;;  %v4157_v6 = vld [vmem:[#allocation3 + $0x144] sm:$0xf0]  ;;  %v6803_v62 = vld [vmem:[#allocation40_spill] sm:$0xff] }
 0x143   : > { %v1185_v38 = vadd.f32 %v6791_v10, %v1137_v57  ;;  %1940 = vmatpush.bf16.msrb.mxu1 %v3593_v36  ;;  %v1186_v33 = vadd.f32 %v5883_v39, %v1138_v63  ;;  %v3574_v39 = vld [vmem:[#allocation3 + $0x158] sm:$0xf0]  ;;  %v6798_v17 = vrot.slane %v6797_v14, 3  ;;  %v1266_v47 = vsel %vm1109_vm2, %v1263_v4, %v1265_v42  ;;  %v4156_v15 = vld [vmem:[#allocation3 + $0x144] sm:$0xf]  ;;  %v6804_v57 = vld [vmem:[#allocation74_spill] sm:$0xff] }
 0x144   : > { %v1218_v51 = vsel %vm1109_vm2, %v6795_v1, %v1217_v26  ;;  %1677 = vmatmul.bf16.vlgmr.msra.gmra.mxu1 %v1551_v52  ;;  %v1380_v41 = vadd.f32 %v1365_v37, %v1332_v24  ;;  %v1413_v26 = vsel %vm1302_vm3, %v1410_v22, %v1412_v12  ;;  %1776 = vmatmul.bf16.vlgmr.msra.gmra.mxu2 %v6017_v8  ;;  %v6799_v55 = vld [vmem:[#allocation43_spill] sm:$0xff]  ;;  %v6801_v23 = vrot.slane %v6800_v60, 4  ;;  %v3566_v16 = vld [vmem:[#allocation3 + $0x148] sm:$0xf0]  ;;  %v3556_v63 = vld [vmem:[#allocation3 + $0x130] sm:$0xf] }
 0x145   : > { %v1233_v3 = vadd.f32 %v6796_v0, %v1185_v38  ;;  %v1234_v53 = vadd.f32 %v1218_v51, %v1186_v33  ;;  %v1264_v46 = vsel %vm1109_vm2, %v6798_v17, %v1263_v4  ;;  %1795 = vmatmul.bf16.vlgmr.msra.gmra.mxu3 %v6017_v8  ;;  %v1408_v31 = vrot.slane %v6799_v55, 4  ;;  %v4155_v4 = vld [vmem:[#allocation3 + $0x134] sm:$0xf0]  ;;  %v4154_v45 = vld [vmem:[#allocation3 + $0x134] sm:$0xf]  ;;  %v6808_v32 = vld [vmem:[#allocation20_spill] sm:$0xff] }
 0x146   : > { %1922 = vmatpush.bf16.msrb.mxu0 %v3581_v20  ;;  %v1428_v35 = vadd.f32 %v1413_v26, %v1380_v41  ;;  %v3577_v18 = vor.u32 %v4158_v54, %v3574_v39  ;;  %v1361_v12 = vsel %vm1302_vm3, %v6801_v23, %v1360_v25  ;;  %v6802_v49 = vrot.slane %v5815_v29, 4  ;;  %v6806_v29 = vld [vmem:[#allocation71_spill] sm:$0xff]  ;;  %v3548_v51 = vld [vmem:[#allocation3 + $0x120] sm:$0xf]  ;;  %v4153_v0 = vld [vmem:[#allocation3 + $0x124] sm:$0xf0] }
 0x147   : > { %v1281_v40 = vadd.f32 %v1264_v46, %v1233_v3  ;;  %v1282_v50 = vadd.f32 %v1266_v47, %v1234_v53  ;;  %1941 = vmatpush.bf16.msrb.mxu1 %v3585_v11  ;;  %v1456_v36 = vrot.slane %v1436_v44, 4  ;;  %v3565_v7 = vor.u32 %v4157_v6, %v3564_v5  ;;  %v3558_v34 = vld [vmem:[#allocation3 + $0x138] sm:$0xf0]  ;;  %v4152_v39 = vld [vmem:[#allocation3 + $0x124] sm:$0xf] }
 0x148   : > { %v1461_v42 = vsel %vm1302_vm3, %v1458_v21, %v6802_v49  ;;  %v6805_v58 = vmov %v6790_v56  ;;  %v6807_v27 = vrot.slane %v6806_v29, 4  ;;  %v3569_v10 = vor.u32 %v4156_v15, %v3566_v16  ;;  %v3550_v41 = vld [vmem:[#allocation3 + $0x128] sm:$0xf0]  ;;  %v3540_v46 = vld [vmem:[#allocation3 + $0x110] sm:$0xf] }
 0x149   : > { %v1330_v43 = vadd.f32 %v6803_v62, %v1281_v40  ;;  %v1476_v30 = vadd.f32 %v1461_v42, %v1428_v35  ;;  %v1331_v52 = vadd.f32 %v6804_v57, %v1282_v50  ;;  %v1363_v9 = vsel %vm1302_vm3, %v1360_v25, %v6805_v58  ;;  %v4150_v40 = vld [vmem:[#allocation3 + $0x114] sm:$0xf]  ;;  %v3542_v5 = vld [vmem:[#allocation3 + $0x118] sm:$0xf0]  ;;  %v4149_v35 = vld [vmem:[#allocation3 + $0x104] sm:$0xf0] }
 0x14a   : > { %1923 = vmatpush.bf16.msrb.mxu0 %v3573_v13  ;;  %v1409_v20 = vsel %vm1302_vm3, %v6807_v27, %v1408_v31  ;;  %v1411_v38 = vsel %vm1302_vm3, %v1408_v31, %v1410_v22  ;;  %v6809_v24 = vrot.slane %v6808_v32, 4  ;;  %v3557_v11 = vor.u32 %v4155_v4, %v3556_v63  ;;  %v3532_v31 = vld [vmem:[#allocation3 + $0x100] sm:$0xf]  ;;  %v4148_v50 = vld [vmem:[#allocation3 + $0x104] sm:$0xf] }
 0x14b   : > { %v1378_v19 = vadd.f32 %v1361_v12, %v1330_v43  ;;  %v1488_v56 = vmul.f32 %v5497_v28, %v1476_v30  ;;  %v1379_v37 = vadd.f32 %v1363_v9, %v1331_v52  ;;  %1942 = vmatpush.bf16.msrb.mxu1 %v3577_v18  ;;  %v1459_v61 = vsel %vm1302_vm3, %v1456_v36, %v1458_v21  ;;  %v4151_v21 = vld [vmem:[#allocation3 + $0x114] sm:$0xf0]  ;;  %v3534_v18 = vld [vmem:[#allocation3 + $0x108] sm:$0xf0]  ;;  %v3718_v32 = vld [vmem:[#allocation6 + $0x1f8] sm:$0xf0] }
 0x14c   : > { %v1457_v33 = vsel %vm1302_vm3, %v6809_v24, %v1456_v36  ;;  %v3561_v22 = vor.u32 %v4154_v45, %v3558_v34  ;;  %v3549_v14 = vor.u32 %v4153_v0, %v3548_v51  ;;  %v3553_v26 = vor.u32 %v4152_v39, %v3550_v41  ;;  %v3654_v45 = vld [vmem:[#allocation6 + $0x178] sm:$0xf0]  ;;  %v3644_v24 = vld [vmem:[#allocation6 + $0x160] sm:$0xf]  ;;  %v3710_v41 = vld [vmem:[#allocation6 + $0x1e8] sm:$0xf0] }
 0x14d   : > { %v1426_v2 = vadd.f32 %v1409_v20, %v1378_v19  ;;  %v1500_v48 = vadd.f32 %v5516_v59, %v1488_v56  ;;  %v1427_v25 = vadd.f32 %v1411_v38, %v1379_v37  ;;  %v3541_v55 = vor.u32 %v4151_v21, %v3540_v46  ;;  %v3652_v20 = vld [vmem:[#allocation6 + $0x170] sm:$0xf]  ;;  %v4211_v56 = vld [vmem:[#allocation6 + $0x174] sm:$0xf0] }
 0x14e   : > { %1924 = vmatpush.bf16.msrb.mxu0 %v3565_v7  ;;  %v3533_v60 = vor.u32 %v4149_v35, %v3532_v31  ;;  %v1827_v15 = vshll.u32 %v6017_v8, 16  ;;  %v1825_v57 = vshrl.u32 %v6017_v8, 16  ;;  %v3716_v37 = vld [vmem:[#allocation6 + $0x1f0] sm:$0xf]  ;;  %v4227_v38 = vld [vmem:[#allocation6 + $0x1f4] sm:$0xf0] }
 0x14f   : > { %v1474_v1 = vadd.f32 %v1457_v33, %v1426_v2  ;;  %v1508_v3 = vmax.f32 %v1500_v48, 0.0  ;;  %v1475_v44 = vadd.f32 %v1459_v61, %v1427_v25  ;;  %1943 = vmatpush.bf16.msrb.mxu1 %v3569_v10  ;;  %v3653_v10 = vor.u32 %v4211_v56, %v3652_v20  ;;  %v4210_v2 = vld [vmem:[#allocation6 + $0x174] sm:$0xf]  ;;  %v3708_v61 = vld [vmem:[#allocation6 + $0x1e0] sm:$0xf] }
 0x150   : > { %v1829_v30 = vrot.slane %v1827_v15, 1  ;;  %v3717_v34 = vor.u32 %v4227_v38, %v3716_v37  ;;  %v3657_v48 = vor.u32 %v4210_v2, %v3654_v45  ;;  %v4226_v25 = vld [vmem:[#allocation6 + $0x1f4] sm:$0xf]  ;;  %v4207_v46 = vld [vmem:[#allocation6 + $0x154] sm:$0xf0] }
 0x151   : > { %v1486_v54 = vmul.f32 %v5497_v28, %v1474_v1  ;;  %1516 = vst [vmem:[#allocation2 + $0x30] sm:$0xff] %v1508_v3  ;;  %v1487_v53 = vmul.f32 %v5497_v28, %v1475_v44  ;;  %v3545_v28 = vor.u32 %v4150_v40, %v3542_v5  ;;  %2266 = vmatpush.bf16.msrb.mxu2 %v3653_v10  ;;  %v4225_v1 = vld [vmem:[#allocation6 + $0x1e4] sm:$0xf0]  ;;  %v4208_v44 = vld [vmem:[#allocation6 + $0x164] sm:$0xf] }
 0x152   : > { %1925 = vmatpush.bf16.msrb.mxu0 %v3557_v11  ;;  %v1830_v36 = vor.u32 %v1829_v30, %v1825_v57  ;;  %v3721_v33 = vor.u32 %v4226_v25, %v3718_v32  ;;  %v4209_v11 = vld [vmem:[#allocation6 + $0x164] sm:$0xf0]  ;;  %2285 = vmatpush.bf16.msrb.mxu3 %v3717_v34  ;;  %v3709_v3 = vor.u32 %v4225_v1, %v3708_v61  ;;  %v3700_v21 = vld [vmem:[#allocation6 + $0x1d0] sm:$0xf]  ;;  %v4223_v40 = vld [vmem:[#allocation6 + $0x1d4] sm:$0xf0] }
 0x153   : > { %v1498_v17 = vadd.f32 %v5516_v59, %v1486_v54  ;;  %v1499_v13 = vadd.f32 %v5516_v59, %v1487_v53  ;;  %1944 = vmatpush.bf16.msrb.mxu1 %v3561_v22  ;;  %v3537_v59 = vor.u32 %v4148_v50, %v3534_v18  ;;  %v3645_v0 = vor.u32 %v4209_v11, %v3644_v24  ;;  %v3646_v22 = vld [vmem:[#allocation6 + $0x168] sm:$0xf0]  ;;  %v4224_v54 = vld [vmem:[#allocation6 + $0x1e4] sm:$0xf]  ;;  %v4206_v5 = vld [vmem:[#allocation6 + $0x154] sm:$0xf] }
 0x154   : > { %v3649_v39 = vor.u32 %v4208_v44, %v3646_v22  ;;  %v4222_v35 = vld [vmem:[#allocation6 + $0x1d4] sm:$0xf]  ;;  %v3628_v50 = vld [vmem:[#allocation6 + $0x140] sm:$0xf]  ;;  %v3620_v37 = vld [vmem:[#allocation6 + $0x130] sm:$0xf] }
 0x155   : > { %v1506_v47 = vmax.f32 %v1498_v17, 0.0  ;;  %v1507_v6 = vmax.f32 %v1499_v13, 0.0  ;;  %v3636_v17 = vld [vmem:[#allocation6 + $0x150] sm:$0xf]  ;;  %2267 = vmatpush.bf16.msrb.mxu2 %v3645_v0  ;;  %v1967_v15 = vld [vmem:[%s6409_s5] sm:$0x3] }
 0x156   : > { %1926 = vmatpush.bf16.msrb.mxu0 %v3549_v14  ;;  %v3713_v14 = vor.u32 %v4224_v54, %v3710_v41  ;;  %2286 = vmatpush.bf16.msrb.mxu3 %v3709_v3  ;;  %v4203_v10 = vld [vmem:[#allocation6 + $0x134] sm:$0xf0]  ;;  %v3684_v38 = vld [vmem:[#allocation6 + $0x1b0] sm:$0xf]  ;;  %v4202_v34 = vld [vmem:[#allocation6 + $0x134] sm:$0xf] }
 0x157   : > { %1514 = vst [vmem:[#allocation2 + $0x20] sm:$0xff] %v1506_v47  ;;  %1945 = vmatpush.bf16.msrb.mxu1 %v3553_v26  ;;  %v3637_v47 = vor.u32 %v4207_v46, %v3636_v17  ;;  %v3621_v2 = vor.u32 %v4203_v10, %v3620_v37  ;;  %v4219_v45 = vld [vmem:[#allocation6 + $0x1b4] sm:$0xf0]  ;;  %v4218_v24 = vld [vmem:[#allocation6 + $0x1b4] sm:$0xf] }
 0x158   : > { %1515 = vst [vmem:[#allocation2 + $0x28] sm:$0xff] %v1507_v6  ;;  %v1532_v23 = vld [vmem:[#allocation2 + $0x31] ss:$2 sm:$0x3f]  ;;  %v3638_v6 = vld [vmem:[#allocation6 + $0x158] sm:$0xf0]  ;;  %v3685_v25 = vor.u32 %v4219_v45, %v3684_v38 }
 0x159   : > { %v1524_v12 = vld [vmem:[#allocation2 + $0x30] ss:$2 sm:$0x3f]  ;;  %v3641_v31 = vor.u32 %v4206_v5, %v3638_v6  ;;  %2268 = vmatpush.bf16.msrb.mxu2 %v3637_v47  ;;  %v3612_v11 = vld [vmem:[#allocation6 + $0x120] sm:$0xf] }
 0x15a   : > { %1927 = vmatpush.bf16.msrb.mxu0 %v3541_v55  ;;  %v3701_v55 = vor.u32 %v4223_v40, %v3700_v21  ;;  %v4201_v0 = vld [vmem:[#allocation6 + $0x124] sm:$0xf0]  ;;  %v3676_v3 = vld [vmem:[#allocation6 + $0x1a0] sm:$0xf]  ;;  %v4200_v41 = vld [vmem:[#allocation6 + $0x124] sm:$0xf] }
 0x15b   : > { %1946 = vmatpush.bf16.msrb.mxu1 %v3545_v28  ;;  %v3702_v28 = vld [vmem:[#allocation6 + $0x1d8] sm:$0xf0]  ;;  %v4217_v44 = vld [vmem:[#allocation6 + $0x1a4] sm:$0xf0]  ;;  %v4216_v17 = vld [vmem:[#allocation6 + $0x1a4] sm:$0xf] }
 0x15c   : > { %v3705_v18 = vor.u32 %v4222_v35, %v3702_v28  ;;  %2287 = vmatpush.bf16.msrb.mxu3 %v3701_v55  ;;  %v3678_v47 = vld [vmem:[#allocation6 + $0x1a8] sm:$0xf0]  ;;  %v3604_v40 = vld [vmem:[#allocation6 + $0x110] sm:$0xf]  ;;  %v4199_v5 = vld [vmem:[#allocation6 + $0x114] sm:$0xf0] }
 0x15d   : > { %v4215_v35 = vld [vmem:[#allocation6 + $0x194] sm:$0xf0]  ;;  %v3598_v10 = vld [vmem:[#allocation6 + $0x108] sm:$0xf0]  ;;  %v4212_v38 = vld [vmem:[#allocation6 + $0x184] sm:$0xf] }
 0x15e   : > { %1928 = vmatpush.bf16.msrb.mxu0 %v3533_v60  ;;  %v4205_v60 = vld [vmem:[#allocation6 + $0x144] sm:$0xf0] }
 0x15f   : > { %v1530_v49 = vld [vmem:[#allocation2 + $0x21] ss:$2 sm:$0xff]  ;;  %v1522_v42 = vld [vmem:[#allocation2 + $0x20] ss:$2 sm:$0xff]  ;;  %1947 = vmatpush.bf16.msrb.mxu1 %v3537_v59 }
 0x160   : > { %v1552_v62 = vpack.c.bf16 %v1532_v23, %v1530_v49  ;;  %v1534_v43 = vpack.c.bf16 %v1524_v12, %v1522_v42  ;;  %v3692_v59 = vld [vmem:[#allocation6 + $0x1c0] sm:$0xf]  ;;  %v4221_v23 = vld [vmem:[#allocation6 + $0x1c4] sm:$0xf0]  ;;  %v4204_v12 = vld [vmem:[#allocation6 + $0x144] sm:$0xf] }
 0x161   : > { %v3630_v49 = vld [vmem:[#allocation6 + $0x148] sm:$0xf0]  ;;  %v4220_v42 = vld [vmem:[#allocation6 + $0x1c4] sm:$0xf]  ;;  %v3693_v30 = vor.u32 %v4221_v23, %v3692_v59  ;;  %v3606_v59 = vld [vmem:[#allocation6 + $0x118] sm:$0xf0] }
 0x162   : > { %1663 = vmatmul.bf16.gmra.mxu0 %v1552_v62  ;;  %1682 = vmatmul.bf16.gmra.mxu1 %v1552_v62  ;;  %v1832_v16 = vshll.u32 %v1534_v43, 16  ;;  %v1836_v58 = vshrl.u32 %v1534_v43, 16  ;;  %v3629_v62 = vor.u32 %v4205_v60, %v3628_v50  ;;  %v3633_v57 = vor.u32 %v4204_v12, %v3630_v49  ;;  %v4198_v60 = vld [vmem:[#allocation6 + $0x114] sm:$0xf] }
 0x163   : > { %1781 = vmatmul.bf16.gmra.mxu2 %v1534_v43  ;;  %1800 = vmatmul.bf16.gmra.mxu3 %v1534_v43  ;;  %v3694_v43 = vld [vmem:[#allocation6 + $0x1c8] sm:$0xf0]  ;;  %v4214_v23 = vld [vmem:[#allocation6 + $0x194] sm:$0xf] }
 0x164   : > { %v1834_v52 = vrot.slane %v1832_v16, 1  ;;  %2304 = vmatpush.bf16.msra.mxu0 %v3657_v48  ;;  %2323 = vmatpush.bf16.msra.mxu1 %v3721_v33  ;;  %v1981_v16 = vld [vmem:[%s6410_s6] sm:$0x3]  ;;  %v3622_v48 = vld [vmem:[#allocation6 + $0x138] sm:$0xf0] }
 0x165   : > { %2269 = vmatpush.bf16.msrb.mxu2 %v3629_v62  ;;  %2288 = vmatpush.bf16.msrb.mxu3 %v3693_v30  ;;  %v3625_v32 = vor.u32 %v4202_v34, %v3622_v48  ;;  %v3686_v33 = vld [vmem:[#allocation6 + $0x1b8] sm:$0xf0]  ;;  %v3609_v62 = vor.u32 %v4198_v60, %v3606_v59  ;;  %v3780_v34 = vld [vmem:[#allocation6 + $0x70] sm:$0xf]  ;;  %v4179_v48 = vld [vmem:[#allocation6 + $0x74] sm:$0xf0] }
 0x166   : > { %v1835_v7 = vsel %vm1823_vm4, %v1830_v36, %v1834_v52  ;;  %v1838_v9 = vor.u32 %v1836_v58, %v1834_v52  ;;  %v3697_v52 = vor.u32 %v4220_v42, %v3694_v43  ;;  %v6097_v58 = vperm.slane %v1967_v15, 0  ;;  %v3670_v43 = vld [vmem:[#allocation6 + $0x198] sm:$0xf0] }
 0x167   : > { %v3689_v1 = vor.u32 %v4218_v24, %v3686_v33  ;;  %v4195_v24 = vld [vmem:[#allocation6 + $0xf4] sm:$0xf0]  ;;  %v4178_v33 = vld [vmem:[#allocation6 + $0x74] sm:$0xf] }
 0x168   : > { %2305 = vmatpush.bf16.msra.mxu0 %v3649_v39  ;;  %2324 = vmatpush.bf16.msra.mxu1 %v3713_v14  ;;  %v3613_v39 = vor.u32 %v4201_v0, %v3612_v11  ;;  %v3614_v14 = vld [vmem:[#allocation6 + $0x128] sm:$0xf0]  ;;  %v3782_v11 = vld [vmem:[#allocation6 + $0x78] sm:$0xf0] }
 0x169   : > { %2270 = vmatpush.bf16.msrb.mxu2 %v3621_v2  ;;  %2289 = vmatpush.bf16.msrb.mxu3 %v3685_v25  ;;  %v3662_v2 = vld [vmem:[#allocation6 + $0x188] sm:$0xf0]  ;;  %v3844_v25 = vld [vmem:[#allocation6 + $0xf0] sm:$0xf] }
 0x16c   : > { %2306 = vmatpush.bf16.msra.mxu0 %v3641_v31  ;;  %2325 = vmatpush.bf16.msra.mxu1 %v3705_v18  ;;  %v3668_v31 = vld [vmem:[#allocation6 + $0x190] sm:$0xf] }
 0x16d   : > { %2271 = vmatpush.bf16.msrb.mxu2 %v3613_v39  ;;  %v3669_v18 = vor.u32 %v4215_v35, %v3668_v31  ;;  %v4176_v31 = vld [vmem:[#allocation6 + $0x64] sm:$0xf]  ;;  %v3774_v35 = vld [vmem:[#allocation6 + $0x68] sm:$0xf0] }
 0x170   : > { %2307 = vmatpush.bf16.msra.mxu0 %v3633_v57  ;;  %2326 = vmatpush.bf16.msra.mxu1 %v3697_v52  ;;  %v3673_v57 = vor.u32 %v4214_v23, %v3670_v43  ;;  %v3660_v52 = vld [vmem:[#allocation6 + $0x180] sm:$0xf]  ;;  %v3777_v43 = vor.u32 %v4176_v31, %v3774_v35  ;;  %v4170_v31 = vld [vmem:[#allocation6 + $0x34] sm:$0xf] }
 0x172   : > { %1929 = vmatmul.bf16.vlgmr.msrb.gmra.mxu0 %v1835_v7  ;;  %1948 = vmatmul.bf16.vlgmr.msrb.gmra.mxu1 %v1835_v7 }
 0x174   : > { %2308 = vmatpush.bf16.msra.mxu0 %v3625_v32  ;;  %2327 = vmatpush.bf16.msra.mxu1 %v3689_v1 }
 0x182   : > { %1934 = vmatmul.bf16.gmra.mxu0 %v1838_v9  ;;  %1953 = vmatmul.bf16.gmra.mxu1 %v1838_v9  ;;  %v6099_v9 = vperm.slane %v1981_v16, 0 }
 0x1be   : > { %v6071_v19 = vpop.f32.mrf.mxu0 }
 0x1c1   : > { %v6073_v63 = vpop.f32.mrf.mxu1 }
 0x1c6   : > { %v6075_v4 = vpop.f32.mrf.mxu0 }
 0x1c7   : > { %v6083_v51 = vpop.f32.mrf.mxu2 }
 0x1c8   : > { %v6085_v53 = vpop.f32.mrf.mxu3  ;;  %v1778_v61 = vadd.f32 %v6083_v51, %v6071_v19  ;;  %v3677_v19 = vor.u32 %v4217_v44, %v3676_v3  ;;  %v3617_v51 = vor.u32 %v4200_v41, %v3614_v14  ;;  %v3665_v3 = vor.u32 %v4212_v38, %v3662_v2  ;;  %v4194_v44 = vld [vmem:[#allocation6 + $0xf4] sm:$0xf] }
 0x1c9   : > { %v6077_v29 = vpop.f32.mrf.mxu1  ;;  %v1797_v22 = vadd.f32 %v6085_v53, %v6073_v63  ;;  %v6107_v63 = vperm.slane %v1967_v15, 1  ;;  %v3681_v53 = vor.u32 %v4216_v17, %v3678_v47  ;;  %v3596_v15 = vld [vmem:[#allocation6 + $0x100] sm:$0xf]  ;;  %v3781_v41 = vor.u32 %v4179_v48, %v3780_v34 }
 0x1ca   : > { %2290 = vmatpush.bf16.msrb.mxu3 %v3677_v19  ;;  %2309 = vmatpush.bf16.msra.mxu0 %v3617_v51  ;;  %v3845_v14 = vor.u32 %v4195_v24, %v3844_v25  ;;  %v3772_v17 = vld [vmem:[#allocation6 + $0x60] sm:$0xf]  ;;  %v4173_v25 = vld [vmem:[#allocation6 + $0x44] sm:$0xf0] }
 0x1cb   : > { %2328 = vmatpush.bf16.msra.mxu1 %v3681_v53  ;;  %v4193_v53 = vld [vmem:[#allocation6 + $0xe4] sm:$0xf0]  ;;  %v3756_v48 = vld [vmem:[#allocation6 + $0x40] sm:$0xf] }
 0x1ce   : > { %2291 = vmatpush.bf16.msrb.mxu3 %v3669_v18  ;;  %2310 = vmatpush.bf16.msra.mxu0 %v3609_v62  ;;  %v4175_v62 = vld [vmem:[#allocation6 + $0x54] sm:$0xf0] }
 0x1cf   : > { %v1779_v36 = vpop.f32.mrf.mxu2  ;;  %2329 = vmatpush.bf16.msra.mxu1 %v3673_v57  ;;  %v4174_v57 = vld [vmem:[#allocation6 + $0x54] sm:$0xf] }
 0x1d0   : > { %v1798_v56 = vpop.f32.mrf.mxu3  ;;  %v1780_v54 = vadd.f32 %v1779_v36, %v6075_v4  ;;  %v6109_v4 = vperm.slane %v1981_v16, 1  ;;  %v4197_v16 = vld [vmem:[#allocation6 + $0x104] sm:$0xf0] }
 0x1d1   : > { %v1799_v46 = vadd.f32 %v1798_v56, %v6077_v29  ;;  %v3605_v29 = vor.u32 %v4199_v5, %v3604_v40  ;;  %v4213_v36 = vld [vmem:[#allocation6 + $0x184] sm:$0xf0]  ;;  %v3597_v45 = vor.u32 %v4197_v16, %v3596_v15  ;;  %v3785_v40 = vor.u32 %v4178_v33, %v3782_v11  ;;  %v3828_v16 = vld [vmem:[#allocation6 + $0xd0] sm:$0xf]  ;;  %v3820_v33 = vld [vmem:[#allocation6 + $0xc0] sm:$0xf] }
 0x1d2   : > { %v3661_v32 = vor.u32 %v4213_v36, %v3660_v52  ;;  %v3766_v36 = vld [vmem:[#allocation6 + $0x58] sm:$0xf0]  ;;  %v4189_v11 = vld [vmem:[#allocation6 + $0xc4] sm:$0xf0] }
 0x1d3   : > { %2272 = vmatpush.bf16.msrb.mxu2 %v3605_v29  ;;  %2330 = vmatpush.bf16.msra.mxu1 %v3665_v3  ;;  %v3769_v24 = vor.u32 %v4174_v57, %v3766_v36  ;;  %v3758_v3 = vld [vmem:[#allocation6 + $0x48] sm:$0xf0]  ;;  %v4168_v57 = vld [vmem:[#allocation6 + $0x24] sm:$0xf] }
 0x1d4   : > { %2292 = vmatpush.bf16.msrb.mxu3 %v3661_v32 }
 0x1d7   : > { %2273 = vmatpush.bf16.msrb.mxu2 %v3597_v45 }
 0x1d8   : > { %2521 = vmatpush.bf16.msra.mxu3 %v3845_v14  ;;  %v3757_v14 = vor.u32 %v4173_v25, %v3756_v48 }
 0x1db   : > { %2502 = vmatpush.bf16.msra.mxu2 %v3781_v41 }
 0x1df   : > { %v6079_v8 = vpop.f32.mrf.mxu0  ;;  %v6081_v27 = vpop.f32.mrf.mxu1 }
 0x1e6   : > { %v1782_v6 = vpop.f32.mrf.mxu2  ;;  %v1801_v12 = vpop.f32.mrf.mxu3 }
 0x1e7   : > { %v6087_v13 = vpop.f32.mrf.mxu0  ;;  %v6089_v26 = vpop.f32.mrf.mxu1  ;;  %v1802_v19 = vadd.f32 %v1801_v12, %v6081_v27 }
 0x1ee   : > { %v1784_v29 = vpop.f32.mrf.mxu2 }
 0x1ef   : > { %v1930_v7 = vpop.f32.mrf.mxu0  ;;  %v1949_v20 = vpop.f32.mrf.mxu1  ;;  %v1785_v52 = vadd.f32 %v1784_v29, %v6087_v13 }
 0x1f0   : > { %v1959_v21 = vadd.f32 %v1930_v7, %v1778_v61  ;;  %v1960_v55 = vadd.f32 %v1949_v20, %v1797_v22  ;;  %v4196_v7 = vld [vmem:[#allocation6 + $0x104] sm:$0xf]  ;;  %v3846_v22 = vld [vmem:[#allocation6 + $0xf8] sm:$0xf0] }
 0x1f1   : > { %v3601_v0 = vor.u32 %v4196_v7, %v3598_v10  ;;  %v3849_v5 = vor.u32 %v4194_v44, %v3846_v22  ;;  %v4190_v7 = vld [vmem:[#allocation6 + $0xd4] sm:$0xf]  ;;  %v4188_v44 = vld [vmem:[#allocation6 + $0xc4] sm:$0xf]  ;;  %v3822_v22 = vld [vmem:[#allocation6 + $0xc8] sm:$0xf0] }
 0x1f2   : > { %v1973_v30 = vmul.f32 %v6097_v58, %v1959_v21  ;;  %v1974_v20 = vmul.f32 %v6107_v63, %v1960_v55  ;;  %v1783_v21 = vadd.f32 %v1782_v6, %v6079_v8  ;;  %v3836_v55 = vld [vmem:[#allocation6 + $0xe0] sm:$0xf]  ;;  %v1803_v8 = vpop.f32.mrf.mxu3 }
 0x1f3   : > { %2311 = vmatpush.bf16.msra.mxu0 %v3601_v0  ;;  %2559 = vmatpush.bf16.msrb.mxu1 %v3849_v5  ;;  %v3825_v5 = vor.u32 %v4188_v44, %v3822_v22  ;;  %v3734_v44 = vld [vmem:[#allocation6 + $0x18] sm:$0xf0]  ;;  %v4182_v22 = vld [vmem:[#allocation6 + $0x94] sm:$0xf] }
 0x1f4   : > { %v1987_v61 = vadd.f32 %v6099_v9, %v1973_v30  ;;  %v4191_v30 = vld [vmem:[#allocation6 + $0xd4] sm:$0xf0] }
 0x1f5   : > { %v3829_v34 = vor.u32 %v4191_v30, %v3828_v16  ;;  %v3804_v16 = vld [vmem:[#allocation6 + $0xa0] sm:$0xf]  ;;  %v4185_v30 = vld [vmem:[#allocation6 + $0xa4] sm:$0xf0] }
 0x1f6   : > { %v1995_v18 = vmax.f32 %v1987_v61, 0.0  ;;  %v4172_v61 = vld [vmem:[#allocation6 + $0x44] sm:$0xf] }
 0x1f7   : > { %v1932_v28 = vpop.f32.mrf.mxu0  ;;  %v1951_v50 = vpop.f32.mrf.mxu1  ;;  %2540 = vmatpush.bf16.msrb.mxu0 %v3785_v40  ;;  %v3761_v40 = vor.u32 %v4172_v61, %v3758_v3  ;;  %v4166_v3 = vld [vmem:[#allocation6 + $0x14] sm:$0xf] }
 0x1f8   : > { %v1961_v49 = vadd.f32 %v1932_v28, %v1780_v54  ;;  %v1962_v42 = vadd.f32 %v1951_v50, %v1799_v46  ;;  %v1988_v54 = vadd.f32 %v6109_v4, %v1974_v20  ;;  %v4177_v46 = vld [vmem:[#allocation6 + $0x64] sm:$0xf0]  ;;  %v4192_v28 = vld [vmem:[#allocation6 + $0xe4] sm:$0xf]  ;;  %v3838_v50 = vld [vmem:[#allocation6 + $0xe8] sm:$0xf0] }
 0x1f9   : > { %v3773_v12 = vor.u32 %v4177_v46, %v3772_v17  ;;  %v3841_v15 = vor.u32 %v4192_v28, %v3838_v50  ;;  %v3830_v20 = vld [vmem:[#allocation6 + $0xd8] sm:$0xf0] }
 0x1fa   : > { %v1975_v56 = vmul.f32 %v6097_v58, %v1961_v49  ;;  %v1976_v37 = vmul.f32 %v6107_v63, %v1962_v42  ;;  %v1996_v27 = vmax.f32 %v1988_v54, 0.0  ;;  %v3837_v49 = vor.u32 %v4193_v53, %v3836_v55  ;;  %v3764_v42 = vld [vmem:[#allocation6 + $0x50] sm:$0xf]  ;;  %v4187_v53 = vld [vmem:[#allocation6 + $0xb4] sm:$0xf0] }
 0x1fb   : > { %2503 = vmatpush.bf16.msra.mxu2 %v3773_v12  ;;  %v3765_v45 = vor.u32 %v4175_v62, %v3764_v42  ;;  %2541 = vmatpush.bf16.msrb.mxu0 %v3777_v43  ;;  %v3812_v55 = vld [vmem:[#allocation6 + $0xb0] sm:$0xf]  ;;  %v3750_v28 = vld [vmem:[#allocation6 + $0x38] sm:$0xf0] }
 0x1fc   : > { %v1989_v1 = vadd.f32 %v6099_v9, %v1975_v56  ;;  %v1990_v39 = vadd.f32 %v6109_v4, %v1976_v37  ;;  %v1804_v56 = vadd.f32 %v1803_v8, %v6089_v26  ;;  %2522 = vmatpush.bf16.msra.mxu3 %v3837_v49  ;;  %2560 = vmatpush.bf16.msrb.mxu1 %v3841_v15  ;;  %v3814_v50 = vld [vmem:[#allocation6 + $0xb8] sm:$0xf0]  ;;  %v4169_v49 = vld [vmem:[#allocation6 + $0x24] sm:$0xf0] }
 0x1fd   : > { %v3833_v26 = vor.u32 %v4190_v7, %v3830_v20  ;;  %v3813_v8 = vor.u32 %v4187_v53, %v3812_v55  ;;  %v3742_v20 = vld [vmem:[#allocation6 + $0x28] sm:$0xf0]  ;;  %v4180_v53 = vld [vmem:[#allocation6 + $0x84] sm:$0xf] }
 0x1fe   : > { %v1997_v60 = vmax.f32 %v1989_v1, 0.0  ;;  %v1998_v6 = vmax.f32 %v1990_v39, 0.0  ;;  %v3726_v55 = vld [vmem:[#allocation6 + $0x8] sm:$0xf0] }
 0x1ff   : > { %v1935_v51 = vpop.f32.mrf.mxu0  ;;  %v1954_v47 = vpop.f32.mrf.mxu1  ;;  %2504 = vmatpush.bf16.msra.mxu2 %v3765_v45  ;;  %2542 = vmatpush.bf16.msrb.mxu0 %v3769_v24  ;;  %v4167_v45 = vld [vmem:[#allocation6 + $0x14] sm:$0xf0]  ;;  %v3745_v24 = vor.u32 %v4168_v57, %v3742_v20 }
 0x200   : > { %v1963_v59 = vadd.f32 %v1935_v51, %v1783_v21  ;;  %v1964_v23 = vadd.f32 %v1954_v47, %v1802_v19  ;;  %v6123_v37 = vpack.c.bf16 %v1997_v60, %v1995_v18  ;;  %v6127_v2 = vpack.c.bf16 %v1998_v6, %v1996_v27  ;;  %2523 = vmatpush.bf16.msra.mxu3 %v3829_v34  ;;  %v3748_v51 = vld [vmem:[#allocation6 + $0x30] sm:$0xf]  ;;  %v4171_v47 = vld [vmem:[#allocation6 + $0x34] sm:$0xf0] }
 0x201   : > { %v3821_v19 = vor.u32 %v4189_v11, %v3820_v33  ;;  %2561 = vmatpush.bf16.msrb.mxu1 %v3833_v26  ;;  %v3796_v26 = vld [vmem:[#allocation6 + $0x90] sm:$0xf]  ;;  %v4183_v33 = vld [vmem:[#allocation6 + $0x94] sm:$0xf0] }
 0x202   : > { %v1977_v10 = vmul.f32 %v6097_v58, %v1963_v59  ;;  %v1978_v38 = vmul.f32 %v6107_v63, %v1964_v23  ;;  %v2075_v41 = vshll.u32 %v6123_v37, 16  ;;  %v2087_v21 = vshll.u32 %v6127_v2, 16 }
 0x203   : > { %2505 = vmatpush.bf16.msra.mxu2 %v3757_v14  ;;  %v3749_v23 = vor.u32 %v4171_v47, %v3748_v51  ;;  %v2073_v27 = vshrl.u32 %v6123_v37, 16  ;;  %v2085_v6 = vshrl.u32 %v6127_v2, 16  ;;  %2543 = vmatpush.bf16.msrb.mxu0 %v3761_v40  ;;  %v3908_v14 = vld [vmem:[#allocation6 + $0x270] sm:$0xf]  ;;  %v4181_v51 = vld [vmem:[#allocation6 + $0x84] sm:$0xf0] }
 0x204   : > { %v1991_v54 = vadd.f32 %v6099_v9, %v1977_v10  ;;  %v1992_v39 = vadd.f32 %v6109_v4, %v1978_v38  ;;  %2524 = vmatpush.bf16.msra.mxu3 %v3821_v19  ;;  %v2077_v43 = vrot.slane %v2075_v41, 1  ;;  %v2089_v15 = vrot.slane %v2087_v21, 1  ;;  %v3806_v10 = vld [vmem:[#allocation6 + $0xa8] sm:$0xf0]  ;;  %v3732_v38 = vld [vmem:[#allocation6 + $0x10] sm:$0xf] }
 0x205   : > { %2562 = vmatpush.bf16.msrb.mxu1 %v3825_v5  ;;  %v4165_v41 = vld [vmem:[#allocation6 + $0x4] sm:$0xf0]  ;;  %v3737_v21 = vor.u32 %v4166_v3, %v3734_v44  ;;  %v3788_v19 = vld [vmem:[#allocation6 + $0x80] sm:$0xf]  ;;  %v4164_v47 = vld [vmem:[#allocation6 + $0x4] sm:$0xf] }
 0x206   : > { %v1999_v29 = vmax.f32 %v1991_v54, 0.0  ;;  %v2000_v18 = vmax.f32 %v1992_v39, 0.0  ;;  %v2078_v34 = vor.u32 %v2077_v43, %v2073_v27  ;;  %v2090_v25 = vor.u32 %v2089_v15, %v2085_v6  ;;  %v3798_v54 = vld [vmem:[#allocation6 + $0x98] sm:$0xf0]  ;;  %v3724_v39 = vld [vmem:[#allocation6] sm:$0xf] }
 0x207   : > { %v1937_v13 = vpop.f32.mrf.mxu0  ;;  %v1956_v32 = vpop.f32.mrf.mxu1  ;;  %2506 = vmatpush.bf16.msra.mxu2 %v3749_v23  ;;  %v3801_v40 = vor.u32 %v4182_v22, %v3798_v54  ;;  %v3725_v5 = vor.u32 %v4165_v41, %v3724_v39  ;;  %v3900_v23 = vld [vmem:[#allocation6 + $0x260] sm:$0xf]  ;;  %v4257_v43 = vld [vmem:[#allocation6 + $0x2e4] sm:$0xf0]  ;;  %v2619_v57 = vrot.slane %v6127_v2, 1 }
 0x208   : > { %v1965_v1 = vadd.f32 %v1937_v13, %v1785_v52  ;;  %v1966_v0 = vadd.f32 %v1956_v32, %v1804_v56  ;;  %2525 = vmatpush.bf16.msra.mxu3 %v3813_v8  ;;  %v4184_v56 = vld [vmem:[#allocation6 + $0xa4] sm:$0xf]  ;;  %v3805_v32 = vor.u32 %v4185_v30, %v3804_v16  ;;  %v4241_v8 = vld [vmem:[#allocation6 + $0x264] sm:$0xf0]  ;;  %v2616_v30 = vrot.slane %v6123_v37, 1 }
 0x209   : > { %v3901_v16 = vor.u32 %v4241_v8, %v3900_v23  ;;  %v3894_v3 = vld [vmem:[#allocation6 + $0x258] sm:$0xf0]  ;;  %v4254_v54 = vld [vmem:[#allocation6 + $0x2d4] sm:$0xf]  ;;  %v3884_v41 = vld [vmem:[#allocation6 + $0x240] sm:$0xf] }
 0x20a   : > { %v1979_v17 = vmul.f32 %v6097_v58, %v1965_v1  ;;  %v1980_v46 = vmul.f32 %v6107_v63, %v1966_v0  ;;  %v4186_v63 = vld [vmem:[#allocation6 + $0xb4] sm:$0xf]  ;;  %v3809_v1 = vor.u32 %v4184_v56, %v3806_v10  ;;  %v3733_v0 = vor.u32 %v4167_v45, %v3732_v38  ;;  %v3966_v56 = vld [vmem:[#allocation6 + $0x2e8] sm:$0xf0]  ;;  %v3892_v10 = vld [vmem:[#allocation6 + $0x250] sm:$0xf] }
 0x20b   : > { %v3817_v12 = vor.u32 %v4186_v63, %v3814_v50  ;;  %v4242_v63 = vld [vmem:[#allocation6 + $0x274] sm:$0xf]  ;;  %v3910_v50 = vld [vmem:[#allocation6 + $0x278] sm:$0xf0]  ;;  %v3868_v23 = vld [vmem:[#allocation6 + $0x220] sm:$0xf] }
 0x20c   : > { %v1993_v35 = vadd.f32 %v6099_v9, %v1979_v17  ;;  %v1994_v58 = vadd.f32 %v6109_v4, %v1980_v46  ;;  %v3753_v9 = vor.u32 %v4170_v31, %v3750_v28  ;;  %v3740_v4 = vld [vmem:[#allocation6 + $0x20] sm:$0xf]  ;;  %v4243_v17 = vld [vmem:[#allocation6 + $0x274] sm:$0xf0]  ;;  %2526 = vmatpush.bf16.msra.mxu3 %v3805_v32  ;;  %v3797_v46 = vor.u32 %v4183_v33, %v3796_v26  ;;  %v3790_v31 = vld [vmem:[#allocation6 + $0x88] sm:$0xf0] }
 0x20d   : > { %v3741_v7 = vor.u32 %v4169_v49, %v3740_v4  ;;  %2563 = vmatpush.bf16.msrb.mxu1 %v3817_v12  ;;  %v4259_v28 = vld [vmem:[#allocation6 + $0x2f4] sm:$0xf0]  ;;  %v3793_v27 = vor.u32 %v4180_v53, %v3790_v31  ;;  %v3913_v12 = vor.u32 %v4242_v63, %v3910_v50  ;;  %v3964_v49 = vld [vmem:[#allocation6 + $0x2e0] sm:$0xf]  ;;  %v3958_v39 = vld [vmem:[#allocation6 + $0x2d8] sm:$0xf0] }
 0x20e   : > { %v2001_v60 = vmax.f32 %v1993_v35, 0.0  ;;  %v2002_v59 = vmax.f32 %v1994_v58, 0.0  ;;  %2544 = vmatpush.bf16.msrb.mxu0 %v3753_v9  ;;  %v3909_v35 = vor.u32 %v4243_v17, %v3908_v14  ;;  %v3972_v58 = vld [vmem:[#allocation6 + $0x2f0] sm:$0xf]  ;;  %v3965_v20 = vor.u32 %v4257_v43, %v3964_v49  ;;  %v4255_v32 = vld [vmem:[#allocation6 + $0x2d4] sm:$0xf0] }
 0x20f   : > { %2507 = vmatpush.bf16.msra.mxu2 %v3741_v7  ;;  %v3973_v6 = vor.u32 %v4259_v28, %v3972_v58  ;;  %v4256_v7 = vld [vmem:[#allocation6 + $0x2e4] sm:$0xf]  ;;  %v4237_v14 = vld [vmem:[#allocation6 + $0x244] sm:$0xf0]  ;;  %v3948_v17 = vld [vmem:[#allocation6 + $0x2c0] sm:$0xf] }
 0x210   : > { %v6139_v42 = vpack.c.bf16 %v2001_v60, %v1999_v29  ;;  %v6141_v62 = vpack.c.bf16 %v2002_v59, %v2000_v18  ;;  %v4258_v29 = vld [vmem:[#allocation6 + $0x2f4] sm:$0xf]  ;;  %v3974_v18 = vld [vmem:[#allocation6 + $0x2f8] sm:$0xf0]  ;;  %2527 = vmatpush.bf16.msra.mxu3 %v3797_v46  ;;  %v3789_v60 = vor.u32 %v4181_v51, %v3788_v19  ;;  %v3729_v59 = vor.u32 %v4164_v47, %v3726_v55  ;;  %v4253_v46 = vld [vmem:[#allocation6 + $0x2c4] sm:$0xf0] }
 0x211   : > { %2564 = vmatpush.bf16.msrb.mxu1 %v3809_v1  ;;  %v3977_v4 = vor.u32 %v4258_v29, %v3974_v18  ;;  %v3969_v1 = vor.u32 %v4256_v7, %v3966_v56  ;;  %v3886_v19 = vld [vmem:[#allocation6 + $0x248] sm:$0xf0]  ;;  %v3885_v51 = vor.u32 %v4237_v14, %v3884_v41  ;;  %v3949_v47 = vor.u32 %v4253_v46, %v3948_v17  ;;  %v3876_v55 = vld [vmem:[#allocation6 + $0x230] sm:$0xf]  ;;  %v4235_v53 = vld [vmem:[#allocation6 + $0x234] sm:$0xf0] }
 0x212   : > { %v2080_v52 = vshll.u32 %v6139_v42, 16  ;;  %v2092_v36 = vshll.u32 %v6141_v62, 16  ;;  %2545 = vmatpush.bf16.msrb.mxu0 %v3745_v24  ;;  %v2096_v9 = vshrl.u32 %v6139_v42, 16  ;;  %v2099_v15 = vshrl.u32 %v6141_v62, 16  ;;  %v3940_v31 = vld [vmem:[#allocation6 + $0x2b0] sm:$0xf] }
 0x213   : > { %2508 = vmatpush.bf16.msra.mxu2 %v3733_v0  ;;  %v6158_v38 = vrot.slane %v6139_v42, 1  ;;  %v6161_v45 = vrot.slane %v6141_v62, 1  ;;  %v4238_v0 = vld [vmem:[#allocation6 + $0x254] sm:$0xf]  ;;  %v3878_v50 = vld [vmem:[#allocation6 + $0x238] sm:$0xf0]  ;;  %v3877_v29 = vor.u32 %v4235_v53, %v3876_v55 }
 0x214   : > { %v6145_v48 = vrot.slane %v2080_v52, 1  ;;  %v6147_v13 = vrot.slane %v2092_v36, 1  ;;  %2528 = vmatpush.bf16.msra.mxu3 %v3789_v60  ;;  %v4240_v52 = vld [vmem:[#allocation6 + $0x264] sm:$0xf]  ;;  %v3902_v36 = vld [vmem:[#allocation6 + $0x268] sm:$0xf0] }
 0x215   : > { %2565 = vmatpush.bf16.msrb.mxu1 %v3801_v40  ;;  %v6165_v24 = vsel %vm723_vm0, %v2616_v30, %v6158_v38  ;;  %v6169_v26 = vsel %vm723_vm0, %v2619_v57, %v6161_v45  ;;  %v4252_v40 = vld [vmem:[#allocation6 + $0x2c4] sm:$0xf]  ;;  %v4234_v63 = vld [vmem:[#allocation6 + $0x234] sm:$0xf]  ;;  %v4233_v8 = vld [vmem:[#allocation6 + $0x224] sm:$0xf0] }
 0x216   : > { %v2083_v11 = vsel %vm1823_vm4, %v2078_v34, %v6145_v48  ;;  %v2095_v61 = vsel %vm1823_vm4, %v2090_v25, %v6147_v13  ;;  %2546 = vmatpush.bf16.msrb.mxu0 %v3737_v21  ;;  %v4239_v34 = vld [vmem:[#allocation6 + $0x254] sm:$0xf0]  ;;  %v3956_v25 = vld [vmem:[#allocation6 + $0x2d0] sm:$0xf]  ;;  %v2098_v33 = vor.u32 %v2096_v9, %v6145_v48  ;;  %v3897_v48 = vor.u32 %v4238_v0, %v3894_v3  ;;  %v4236_v21 = vld [vmem:[#allocation6 + $0x244] sm:$0xf] }
 0x217   : > { %2274 = vmatmul.bf16.vlgmr.msrb.gmra.mxu2 %v2083_v11  ;;  %2293 = vmatmul.bf16.vlgmr.msrb.gmra.mxu3 %v2095_v61  ;;  %v3893_v44 = vor.u32 %v4239_v34, %v3892_v10  ;;  %v3957_v22 = vor.u32 %v4255_v32, %v3956_v25  ;;  %v3889_v58 = vor.u32 %v4236_v21, %v3886_v19  ;;  %v4250_v60 = vld [vmem:[#allocation6 + $0x2b4] sm:$0xf]  ;;  %v3870_v49 = vld [vmem:[#allocation6 + $0x228] sm:$0xf0]  ;;  %v3860_v57 = vld [vmem:[#allocation6 + $0x210] sm:$0xf] }
 0x218   : > { %2312 = vmatmul.bf16.vlgmr.msra.gmra.mxu0 %v2083_v11  ;;  %2331 = vmatmul.bf16.vlgmr.msra.gmra.mxu1 %v2095_v61  ;;  %v2101_v11 = vor.u32 %v2099_v15, %v6147_v13  ;;  %v3905_v61 = vor.u32 %v4240_v52, %v3902_v36  ;;  %v3961_v13 = vor.u32 %v4254_v54, %v3958_v39  ;;  %v3934_v30 = vld [vmem:[#allocation6 + $0x2a8] sm:$0xf0]  ;;  %v4231_v52 = vld [vmem:[#allocation6 + $0x214] sm:$0xf0]  ;;  %v3924_v36 = vld [vmem:[#allocation6 + $0x290] sm:$0xf] }
 0x219   : > { %2509 = vmatpush.bf16.msra.mxu2 %v3725_v5  ;;  %2566 = vmatpush.bf16.msrb.mxu1 %v3793_v27  ;;  %v3950_v5 = vld [vmem:[#allocation6 + $0x2c8] sm:$0xf0]  ;;  %v3932_v27 = vld [vmem:[#allocation6 + $0x2a0] sm:$0xf]  ;;  %v3881_v9 = vor.u32 %v4234_v63, %v3878_v50  ;;  %v3869_v43 = vor.u32 %v4233_v8, %v3868_v23  ;;  %v4247_v7 = vld [vmem:[#allocation6 + $0x294] sm:$0xf0]  ;;  %v3861_v25 = vor.u32 %v4231_v52, %v3860_v57 }
 0x21a   : > { %2547 = vmatpush.bf16.msrb.mxu0 %v3729_v59  ;;  %2805 = vmatpush.bf16.msrb.mxu3 %v3973_v6  ;;  %v3953_v28 = vor.u32 %v4252_v40, %v3950_v5  ;;  %v3942_v59 = vld [vmem:[#allocation6 + $0x2b8] sm:$0xf0]  ;;  %v4249_v6 = vld [vmem:[#allocation6 + $0x2a4] sm:$0xf0]  ;;  %v4230_v10 = vld [vmem:[#allocation6 + $0x214] sm:$0xf]  ;;  %v3925_v32 = vor.u32 %v4247_v7, %v3924_v36 }
 0x21b   : > { %v3933_v15 = vor.u32 %v4249_v6, %v3932_v27  ;;  %v3862_v34 = vld [vmem:[#allocation6 + $0x218] sm:$0xf0]  ;;  %v3916_v0 = vld [vmem:[#allocation6 + $0x280] sm:$0xf]  ;;  %v4245_v3 = vld [vmem:[#allocation6 + $0x284] sm:$0xf0] }
 0x21c   : > { %v4228_v54 = vld [vmem:[#allocation6 + $0x204] sm:$0xf]  ;;  %v3917_v41 = vor.u32 %v4245_v3, %v3916_v0  ;;  %v3854_v14 = vld [vmem:[#allocation6 + $0x208] sm:$0xf0]  ;;  %v4290_v63 = vld [vmem:[#allocation8 + $0xf4] sm:$0xf] }
 0x21d   : > { %2786 = vmatpush.bf16.msrb.mxu2 %v3909_v35  ;;  %2843 = vmatpush.bf16.msra.mxu1 %v3977_v4  ;;  %v4251_v35 = vld [vmem:[#allocation6 + $0x2b4] sm:$0xf0]  ;;  %v4232_v4 = vld [vmem:[#allocation6 + $0x224] sm:$0xf]  ;;  %v3918_v46 = vld [vmem:[#allocation6 + $0x288] sm:$0xf0] }
 0x21e   : > { %2824 = vmatpush.bf16.msra.mxu0 %v3913_v12  ;;  %2806 = vmatpush.bf16.msrb.mxu3 %v3965_v20  ;;  %v3941_v18 = vor.u32 %v4251_v35, %v3940_v31  ;;  %v3945_v12 = vor.u32 %v4250_v60, %v3942_v59  ;;  %v3873_v20 = vor.u32 %v4232_v4, %v3870_v49  ;;  %v4244_v17 = vld [vmem:[#allocation6 + $0x284] sm:$0xf]  ;;  %v4092_v60 = vld [vmem:[#allocation8 + $0xe0] sm:$0xf]  ;;  %v4289_v59 = vld [vmem:[#allocation8 + $0xe4] sm:$0xf0] }
 0x21f   : > { %v4288_v23 = vld [vmem:[#allocation8 + $0xe4] sm:$0xf]  ;;  %v4093_v8 = vor.u32 %v4289_v59, %v4092_v60  ;;  %v4094_v27 = vld [vmem:[#allocation8 + $0xe8] sm:$0xf0]  ;;  %v4036_v6 = vld [vmem:[#allocation8 + $0x70] sm:$0xf] }
 0x220   : > { %v6216_v49 = vor.u32 %v4288_v23, %v4094_v27  ;;  %v4084_v36 = vld [vmem:[#allocation8 + $0xd0] sm:$0xf]  ;;  %v4287_v7 = vld [vmem:[#allocation8 + $0xd4] sm:$0xf0]  ;;  %v4272_v0 = vld [vmem:[#allocation8 + $0x64] sm:$0xf] }
 0x221   : > { %2787 = vmatpush.bf16.msrb.mxu2 %v3901_v16  ;;  %2844 = vmatpush.bf16.msra.mxu1 %v3969_v1  ;;  %v4248_v16 = vld [vmem:[#allocation6 + $0x2a4] sm:$0xf]  ;;  %v4229_v1 = vld [vmem:[#allocation6 + $0x204] sm:$0xf0]  ;;  %v4012_v59 = vld [vmem:[#allocation8 + $0x40] sm:$0xf] }
 0x222   : > { %2825 = vmatpush.bf16.msra.mxu0 %v3905_v61  ;;  %2807 = vmatpush.bf16.msrb.mxu3 %v3957_v22  ;;  %v3937_v56 = vor.u32 %v4248_v16, %v3934_v30  ;;  %v3852_v61 = vld [vmem:[#allocation6 + $0x200] sm:$0xf]  ;;  %v4038_v16 = vld [vmem:[#allocation8 + $0x78] sm:$0xf0]  ;;  %v4269_v23 = vld [vmem:[#allocation8 + $0x44] sm:$0xf0] }
 0x223   : > { %v3853_v39 = vor.u32 %v4229_v1, %v3852_v61  ;;  %v4028_v61 = vld [vmem:[#allocation8 + $0x60] sm:$0xf]  ;;  %v4273_v1 = vld [vmem:[#allocation8 + $0x64] sm:$0xf0]  ;;  %v4013_v27 = vor.u32 %v4269_v23, %v4012_v59 }
 0x224   : > { %v4029_v3 = vor.u32 %v4273_v1, %v4028_v61  ;;  %v4266_v61 = vld [vmem:[#allocation8 + $0x34] sm:$0xf]  ;;  %v4006_v1 = vld [vmem:[#allocation8 + $0x38] sm:$0xf0]  ;;  %v4277_v23 = vld [vmem:[#allocation8 + $0x84] sm:$0xf0] }
 0x225   : > { %2788 = vmatpush.bf16.msrb.mxu2 %v3893_v44  ;;  %2845 = vmatpush.bf16.msra.mxu1 %v3961_v13  ;;  %v3865_v44 = vor.u32 %v4230_v10, %v3862_v34  ;;  %v3921_v13 = vor.u32 %v4244_v17, %v3918_v46  ;;  %v4086_v10 = vld [vmem:[#allocation8 + $0xd8] sm:$0xf0]  ;;  %v4078_v17 = vld [vmem:[#allocation8 + $0xc8] sm:$0xf0]  ;;  %v4020_v46 = vld [vmem:[#allocation8 + $0x50] sm:$0xf] }
 0x226   : > { %2826 = vmatpush.bf16.msra.mxu0 %v3897_v48  ;;  %2808 = vmatpush.bf16.msrb.mxu3 %v3949_v47  ;;  %v3857_v48 = vor.u32 %v4228_v54, %v3854_v14  ;;  %v4285_v54 = vld [vmem:[#allocation8 + $0xc4] sm:$0xf0]  ;;  %v4284_v14 = vld [vmem:[#allocation8 + $0xc4] sm:$0xf] }
 0x227   : > { %2279 = vmatmul.bf16.gmra.mxu2 %v2098_v33  ;;  %2298 = vmatmul.bf16.gmra.mxu3 %v2101_v11 }
 0x228   : > { %2317 = vmatmul.bf16.gmra.mxu0 %v2098_v33  ;;  %2336 = vmatmul.bf16.gmra.mxu1 %v2101_v11  ;;  %v4246_v33 = vld [vmem:[#allocation6 + $0x294] sm:$0xf]  ;;  %v3926_v11 = vld [vmem:[#allocation6 + $0x298] sm:$0xf0] }
 0x229   : > { %2789 = vmatpush.bf16.msrb.mxu2 %v3885_v51  ;;  %2846 = vmatpush.bf16.msra.mxu1 %v3953_v28  ;;  %v3929_v22 = vor.u32 %v4246_v33, %v3926_v11  ;;  %v4291_v28 = vld [vmem:[#allocation8 + $0xf4] sm:$0xf0] }
 0x22a   : > { %2827 = vmatpush.bf16.msra.mxu0 %v3889_v58  ;;  %2809 = vmatpush.bf16.msrb.mxu3 %v3941_v18  ;;  %v4100_v58 = vld [vmem:[#allocation8 + $0xf0] sm:$0xf] }
 0x22b   : > { %v4101_v50 = vor.u32 %v4291_v28, %v4100_v58  ;;  %v4282_v58 = vld [vmem:[#allocation8 + $0xb4] sm:$0xf] }
 0x22d   : > { %2790 = vmatpush.bf16.msrb.mxu2 %v3877_v29  ;;  %2847 = vmatpush.bf16.msra.mxu1 %v3945_v12  ;;  %v4102_v29 = vld [vmem:[#allocation8 + $0xf8] sm:$0xf0] }
 0x22e   : > { %2828 = vmatpush.bf16.msra.mxu0 %v3881_v9  ;;  %2810 = vmatpush.bf16.msrb.mxu3 %v3933_v15  ;;  %v6209_v18 = vor.u32 %v4290_v63, %v4102_v29  ;;  %v4275_v9 = vld [vmem:[#allocation8 + $0x74] sm:$0xf0]  ;;  %v4274_v15 = vld [vmem:[#allocation8 + $0x74] sm:$0xf]  ;;  %v4070_v63 = vld [vmem:[#allocation8 + $0xb8] sm:$0xf0] }
 0x22f   : > { %v6218_v30 = vor.u32 %v4274_v15, %v4038_v16  ;;  %v6253_v60 = vor.u32 %v4282_v58, %v4070_v63  ;;  %v4264_v58 = vld [vmem:[#allocation8 + $0x24] sm:$0xf]  ;;  %v4044_v63 = vld [vmem:[#allocation8 + $0x80] sm:$0xf] }
 0x231   : > { %2791 = vmatpush.bf16.msrb.mxu2 %v3869_v43  ;;  %2848 = vmatpush.bf16.msra.mxu1 %v3937_v56  ;;  %v4037_v43 = vor.u32 %v4275_v9, %v4036_v6  ;;  %v4085_v56 = vor.u32 %v4287_v7, %v4084_v36  ;;  %v4014_v6 = vld [vmem:[#allocation8 + $0x48] sm:$0xf0]  ;;  %v4060_v9 = vld [vmem:[#allocation8 + $0xa0] sm:$0xf]  ;;  %v4280_v36 = vld [vmem:[#allocation8 + $0xa4] sm:$0xf] }
 0x232   : > { %2829 = vmatpush.bf16.msra.mxu0 %v3873_v20  ;;  %2811 = vmatpush.bf16.msrb.mxu3 %v3925_v32  ;;  %v4286_v20 = vld [vmem:[#allocation8 + $0xd4] sm:$0xf]  ;;  %v4062_v7 = vld [vmem:[#allocation8 + $0xa8] sm:$0xf0] }
 0x233   : > { %v6226_v34 = vor.u32 %v4286_v20, %v4086_v10  ;;  %v4004_v20 = vld [vmem:[#allocation8 + $0x30] sm:$0xf]  ;;  %v4267_v10 = vld [vmem:[#allocation8 + $0x34] sm:$0xf0] }
 0x235   : > { %2792 = vmatpush.bf16.msrb.mxu2 %v3861_v25  ;;  %2849 = vmatpush.bf16.msra.mxu1 %v3929_v22  ;;  %v4076_v22 = vld [vmem:[#allocation8 + $0xc0] sm:$0xf] }
 0x236   : > { %2830 = vmatpush.bf16.msra.mxu0 %v3865_v44  ;;  %2812 = vmatpush.bf16.msrb.mxu3 %v3917_v41  ;;  %v4030_v44 = vld [vmem:[#allocation8 + $0x68] sm:$0xf0]  ;;  %v4077_v41 = vor.u32 %v4285_v54, %v4076_v22  ;;  %v6266_v22 = vor.u32 %v4266_v61, %v4006_v1  ;;  %v4052_v54 = vld [vmem:[#allocation8 + $0x90] sm:$0xf] }
 0x237   : > { %2510 = vmatmul.bf16.vlgmr.msra.gmra.mxu2 %v6123_v37  ;;  %2529 = vmatmul.bf16.vlgmr.msra.gmra.mxu3 %v6127_v2 }
 0x238   : > { %2548 = vmatmul.bf16.vlgmr.msrb.gmra.mxu0 %v6123_v37  ;;  %2567 = vmatmul.bf16.vlgmr.msrb.gmra.mxu1 %v6127_v2 }
 0x239   : > { %2793 = vmatpush.bf16.msrb.mxu2 %v3853_v39  ;;  %2850 = vmatpush.bf16.msra.mxu1 %v3921_v13  ;;  %v6237_v39 = vor.u32 %v4272_v0, %v4030_v44  ;;  %v4271_v13 = vld [vmem:[#allocation8 + $0x54] sm:$0xf0]  ;;  %v4005_v44 = vor.u32 %v4267_v10, %v4004_v20 }
 0x23a   : > { %2831 = vmatpush.bf16.msra.mxu0 %v3857_v48  ;;  %3121 = vmatpush.bf16.msra.mxu3 %v4101_v50  ;;  %v6239_v48 = vor.u32 %v4284_v14, %v4078_v17  ;;  %v4278_v14 = vld [vmem:[#allocation8 + $0x94] sm:$0xf] }
 0x23d   : > { %3159 = vmatpush.bf16.msrb.mxu1 %v6209_v18  ;;  %3102 = vmatpush.bf16.msra.mxu2 %v4037_v43  ;;  %v4281_v43 = vld [vmem:[#allocation8 + $0xa4] sm:$0xf0] }
 0x23e   : > { %3122 = vmatpush.bf16.msra.mxu3 %v4093_v8  ;;  %3140 = vmatpush.bf16.msrb.mxu0 %v6218_v30  ;;  %v4268_v8 = vld [vmem:[#allocation8 + $0x44] sm:$0xf]  ;;  %v4061_v16 = vor.u32 %v4281_v43, %v4060_v9  ;;  %v3988_v43 = vld [vmem:[#allocation8 + $0x10] sm:$0xf] }
 0x23f   : > { %v6257_v15 = vor.u32 %v4268_v8, %v4014_v6  ;;  %v4276_v8 = vld [vmem:[#allocation8 + $0x84] sm:$0xf]  ;;  %v4045_v6 = vor.u32 %v4277_v23, %v4044_v63 }
 0x241   : > { %3160 = vmatpush.bf16.msrb.mxu1 %v6216_v49  ;;  %3103 = vmatpush.bf16.msra.mxu2 %v4029_v3 }
 0x242   : > { %3123 = vmatpush.bf16.msra.mxu3 %v4085_v56  ;;  %3141 = vmatpush.bf16.msrb.mxu0 %v6237_v39  ;;  %v6259_v56 = vor.u32 %v4280_v36, %v4062_v7  ;;  %v4262_v36 = vld [vmem:[#allocation8 + $0x14] sm:$0xf]  ;;  %v3990_v7 = vld [vmem:[#allocation8 + $0x18] sm:$0xf0] }
 0x243   : > { %v6286_v1 = vor.u32 %v4262_v36, %v3990_v7 }
 0x245   : > { %3161 = vmatpush.bf16.msrb.mxu1 %v6226_v34 }
 0x246   : > { %3124 = vmatpush.bf16.msra.mxu3 %v4077_v41  ;;  %v4279_v41 = vld [vmem:[#allocation8 + $0x94] sm:$0xf0] }
 0x247   : > { %2515 = vmatmul.bf16.gmra.mxu2 %v6139_v42  ;;  %2534 = vmatmul.bf16.gmra.mxu3 %v6141_v62  ;;  %v4053_v17 = vor.u32 %v4279_v41, %v4052_v54  ;;  %v4261_v54 = vld [vmem:[#allocation8 + $0x4] sm:$0xf0]  ;;  %v4260_v41 = vld [vmem:[#allocation8 + $0x4] sm:$0xf] }
 0x248   : > { %2553 = vmatmul.bf16.gmra.mxu0 %v6139_v42  ;;  %2572 = vmatmul.bf16.gmra.mxu1 %v6141_v62 }
 0x249   : > { %3162 = vmatpush.bf16.msrb.mxu1 %v6239_v48 }
 0x24d   : > { %3163 = vmatpush.bf16.msrb.mxu1 %v6253_v60 }
 0x251   : > { %3164 = vmatpush.bf16.msrb.mxu1 %v6259_v56 }
 0x257   : > { %2794 = vmatmul.bf16.vlgmr.msrb.gmra.mxu2 %v6165_v24  ;;  %2813 = vmatmul.bf16.vlgmr.msrb.gmra.mxu3 %v6169_v26 }
 0x258   : > { %2832 = vmatmul.bf16.vlgmr.msra.gmra.mxu0 %v6165_v24  ;;  %2851 = vmatmul.bf16.vlgmr.msra.gmra.mxu1 %v6169_v26 }
 0x267   : > { %2799 = vmatmul.bf16.gmra.mxu2 %v6158_v38  ;;  %2818 = vmatmul.bf16.gmra.mxu3 %v6161_v45 }
 0x268   : > { %2837 = vmatmul.bf16.gmra.mxu0 %v6158_v38  ;;  %2856 = vmatmul.bf16.gmra.mxu1 %v6161_v45 }
 0x295   : > { %v2313_v37 = vpop.f32.mrf.mxu0  ;;  %v2332_v2 = vpop.f32.mrf.mxu1 }
 0x296   : > { %v6189_v42 = vadd.f32 %v2332_v2, %v2313_v37  ;;  %v4270_v37 = vld [vmem:[#allocation8 + $0x54] sm:$0xf]  ;;  %v4022_v2 = vld [vmem:[#allocation8 + $0x58] sm:$0xf0] }
 0x29a   : > { %v2275_v62 = vpop.f32.mrf.mxu2  ;;  %v2294_v21 = vpop.f32.mrf.mxu3 }
 0x29b   : > { %v6191_v19 = vadd.f32 %v2294_v21, %v2275_v62 }
 0x29d   : > { %v6193_v51 = vpop.f32.mrf.mxu0  ;;  %v6195_v24 = vpop.f32.mrf.mxu1 }
 0x2a2   : > { %v6197_v26 = vpop.f32.mrf.mxu2  ;;  %v6199_v47 = vpop.f32.mrf.mxu3 }
 0x2a5   : > { %v2318_v40 = vpop.f32.mrf.mxu0  ;;  %v2337_v38 = vpop.f32.mrf.mxu1 }
 0x2a6   : > { %v6201_v5 = vadd.f32 %v2337_v38, %v2318_v40  ;;  %v4021_v40 = vor.u32 %v4271_v13, %v4020_v46  ;;  %v6246_v38 = vor.u32 %v4270_v37, %v4022_v2  ;;  %v4054_v46 = vld [vmem:[#allocation8 + $0x98] sm:$0xf0]  ;;  %v3996_v13 = vld [vmem:[#allocation8 + $0x20] sm:$0xf]  ;;  %v4265_v37 = vld [vmem:[#allocation8 + $0x24] sm:$0xf0] }
 0x2a8   : > { %3104 = vmatpush.bf16.msra.mxu2 %v4021_v40  ;;  %3142 = vmatpush.bf16.msrb.mxu0 %v6246_v38 }
 0x2aa   : > { %v2280_v45 = vpop.f32.mrf.mxu2  ;;  %v2299_v55 = vpop.f32.mrf.mxu3 }
 0x2ab   : > { %v6203_v53 = vadd.f32 %v2299_v55, %v2280_v45  ;;  %v4068_v45 = vld [vmem:[#allocation8 + $0xb0] sm:$0xf]  ;;  %v4283_v55 = vld [vmem:[#allocation8 + $0xb4] sm:$0xf0] }
 0x2ac   : > { %v4069_v28 = vor.u32 %v4283_v55, %v4068_v45  ;;  %3105 = vmatpush.bf16.msra.mxu2 %v4013_v27  ;;  %3143 = vmatpush.bf16.msrb.mxu0 %v6257_v15  ;;  %v6273_v45 = vor.u32 %v4278_v14, %v4054_v46  ;;  %v3997_v55 = vor.u32 %v4265_v37, %v3996_v13  ;;  %v4046_v27 = vld [vmem:[#allocation8 + $0x88] sm:$0xf0] }
 0x2ad   : > { %v6205_v31 = vpop.f32.mrf.mxu0  ;;  %v6207_v35 = vpop.f32.mrf.mxu1  ;;  %v6279_v9 = vor.u32 %v4276_v8, %v4046_v27  ;;  %v3982_v14 = vld [vmem:[#allocation8 + $0x8] sm:$0xf0] }
 0x2ae   : > { %3125 = vmatpush.bf16.msra.mxu3 %v4069_v28  ;;  %v3998_v28 = vld [vmem:[#allocation8 + $0x28] sm:$0xf0]  ;;  %3165 = vmatpush.bf16.msrb.mxu1 %v6273_v45 }
 0x2af   : > { %v6276_v59 = vor.u32 %v4264_v58, %v3998_v28  ;;  %v6293_v58 = vor.u32 %v4260_v41, %v3982_v14  ;;  %v2870_v28 = vld [vmem:[%s6412_s8] sm:$0x3] }
 0x2b0   : > { %3106 = vmatpush.bf16.msra.mxu2 %v4005_v44  ;;  %3144 = vmatpush.bf16.msrb.mxu0 %v6266_v22  ;;  %v3980_v44 = vld [vmem:[#allocation8] sm:$0xf]  ;;  %v6305_v8 = vperm.slane %v2870_v28, 1 }
 0x2b1   : > { %v3981_v37 = vor.u32 %v4261_v54, %v3980_v44 }
 0x2b2   : > { %v6212_v12 = vpop.f32.mrf.mxu2  ;;  %v6214_v4 = vpop.f32.mrf.mxu3  ;;  %3126 = vmatpush.bf16.msra.mxu3 %v4061_v16  ;;  %v4263_v16 = vld [vmem:[#allocation8 + $0x14] sm:$0xf0]  ;;  %3166 = vmatpush.bf16.msrb.mxu1 %v6279_v9 }
 0x2b3   : > { %v3989_v20 = vor.u32 %v4263_v16, %v3988_v43 }
 0x2b4   : > { %3107 = vmatpush.bf16.msra.mxu2 %v3997_v55  ;;  %3145 = vmatpush.bf16.msrb.mxu0 %v6276_v59 }
 0x2b5   : > { %v6220_v57 = vpop.f32.mrf.mxu0  ;;  %v6222_v52 = vpop.f32.mrf.mxu1 }
 0x2b6   : > { %3127 = vmatpush.bf16.msra.mxu3 %v4053_v17  ;;  %v2550_v17 = vadd.f32 %v6220_v57, %v6189_v42 }
 0x2b8   : > { %3108 = vmatpush.bf16.msra.mxu2 %v3989_v20  ;;  %3146 = vmatpush.bf16.msrb.mxu0 %v6286_v1  ;;  %v2569_v42 = vadd.f32 %v6222_v52, %v2550_v17 }
 0x2ba   : > { %v6229_v25 = vpop.f32.mrf.mxu2  ;;  %v6231_v32 = vpop.f32.mrf.mxu3  ;;  %3128 = vmatpush.bf16.msra.mxu3 %v4045_v6 }
 0x2bb   : > { %v2512_v57 = vadd.f32 %v6229_v25, %v6191_v19  ;;  %v2297_v19 = vadd.f32 %v6199_v47, %v6197_v26 }
 0x2bc   : > { %3109 = vmatpush.bf16.msra.mxu2 %v3981_v37  ;;  %3147 = vmatpush.bf16.msrb.mxu0 %v6293_v58 }
 0x2bd   : > { %v6233_v33 = vpop.f32.mrf.mxu0  ;;  %v6235_v11 = vpop.f32.mrf.mxu1 }
 0x2be   : > { %4301 = vmatpush.bf16.msrb.mxu3 %v6209_v18  ;;  %v2335_v18 = vadd.f32 %v6195_v24, %v6193_v51  ;;  %v2884_v51 = vld [vmem:[%s6413_s9] sm:$0x3] }
 0x2bf   : > { %v6318_v16 = vperm.slane %v2884_v51, 1  ;;  %v2886_v54 = vperm.slane %v2884_v51, 0 }
 0x2c0   : > { %v2552_v63 = vadd.f32 %v6233_v33, %v2335_v18  ;;  %4293 = vmatpush.bf16.msrb.mxu2 %v6218_v30 }
 0x2c2   : > { %v6241_v62 = vpop.f32.mrf.mxu2  ;;  %v6243_v21 = vpop.f32.mrf.mxu3  ;;  %4302 = vmatpush.bf16.msrb.mxu3 %v6216_v49  ;;  %v2531_v49 = vadd.f32 %v6231_v32, %v2512_v57  ;;  %v2571_v33 = vadd.f32 %v6235_v11, %v2552_v63 }
 0x2c3   : > { %v2514_v36 = vadd.f32 %v6241_v62, %v2297_v19 }
 0x2c4   : > { %4294 = vmatpush.bf16.msrb.mxu2 %v6237_v39 }
 0x2c5   : > { %v6249_v50 = vpop.f32.mrf.mxu0  ;;  %v6251_v29 = vpop.f32.mrf.mxu1  ;;  %v2533_v44 = vadd.f32 %v6243_v21, %v2514_v36 }
 0x2c6   : > { %4303 = vmatpush.bf16.msrb.mxu3 %v6226_v34  ;;  %v6322_v34 = vperm.slane %v2870_v28, 0 }
 0x2c8   : > { %4295 = vmatpush.bf16.msrb.mxu2 %v6246_v38 }
 0x2ca   : > { %v6261_v0 = vpop.f32.mrf.mxu2  ;;  %v6263_v3 = vpop.f32.mrf.mxu3  ;;  %4304 = vmatpush.bf16.msrb.mxu3 %v6239_v48  ;;  %v2555_v48 = vadd.f32 %v6249_v50, %v6201_v5 }
 0x2cb   : > { %v2517_v28 = vadd.f32 %v6261_v0, %v6203_v53 }
 0x2cc   : > { %4296 = vmatpush.bf16.msrb.mxu2 %v6257_v15  ;;  %v2574_v5 = vadd.f32 %v6251_v29, %v2555_v48 }
 0x2cd   : > { %v6269_v2 = vpop.f32.mrf.mxu0  ;;  %v6271_v40 = vpop.f32.mrf.mxu1  ;;  %v2536_v53 = vadd.f32 %v6263_v3, %v2517_v28 }
 0x2ce   : > { %4305 = vmatpush.bf16.msrb.mxu3 %v6253_v60  ;;  %v2340_v60 = vadd.f32 %v6207_v35, %v6205_v31  ;;  %v2302_v31 = vadd.f32 %v6214_v4, %v6212_v12 }
 0x2d0   : > { %4297 = vmatpush.bf16.msrb.mxu2 %v6266_v22 }
 0x2d2   : > { %v6281_v10 = vpop.f32.mrf.mxu2  ;;  %v6283_v61 = vpop.f32.mrf.mxu3  ;;  %4306 = vmatpush.bf16.msrb.mxu3 %v6259_v56 }
 0x2d4   : > { %4298 = vmatpush.bf16.msrb.mxu2 %v6276_v59 }
 0x2d5   : > { %v2833_v46 = vpop.f32.mrf.mxu0  ;;  %v2852_v13 = vpop.f32.mrf.mxu1 }
 0x2d6   : > { %v2853_v55 = vadd.f32 %v2852_v13, %v2833_v46  ;;  %4307 = vmatpush.bf16.msrb.mxu3 %v6273_v45 }
 0x2d8   : > { %v2863_v23 = vadd.f32 %v2853_v55, %v2569_v42  ;;  %v2557_v42 = vadd.f32 %v6269_v2, %v2340_v60  ;;  %4299 = vmatpush.bf16.msrb.mxu2 %v6286_v1 }
 0x2da   : > { %v2795_v27 = vpop.f32.mrf.mxu2  ;;  %v2814_v6 = vpop.f32.mrf.mxu3  ;;  %v2877_v43 = vmul.f32 %v6305_v8, %v2863_v23  ;;  %v2576_v2 = vadd.f32 %v6271_v40, %v2557_v42  ;;  %4308 = vmatpush.bf16.msrb.mxu3 %v6279_v9 }
 0x2db   : > { %v2815_v24 = vadd.f32 %v2814_v6, %v2795_v27 }
 0x2dc   : > { %v2891_v47 = vadd.f32 %v6318_v16, %v2877_v43  ;;  %4300 = vmatpush.bf16.msrb.mxu2 %v6293_v58  ;;  %v3178_v58 = vld [vmem:[%s6415_s11] sm:$0x3] }
 0x2dd   : > { %v2835_v52 = vpop.f32.mrf.mxu0  ;;  %v2854_v25 = vpop.f32.mrf.mxu1  ;;  %v2862_v7 = vadd.f32 %v2815_v24, %v2531_v49  ;;  %v2519_v24 = vadd.f32 %v6281_v10, %v2302_v31 }
 0x2de   : > { %v2855_v30 = vadd.f32 %v2854_v25, %v2835_v52  ;;  %v2899_v13 = vmax.f32 %v2891_v47, 0.0 }
 0x2df   : > { %v2876_v39 = vmul.f32 %v6322_v34, %v2862_v7  ;;  %v2538_v40 = vadd.f32 %v6283_v61, %v2519_v24  ;;  %v4583_v24 = vmov 0.0  }
 0x2e0   : > { %v2865_v26 = vadd.f32 %v2855_v30, %v2571_v33 }
 0x2e1   : > { %v2890_v21 = vadd.f32 %v2886_v54, %v2876_v39 }
 0x2e2   : > { %v2879_v32 = vmul.f32 %v6305_v8, %v2865_v26  ;;  %v2797_v11 = vpop.f32.mrf.mxu2  ;;  %v2816_v20 = vpop.f32.mrf.mxu3 }
 0x2e3   : > { %v2817_v62 = vadd.f32 %v2816_v20, %v2797_v11  ;;  %v2898_v23 = vmax.f32 %v2890_v21, 0.0 }
 0x2e4   : > { %v2893_v41 = vadd.f32 %v6318_v16, %v2879_v32 }
 0x2e5   : > { %v2864_v14 = vadd.f32 %v2817_v62, %v2533_v44  ;;  %v2838_v17 = vpop.f32.mrf.mxu0  ;;  %v2857_v46 = vpop.f32.mrf.mxu1  ;;  %v3180_v44 = vperm.slane %v3178_v58, 0 }
 0x2e6   : > { %v2901_v37 = vmax.f32 %v2893_v41, 0.0  ;;  %v2858_v55 = vadd.f32 %v2857_v46, %v2838_v17  ;;  %v3192_v17 = vld [vmem:[%s6416_s12] sm:$0x3] }
 0x2e7   : > { %v2878_v38 = vmul.f32 %v6322_v34, %v2864_v14 }
 0x2e8   : > { %v2907_v50 = vpack.c.bf16 %v2901_v37, %v2899_v13  ;;  %v2867_v57 = vadd.f32 %v2858_v55, %v2574_v5  ;;  %v3194_v37 = vperm.slane %v3192_v17, 0 }
 0x2e9   : > { %v2892_v18 = vadd.f32 %v2886_v54, %v2878_v38 }
 0x2ea   : > { %3129 = vmatmul.bf16.vlgmr.msra.gmra.mxu3 %v2907_v50  ;;  %3167 = vmatmul.bf16.vlgmr.msrb.gmra.mxu1 %v2907_v50  ;;  %v2800_v15 = vpop.f32.mrf.mxu2  ;;  %v2819_v63 = vpop.f32.mrf.mxu3  ;;  %v2881_v6 = vmul.f32 %v6305_v8, %v2867_v57 }
 0x2eb   : > { %v2900_v27 = vmax.f32 %v2892_v18, 0.0  ;;  %v2820_v56 = vadd.f32 %v2819_v63, %v2800_v15 }
 0x2ec   : > { %v2895_v45 = vadd.f32 %v6318_v16, %v2881_v6  ;;  %v3181_v6 = vperm.slane %v3178_v58, 1 }
 0x2ed   : > { %v2840_v35 = vpop.f32.mrf.mxu0  ;;  %v2859_v29 = vpop.f32.mrf.mxu1  ;;  %v2906_v0 = vpack.c.bf16 %v2900_v27, %v2898_v23  ;;  %v2866_v19 = vadd.f32 %v2820_v56, %v2536_v53 }
 0x2ee   : > { %v2860_v51 = vadd.f32 %v2859_v29, %v2840_v35  ;;  %v2903_v33 = vmax.f32 %v2895_v45, 0.0 }
 0x2ef   : > { %3110 = vmatmul.bf16.vlgmr.msra.gmra.mxu2 %v2906_v0  ;;  %3148 = vmatmul.bf16.vlgmr.msrb.gmra.mxu0 %v2906_v0  ;;  %v2880_v49 = vmul.f32 %v6322_v34, %v2866_v19 }
 0x2f0   : > { %v2869_v22 = vadd.f32 %v2860_v51, %v2576_v2 }
 0x2f1   : > { %v2894_v43 = vadd.f32 %v2886_v54, %v2880_v49 }
 0x2f2   : > { %v2883_v12 = vmul.f32 %v6305_v8, %v2869_v22  ;;  %v2802_v4 = vpop.f32.mrf.mxu2  ;;  %v2821_v3 = vpop.f32.mrf.mxu3 }
 0x2f3   : > { %v2822_v52 = vadd.f32 %v2821_v3, %v2802_v4  ;;  %v2902_v36 = vmax.f32 %v2894_v43, 0.0 }
 0x2f4   : > { %v2897_v10 = vadd.f32 %v6318_v16, %v2883_v12 }
 0x2f5   : > { %v2868_v25 = vadd.f32 %v2822_v52, %v2538_v40  ;;  %v3195_v52 = vperm.slane %v3192_v17, 1 }
 0x2f6   : > { %v2905_v59 = vmax.f32 %v2897_v10, 0.0 }
 0x2f7   : > { %v2882_v9 = vmul.f32 %v6322_v34, %v2868_v25 }
 0x2f8   : > { %v2909_v8 = vpack.c.bf16 %v2905_v59, %v2903_v33 }
 0x2f9   : > { %v2896_v30 = vadd.f32 %v2886_v54, %v2882_v9  ;;  %v3214_v54 = vlaneseq }
 0x2fa   : > { %3134 = vmatmul.bf16.gmra.mxu3 %v2909_v8 }
 0x2fb   : > { %v2904_v61 = vmax.f32 %v2896_v30, 0.0  ;;  %v3215_v46 = vshrl.u32 %v3214_v54, 7  ;;  %v3217_v18 = vand.u32 127, %v3214_v54 }
 0x2fd   : > { %v2908_v7 = vpack.c.bf16 %v2904_v61, %v2902_v36  ;;  %v3220_v38 = vadd.s32 1, %v3215_v46  ;;  %v3218_v42 = vmul.u32 6, %v3215_v46 }
 0x2ff   : > { %3115 = vmatmul.bf16.gmra.mxu2 %v2908_v7  ;;  %v3221_v57 = vmul.u32 6, %v3220_v38  ;;  %vm3219_vm6 = vcmp.ge.s32.totalorder %v3217_v18, %v3218_v42 }
 0x301   : > { %vm3222_vm7 = vcmp.lt.s32.totalorder %v3217_v18, %v3221_v57 }
 0x302   : > { %vm3223_vm8 = vmand %vm3219_vm6, %vm3222_vm7 }
 0x303   : > { %v3224_v19 = vsel %vm3223_vm8, 0.16666667, %v4583_v24 }
 0x30a   : > { %3172 = vmatmul.bf16.vlgmr.msrb.gmra.mxu3 %v2909_v8 }
 0x30f   : > { %3153 = vmatmul.bf16.vlgmr.msrb.gmra.mxu2 %v2908_v7 }
 0x367   : > { %v3168_v60 = vpop.f32.mrf.mxu1 }
 0x36c   : > { %v3149_v13 = vpop.f32.mrf.mxu0 }
 0x36d   : > { %v3130_v16 = vpop.f32.mrf.mxu3  ;;  %v3169_v4 = vadd.f32 %v3168_v60, %v3149_v13 }
 0x36f   : > { %v3170_v2 = vpop.f32.mrf.mxu1  ;;  %v3185_v10 = vmul.f32 %v3181_v6, %v3169_v4 }
 0x371   : > { %v3199_v8 = vadd.f32 %v3195_v52, %v3185_v10 }
 0x372   : > { %v3111_v26 = vpop.f32.mrf.mxu2 }
 0x373   : > { %v3131_v62 = vadd.f32 %v3130_v16, %v3111_v26  ;;  %v3207_v36 = vmax.f32 %v3199_v8, 0.0 }
 0x374   : > { %v3151_v35 = vpop.f32.mrf.mxu0 }
 0x375   : > { %v3132_v1 = vpop.f32.mrf.mxu3  ;;  %v3184_v5 = vmul.f32 %v3180_v44, %v3131_v62  ;;  %v3171_v51 = vadd.f32 %v3170_v2, %v3151_v35 }
 0x377   : > { %v3198_v31 = vadd.f32 %v3194_v37, %v3184_v5  ;;  %v3187_v40 = vmul.f32 %v3181_v6, %v3171_v51 }
 0x379   : > { %v3206_v0 = vmax.f32 %v3198_v31, 0.0  ;;  %v3201_v9 = vadd.f32 %v3195_v52, %v3187_v40 }
 0x37a   : > { %v3113_v47 = vpop.f32.mrf.mxu2 }
 0x37b   : > { %v3133_v39 = vadd.f32 %v3132_v1, %v3113_v47  ;;  %v3209_v30 = vmax.f32 %v3201_v9, 0.0 }
 0x37d   : > { %v3135_v32 = vpop.f32.mrf.mxu3  ;;  %v3186_v55 = vmul.f32 %v3180_v44, %v3133_v39 }
 0x37f   : > { %v3200_v23 = vadd.f32 %v3194_v37, %v3186_v55 }
 0x381   : > { %v3208_v53 = vmax.f32 %v3200_v23, 0.0 }
 0x382   : > { %v3116_v11 = vpop.f32.mrf.mxu2 }
 0x383   : > { %v3136_v20 = vadd.f32 %v3135_v32, %v3116_v11 }
 0x385   : > { %v3137_v34 = vpop.f32.mrf.mxu3  ;;  %v3188_v48 = vmul.f32 %v3180_v44, %v3136_v20 }
 0x387   : > { %v3202_v50 = vadd.f32 %v3194_v37, %v3188_v48 }
 0x389   : > { %v3210_v56 = vmax.f32 %v3202_v50, 0.0 }
 0x38a   : > { %v3118_v41 = vpop.f32.mrf.mxu2 }
 0x38b   : > { %v3138_v14 = vadd.f32 %v3137_v34, %v3118_v41 }
 0x38d   : > { %v3190_v21 = vmul.f32 %v3180_v44, %v3138_v14  ;;  %v3173_v15 = vpop.f32.mrf.mxu3 }
 0x38f   : > { %v3204_v28 = vadd.f32 %v3194_v37, %v3190_v21 }
 0x391   : > { %v3212_v63 = vmax.f32 %v3204_v28, 0.0 }
 0x392   : > { %v3154_v27 = vpop.f32.mrf.mxu2 }
 0x393   : > { %4106 = vmatpush.msk.msra.mxu2 %vm3229_vm5, %v3212_v63  ;;  %v3174_v29 = vadd.f32 %v3173_v15, %v3154_v27 }
 0x395   : > { %3249 = vmatpush.msra.mxu2 %v3210_v56  ;;  %v3175_v22 = vpop.f32.mrf.mxu3  ;;  %v3189_v3 = vmul.f32 %v3181_v6, %v3174_v29 }
 0x397   : > { %3250 = vmatpush.msra.mxu2 %v3208_v53  ;;  %v3203_v33 = vadd.f32 %v3195_v52, %v3189_v3 }
 0x399   : > { %3251 = vmatpush.msra.mxu2 %v3206_v0  ;;  %v3211_v43 = vmax.f32 %v3203_v33, 0.0 }
 0x39a   : > { %v3156_v12 = vpop.f32.mrf.mxu2  ;;  %4107 = vmatmul.msk.f32.vlgmr.msra.gmra.mxu2 %vm3225_vm9, %v3224_v19 }
 0x39b   : > { %v3176_v45 = vadd.f32 %v3175_v22, %v3156_v12 }
 0x39d   : > { %v3191_v49 = vmul.f32 %v3181_v6, %v3176_v45 }
 0x39f   : > { %v3205_v25 = vadd.f32 %v3195_v52, %v3191_v49 }
 0x3a1   : > { %v3213_v59 = vmax.f32 %v3205_v25, 0.0 }
 0x3a3   : > { %4108 = vmatpush.msk.msra.mxu3 %vm3229_vm5, %v3213_v59 }
 0x3a5   : > { %3269 = vmatpush.msra.mxu3 %v3211_v43 }
 0x3a7   : > { %3270 = vmatpush.msra.mxu3 %v3209_v30 }
 0x3a9   : > { %3271 = vmatpush.msra.mxu3 %v3207_v36 }
 0x3aa   : > { %4109 = vmatmul.msk.f32.vlgmr.msra.gmra.mxu3 %vm3225_vm9, %v3224_v19 }
 0x41d   : > { %v3253_v7 = vpop.f32.mrf.mxu2 }
 0x42d   : > { %v3273_v61 = vpop.f32.mrf.mxu3 }
 0x42e   : > { %v3278_v16 = vrot.slane %v3273_v61, 4 }
 0x430   : > { %v3279_v26 = vsel %vm1302_vm3, %v3253_v7, %v3278_v16 }
 0x431   : > { %3281 = vst [vmem:[%s483_s20] sm:$0xff] %v3279_v26 }
 0x432   : > { %4529 = shalt.err (!%p4526_p8)
}
 0x433   : > { %4321 = dma.vmem_to_hbm [thread:$0]  (%p4692_p5), %s3297_s23, 128, %s3299_s15, %s3283_s16  }
 0x434 PF: > { %s6810_s7 = sld [smem:[#allocation13_spill]]  ;;  %p4343_p9 = scmp.ge.s32.totalorder %s4572_s28, 2 }
 0x436   : > { %p4334_p10 = pnand %p4343_p9, %p4696_p6 }
 0x438   : > { %p4335_p11 = pneg %p4334_p10 }
 0x43a   : > { %s3310_s14 = sand.u32 1, %s6810_s7  }
 0x43b   : > { %s3311_s17 = scalar_lea.sflag [#allocation5], %s3310_s14 }
 0x43c   : > { %4555 = dma.done.wait (%p4335_p11), %s3311_s17, 128  }
 0x43d   : > { %4557 = vsyncadd (%p4335_p11), %s3311_s17, 4294967168  ;;  %s6812_s28 = sld [smem:[#allocation15_spill]]  ;;  %s6815_s25 = smov %s4564_s26 }
 0x43e   : > { %s6813_s19 = sld [smem:[#allocation14_spill]] }
 0x43f   : > { %s6814_s27 = sld [smem:[#allocation16_spill]] }
 0x443   : > { %p25_p12 = scmp.ge.s32.totalorder %s6812_s28, 4  }
 0x444   : > { %s6816_s26 = smov %s6813_s19 }
 0x445   :  { %27 = sbr.rel (!%p25_p12) target bundleno = 8 (0x8), region = 131 }
 0x44a   :  { %3317 = vsyncpa [#allocation4], 1 }
 0x44b   :  { %3319 = vsyncpa [#allocation4 + $0x1], 1 }
 0x44c   :  { %3320 = vsyncpa [#allocation7], 1 }
 0x44d   :  { %3321 = vsyncpa [#allocation5], 1 }
 0x44e   :  { %3323 = vsyncpa [#allocation5 + $0x1], 1 }

</bundles_post_ra>
